<compile_context>
chip_gen: v5e
topology: v5e:2x2
jax: 0.10.0
libtpu: 0.0.40
codegen_flags: <defaults>
</compile_context>

<pallas_src>
import functools

import jax
import jax.numpy as jnp
from jax.experimental import pallas as pl
from jax.experimental.pallas import tpu as pltpu


def _rmada_fused_kernel(w_sref, b_sref, x_ref, o_ref, *, scale):
    """Fused 1x1-conv + ReLU + nearest-x`scale` upsample for one (batch, H-strip) block.

    w_sref: (C_in, C_out)  SMEM  1x1 conv weight (einsum 'nchw,cd->ndhw' orientation)
    b_sref: (C_out,)       SMEM  conv bias
    x_ref : (nb, C_in, th, W)            VMEM input block (NCHW; W on lanes, rows on sublanes)
    o_ref : (nb, C_out, th, scale*W*scale) VMEM output block; the minor dim holds the `scale`
            replicated copies of each W-doubled row, so a free row-major reshape in the
            wrapper recovers (N, C, Ho, Wo).
    """
    nb, c_in, th, w_dim = x_ref.shape
    c_out = b_sref.shape[0]
    wo = w_dim * scale

    x = x_ref[...]  # (nb, C_in, th, W) f32

    # --- 1x1 conv + bias + ReLU at the ORIGINAL (low) resolution, on the VPU ----------
    # C is tiny (4): a (C,C) MXU dot would use <4% of the array and put MXU pop latency
    # on the critical path of a ~us kernel, so do C_out scalar-broadcast FMA chains with
    # the weight scalars coming straight from SMEM.
    # TODO(synk): for C >= ~128 route the weight through VMEM and use jnp.dot (MXU).
    chans = []
    for o in range(c_out):
        acc = w_sref[0, o] * x[:, 0, :, :]
        for i in range(1, c_in):
            acc = acc + w_sref[i, o] * x[:, i, :, :]
        chans.append(jnp.maximum(acc + b_sref[o], 0.0))
    y = jnp.stack(chans, axis=1)  # (nb, C_out, th, W)

    # --- nearest-neighbour upsample ----------------------------------------------------
    # W direction: the only fundamental lane interleave; done once, on low-res data.
    y_wide = jnp.broadcast_to(y[..., None], (nb, c_out, th, w_dim, scale))
    y_wide = y_wide.reshape(nb, c_out, th, wo)  # (nb, C_out, th, Wo)

    # H direction: pure store addressing -- write the same W-doubled strip into the
    # `scale` consecutive output-row spans.  No vector shuffles, no Ho*Wo intermediate.
    for s in range(scale):
        o_ref[:, :, :, s * wo:(s + 1) * wo] = y_wide


def rmada_scaler_forward(x, conv_w, conv_b, *, scale=2, h_strip=None, batch_on_grid=True):
    """x: (N, C, H, W) float32 (PyTorch NCHW).  Returns (N, C_out, scale*H, scale*W).

    conv_w: (C_in, C_out) as in the reference einsum 'nchw,cd->ndhw'; conv_b: (1, C_out).
    batch_on_grid: keep N as a "parallel" grid axis (v7x megacore); False folds the batch
                   into one grid step (preferred on single-TensorCore v5e/v6e).
    h_strip:       rows per grid step for real image sizes (must divide H); None = full H.
    """
    N, C, H, W = x.shape
    C_out = conv_w.shape[1]
    Ho, Wo = H * scale, W * scale

    th = H if h_strip is None else h_strip
    assert H % th == 0, "h_strip must divide H"
    nb = 1 if batch_on_grid else N
    grid = (N // nb, H // th)

    w_s = conv_w.astype(jnp.float32)              # (C_in, C_out) -> SMEM
    b_s = conv_b.reshape(-1).astype(jnp.float32)  # (C_out,)      -> SMEM

    kernel = functools.partial(_rmada_fused_kernel, scale=scale)

    out4 = pl.pallas_call(
        kernel,
        out_shape=jax.ShapeDtypeStruct((N, C_out, H, scale * Wo), jnp.float32),
        grid_spec=pltpu.PrefetchScalarGridSpec(
            num_scalar_prefetch=2,  # conv weight + bias live in SMEM, fetched once
            grid=grid,
            in_specs=[
                pl.BlockSpec((nb, C, th, W), lambda b, hs, w_sm, b_sm: (b, 0, hs, 0)),
            ],
            out_specs=pl.BlockSpec(
                (nb, C_out, th, scale * Wo), lambda b, hs, w_sm, b_sm: (b, 0, hs, 0)
            ),
        ),
        # Both axes are independent work -> "parallel" (megacore sharding on v7x).
        compiler_params=pltpu.CompilerParams(
            dimension_semantics=("parallel", "parallel"),
        ),
        # NOTE: at these toy sizes every block fits VMEM trivially.  For real image sizes
        # pick th so that double-buffered (in + out) blocks plus the (th, Wo) intermediate
        # stay under the scoped VMEM limit (v5e default 16 MiB, v6e/v7x 32 MiB; v7x has
        # only 64 MiB physical) and set vmem_limit_bytes explicitly; keep th*W and
        # th*scale*Wo multiples of 128 so loads/stores stay lane-dense and unmasked.
    )(w_s, b_s, x.astype(jnp.float32))

    # Free row-major merge of (H, scale) -> Ho; no transpose, no extra HBM round trip.
    return out4.reshape(N, C_out, Ho, Wo)


if __name__ == "__main__":
    key = jax.random.PRNGKey(0)
    kx, kw, kb = jax.random.split(key, 3)

    N, C, H, W = 2, 4, 16, 16
    scale = 2
    x = jax.random.normal(kx, (N, C, H, W), dtype=jnp.float32)
    # deterministic "block" parameters (1x1 conv + ReLU)
    conv_w = jax.random.normal(kw, (C, C), dtype=jnp.float32) * 0.1
    conv_b = jax.random.normal(kb, (1, C), dtype=jnp.float32) * 0.1

    # pure-JAX reference of the ORIGINAL module order: nearest x2 upsample, then conv+ReLU
    up_ref = jnp.repeat(jnp.repeat(x, scale, axis=2), scale, axis=3)
    ref = jnp.maximum(
        jnp.einsum("nchw,cd->ndhw", up_ref, conv_w) + conv_b.reshape(1, C, 1, 1), 0.0
    )

    # Default path: batch kept on the grid (megacore-friendly on v7x).
    out = jax.block_until_ready(rmada_scaler_forward(x, conv_w, conv_b, scale=scale))
    assert out.shape == (N, C, scale * H, scale * W)
    assert jnp.allclose(out, ref, atol=1e-5, rtol=1e-5)

    # Folded-batch path: a single grid step (preferred on single-TensorCore v5e/v6e).
    out_folded = jax.block_until_ready(
        rmada_scaler_forward(x, conv_w, conv_b, scale=scale, batch_on_grid=False)
    )
    assert out_folded.shape == (N, C, scale * H, scale * W)
    assert jnp.allclose(out_folded, ref, atol=1e-5, rtol=1e-5)

    print("KERNEL_OK")
</pallas_src>

<mosaic_0001>
module attributes {stable_mosaic.version = 11 : i64} {
  func.func @_rmada_fused_kernel(%arg0: i32, %arg1: i32, %arg2: memref<4x4xf32, #tpu.memory_space<smem>>, %arg3: memref<4xf32, #tpu.memory_space<smem>>, %arg4: memref<1x4x16x16xf32, #tpu.memory_space<vmem>>, %arg5: memref<1x4x16x64xf32, #tpu.memory_space<vmem>>) attributes {dimension_semantics = [#tpu.dimension_semantics<parallel>, #tpu.dimension_semantics<parallel>], iteration_bounds = array<i64: 2, 1>, scalar_prefetch = 2 : i64, scratch_operands = 0 : i64, tpu.core_type = #tpu.core_type<tc>, window_params = [{transform_indices = @transform_0, window_bounds = array<i64: 1, 4, 16, 16>}, {transform_indices = @transform_1, window_bounds = array<i64: 1, 4, 16, 64>}]} {
    %c0 = arith.constant 0 : index
    %c0_0 = arith.constant 0 : index
    %c0_1 = arith.constant 0 : index
    %c0_2 = arith.constant 0 : index
    %0 = vector.load %arg4[%c0, %c0_0, %c0_1, %c0_2] : memref<1x4x16x16xf32, #tpu.memory_space<vmem>>, vector<1x4x16x16xf32>
    %c0_3 = arith.constant 0 : index
    %c0_4 = arith.constant 0 : index
    %1 = memref.load %arg2[%c0_3, %c0_4] : memref<4x4xf32, #tpu.memory_space<smem>>
    %2 = vector.extract_strided_slice %0 {offsets = [0, 0, 0, 0], sizes = [1, 1, 16, 16], strides = [1, 1, 1, 1]} : vector<1x4x16x16xf32> to vector<1x1x16x16xf32>
    %3 = vector.shape_cast %2 : vector<1x1x16x16xf32> to vector<1x16x16xf32>
    %4 = vector.broadcast %1 : f32 to vector<1x16x16xf32>
    %5 = arith.mulf %4, %3 : vector<1x16x16xf32>
    %c1 = arith.constant 1 : index
    %c0_5 = arith.constant 0 : index
    %6 = memref.load %arg2[%c1, %c0_5] : memref<4x4xf32, #tpu.memory_space<smem>>
    %7 = vector.extract_strided_slice %0 {offsets = [0, 1, 0, 0], sizes = [1, 1, 16, 16], strides = [1, 1, 1, 1]} : vector<1x4x16x16xf32> to vector<1x1x16x16xf32>
    %8 = vector.shape_cast %7 : vector<1x1x16x16xf32> to vector<1x16x16xf32>
    %9 = vector.broadcast %6 : f32 to vector<1x16x16xf32>
    %10 = arith.mulf %9, %8 : vector<1x16x16xf32>
    %11 = arith.addf %5, %10 : vector<1x16x16xf32>
    %c2 = arith.constant 2 : index
    %c0_6 = arith.constant 0 : index
    %12 = memref.load %arg2[%c2, %c0_6] : memref<4x4xf32, #tpu.memory_space<smem>>
    %13 = vector.extract_strided_slice %0 {offsets = [0, 2, 0, 0], sizes = [1, 1, 16, 16], strides = [1, 1, 1, 1]} : vector<1x4x16x16xf32> to vector<1x1x16x16xf32>
    %14 = vector.shape_cast %13 : vector<1x1x16x16xf32> to vector<1x16x16xf32>
    %15 = vector.broadcast %12 : f32 to vector<1x16x16xf32>
    %16 = arith.mulf %15, %14 : vector<1x16x16xf32>
    %17 = arith.addf %11, %16 : vector<1x16x16xf32>
    %c3 = arith.constant 3 : index
    %c0_7 = arith.constant 0 : index
    %18 = memref.load %arg2[%c3, %c0_7] : memref<4x4xf32, #tpu.memory_space<smem>>
    %19 = vector.extract_strided_slice %0 {offsets = [0, 3, 0, 0], sizes = [1, 1, 16, 16], strides = [1, 1, 1, 1]} : vector<1x4x16x16xf32> to vector<1x1x16x16xf32>
    %20 = vector.shape_cast %19 : vector<1x1x16x16xf32> to vector<1x16x16xf32>
    %21 = vector.broadcast %18 : f32 to vector<1x16x16xf32>
    %22 = arith.mulf %21, %20 : vector<1x16x16xf32>
    %23 = arith.addf %17, %22 : vector<1x16x16xf32>
    %c0_8 = arith.constant 0 : index
    %24 = memref.load %arg3[%c0_8] : memref<4xf32, #tpu.memory_space<smem>>
    %25 = vector.broadcast %24 : f32 to vector<1x16x16xf32>
    %26 = arith.addf %23, %25 : vector<1x16x16xf32>
    %cst = arith.constant 0.000000e+00 : f32
    %27 = vector.broadcast %cst : f32 to vector<1x16x16xf32>
    %28 = arith.maximumf %26, %27 : vector<1x16x16xf32>
    %c0_9 = arith.constant 0 : index
    %c1_10 = arith.constant 1 : index
    %29 = memref.load %arg2[%c0_9, %c1_10] : memref<4x4xf32, #tpu.memory_space<smem>>
    %30 = vector.extract_strided_slice %0 {offsets = [0, 0, 0, 0], sizes = [1, 1, 16, 16], strides = [1, 1, 1, 1]} : vector<1x4x16x16xf32> to vector<1x1x16x16xf32>
    %31 = vector.shape_cast %30 : vector<1x1x16x16xf32> to vector<1x16x16xf32>
    %32 = vector.broadcast %29 : f32 to vector<1x16x16xf32>
    %33 = arith.mulf %32, %31 : vector<1x16x16xf32>
    %c1_11 = arith.constant 1 : index
    %c1_12 = arith.constant 1 : index
    %34 = memref.load %arg2[%c1_11, %c1_12] : memref<4x4xf32, #tpu.memory_space<smem>>
    %35 = vector.extract_strided_slice %0 {offsets = [0, 1, 0, 0], sizes = [1, 1, 16, 16], strides = [1, 1, 1, 1]} : vector<1x4x16x16xf32> to vector<1x1x16x16xf32>
    %36 = vector.shape_cast %35 : vector<1x1x16x16xf32> to vector<1x16x16xf32>
    %37 = vector.broadcast %34 : f32 to vector<1x16x16xf32>
    %38 = arith.mulf %37, %36 : vector<1x16x16xf32>
    %39 = arith.addf %33, %38 : vector<1x16x16xf32>
    %c2_13 = arith.constant 2 : index
    %c1_14 = arith.constant 1 : index
    %40 = memref.load %arg2[%c2_13, %c1_14] : memref<4x4xf32, #tpu.memory_space<smem>>
    %41 = vector.extract_strided_slice %0 {offsets = [0, 2, 0, 0], sizes = [1, 1, 16, 16], strides = [1, 1, 1, 1]} : vector<1x4x16x16xf32> to vector<1x1x16x16xf32>
    %42 = vector.shape_cast %41 : vector<1x1x16x16xf32> to vector<1x16x16xf32>
    %43 = vector.broadcast %40 : f32 to vector<1x16x16xf32>
    %44 = arith.mulf %43, %42 : vector<1x16x16xf32>
    %45 = arith.addf %39, %44 : vector<1x16x16xf32>
    %c3_15 = arith.constant 3 : index
    %c1_16 = arith.constant 1 : index
    %46 = memref.load %arg2[%c3_15, %c1_16] : memref<4x4xf32, #tpu.memory_space<smem>>
    %47 = vector.extract_strided_slice %0 {offsets = [0, 3, 0, 0], sizes = [1, 1, 16, 16], strides = [1, 1, 1, 1]} : vector<1x4x16x16xf32> to vector<1x1x16x16xf32>
    %48 = vector.shape_cast %47 : vector<1x1x16x16xf32> to vector<1x16x16xf32>
    %49 = vector.broadcast %46 : f32 to vector<1x16x16xf32>
    %50 = arith.mulf %49, %48 : vector<1x16x16xf32>
    %51 = arith.addf %45, %50 : vector<1x16x16xf32>
    %c1_17 = arith.constant 1 : index
    %52 = memref.load %arg3[%c1_17] : memref<4xf32, #tpu.memory_space<smem>>
    %53 = vector.broadcast %52 : f32 to vector<1x16x16xf32>
    %54 = arith.addf %51, %53 : vector<1x16x16xf32>
    %cst_18 = arith.constant 0.000000e+00 : f32
    %55 = vector.broadcast %cst_18 : f32 to vector<1x16x16xf32>
    %56 = arith.maximumf %54, %55 : vector<1x16x16xf32>
    %c0_19 = arith.constant 0 : index
    %c2_20 = arith.constant 2 : index
    %57 = memref.load %arg2[%c0_19, %c2_20] : memref<4x4xf32, #tpu.memory_space<smem>>
    %58 = vector.extract_strided_slice %0 {offsets = [0, 0, 0, 0], sizes = [1, 1, 16, 16], strides = [1, 1, 1, 1]} : vector<1x4x16x16xf32> to vector<1x1x16x16xf32>
    %59 = vector.shape_cast %58 : vector<1x1x16x16xf32> to vector<1x16x16xf32>
    %60 = vector.broadcast %57 : f32 to vector<1x16x16xf32>
    %61 = arith.mulf %60, %59 : vector<1x16x16xf32>
    %c1_21 = arith.constant 1 : index
    %c2_22 = arith.constant 2 : index
    %62 = memref.load %arg2[%c1_21, %c2_22] : memref<4x4xf32, #tpu.memory_space<smem>>
    %63 = vector.extract_strided_slice %0 {offsets = [0, 1, 0, 0], sizes = [1, 1, 16, 16], strides = [1, 1, 1, 1]} : vector<1x4x16x16xf32> to vector<1x1x16x16xf32>
    %64 = vector.shape_cast %63 : vector<1x1x16x16xf32> to vector<1x16x16xf32>
    %65 = vector.broadcast %62 : f32 to vector<1x16x16xf32>
    %66 = arith.mulf %65, %64 : vector<1x16x16xf32>
    %67 = arith.addf %61, %66 : vector<1x16x16xf32>
    %c2_23 = arith.constant 2 : index
    %c2_24 = arith.constant 2 : index
    %68 = memref.load %arg2[%c2_23, %c2_24] : memref<4x4xf32, #tpu.memory_space<smem>>
    %69 = vector.extract_strided_slice %0 {offsets = [0, 2, 0, 0], sizes = [1, 1, 16, 16], strides = [1, 1, 1, 1]} : vector<1x4x16x16xf32> to vector<1x1x16x16xf32>
    %70 = vector.shape_cast %69 : vector<1x1x16x16xf32> to vector<1x16x16xf32>
    %71 = vector.broadcast %68 : f32 to vector<1x16x16xf32>
    %72 = arith.mulf %71, %70 : vector<1x16x16xf32>
    %73 = arith.addf %67, %72 : vector<1x16x16xf32>
    %c3_25 = arith.constant 3 : index
    %c2_26 = arith.constant 2 : index
    %74 = memref.load %arg2[%c3_25, %c2_26] : memref<4x4xf32, #tpu.memory_space<smem>>
    %75 = vector.extract_strided_slice %0 {offsets = [0, 3, 0, 0], sizes = [1, 1, 16, 16], strides = [1, 1, 1, 1]} : vector<1x4x16x16xf32> to vector<1x1x16x16xf32>
    %76 = vector.shape_cast %75 : vector<1x1x16x16xf32> to vector<1x16x16xf32>
    %77 = vector.broadcast %74 : f32 to vector<1x16x16xf32>
    %78 = arith.mulf %77, %76 : vector<1x16x16xf32>
    %79 = arith.addf %73, %78 : vector<1x16x16xf32>
    %c2_27 = arith.constant 2 : index
    %80 = memref.load %arg3[%c2_27] : memref<4xf32, #tpu.memory_space<smem>>
    %81 = vector.broadcast %80 : f32 to vector<1x16x16xf32>
    %82 = arith.addf %79, %81 : vector<1x16x16xf32>
    %cst_28 = arith.constant 0.000000e+00 : f32
    %83 = vector.broadcast %cst_28 : f32 to vector<1x16x16xf32>
    %84 = arith.maximumf %82, %83 : vector<1x16x16xf32>
    %c0_29 = arith.constant 0 : index
    %c3_30 = arith.constant 3 : index
    %85 = memref.load %arg2[%c0_29, %c3_30] : memref<4x4xf32, #tpu.memory_space<smem>>
    %86 = vector.extract_strided_slice %0 {offsets = [0, 0, 0, 0], sizes = [1, 1, 16, 16], strides = [1, 1, 1, 1]} : vector<1x4x16x16xf32> to vector<1x1x16x16xf32>
    %87 = vector.shape_cast %86 : vector<1x1x16x16xf32> to vector<1x16x16xf32>
    %88 = vector.broadcast %85 : f32 to vector<1x16x16xf32>
    %89 = arith.mulf %88, %87 : vector<1x16x16xf32>
    %c1_31 = arith.constant 1 : index
    %c3_32 = arith.constant 3 : index
    %90 = memref.load %arg2[%c1_31, %c3_32] : memref<4x4xf32, #tpu.memory_space<smem>>
    %91 = vector.extract_strided_slice %0 {offsets = [0, 1, 0, 0], sizes = [1, 1, 16, 16], strides = [1, 1, 1, 1]} : vector<1x4x16x16xf32> to vector<1x1x16x16xf32>
    %92 = vector.shape_cast %91 : vector<1x1x16x16xf32> to vector<1x16x16xf32>
    %93 = vector.broadcast %90 : f32 to vector<1x16x16xf32>
    %94 = arith.mulf %93, %92 : vector<1x16x16xf32>
    %95 = arith.addf %89, %94 : vector<1x16x16xf32>
    %c2_33 = arith.constant 2 : index
    %c3_34 = arith.constant 3 : index
    %96 = memref.load %arg2[%c2_33, %c3_34] : memref<4x4xf32, #tpu.memory_space<smem>>
    %97 = vector.extract_strided_slice %0 {offsets = [0, 2, 0, 0], sizes = [1, 1, 16, 16], strides = [1, 1, 1, 1]} : vector<1x4x16x16xf32> to vector<1x1x16x16xf32>
    %98 = vector.shape_cast %97 : vector<1x1x16x16xf32> to vector<1x16x16xf32>
    %99 = vector.broadcast %96 : f32 to vector<1x16x16xf32>
    %100 = arith.mulf %99, %98 : vector<1x16x16xf32>
    %101 = arith.addf %95, %100 : vector<1x16x16xf32>
    %c3_35 = arith.constant 3 : index
    %c3_36 = arith.constant 3 : index
    %102 = memref.load %arg2[%c3_35, %c3_36] : memref<4x4xf32, #tpu.memory_space<smem>>
    %103 = vector.extract_strided_slice %0 {offsets = [0, 3, 0, 0], sizes = [1, 1, 16, 16], strides = [1, 1, 1, 1]} : vector<1x4x16x16xf32> to vector<1x1x16x16xf32>
    %104 = vector.shape_cast %103 : vector<1x1x16x16xf32> to vector<1x16x16xf32>
    %105 = vector.broadcast %102 : f32 to vector<1x16x16xf32>
    %106 = arith.mulf %105, %104 : vector<1x16x16xf32>
    %107 = arith.addf %101, %106 : vector<1x16x16xf32>
    %c3_37 = arith.constant 3 : index
    %108 = memref.load %arg3[%c3_37] : memref<4xf32, #tpu.memory_space<smem>>
    %109 = vector.broadcast %108 : f32 to vector<1x16x16xf32>
    %110 = arith.addf %107, %109 : vector<1x16x16xf32>
    %cst_38 = arith.constant 0.000000e+00 : f32
    %111 = vector.broadcast %cst_38 : f32 to vector<1x16x16xf32>
    %112 = arith.maximumf %110, %111 : vector<1x16x16xf32>
    %113 = vector.shape_cast %28 : vector<1x16x16xf32> to vector<1x1x16x16xf32>
    %114 = vector.shape_cast %56 : vector<1x16x16xf32> to vector<1x1x16x16xf32>
    %115 = vector.shape_cast %84 : vector<1x16x16xf32> to vector<1x1x16x16xf32>
    %116 = vector.shape_cast %112 : vector<1x16x16xf32> to vector<1x1x16x16xf32>
    %117 = tpu.concatenate %113, %114, %115, %116 in 1 : vector<1x1x16x16xf32>, vector<1x1x16x16xf32>, vector<1x1x16x16xf32>, vector<1x1x16x16xf32> -> vector<1x4x16x16xf32>
    %118 = vector.shape_cast %117 : vector<1x4x16x16xf32> to vector<1x4x16x16x1xf32>
    %119 = vector.shape_cast %118 : vector<1x4x16x16x1xf32> to vector<1x4x16x16x1xf32>
    %120 = vector.broadcast %119 : vector<1x4x16x16x1xf32> to vector<1x4x16x16x2xf32>
    %121 = vector.shape_cast %120 : vector<1x4x16x16x2xf32> to vector<1x4x16x32xf32>
    %c0_39 = arith.constant 0 : index
    %c0_40 = arith.constant 0 : index
    %c0_41 = arith.constant 0 : index
    %c0_42 = arith.constant 0 : index
    %122 = vector.load %arg5[%c0_39, %c0_40, %c0_41, %c0_42] : memref<1x4x16x64xf32, #tpu.memory_space<vmem>>, vector<1x4x16x32xf32>
    tpu.vector_store %arg5[%c0_39, %c0_40, %c0_41, %c0_42], %121 {strides = array<i32>} : memref<1x4x16x64xf32, #tpu.memory_space<vmem>>, vector<1x4x16x32xf32>,
    %c0_43 = arith.constant 0 : index
    %c0_44 = arith.constant 0 : index
    %c0_45 = arith.constant 0 : index
    %c32 = arith.constant 32 : index
    %123 = vector.load %arg5[%c0_43, %c0_44, %c0_45, %c32] : memref<1x4x16x64xf32, #tpu.memory_space<vmem>>, vector<1x4x16x32xf32>
    tpu.vector_store %arg5[%c0_43, %c0_44, %c0_45, %c32], %121 {strides = array<i32>} : memref<1x4x16x64xf32, #tpu.memory_space<vmem>>, vector<1x4x16x32xf32>,
    return
  }
  func.func @transform_0(%arg0: i32, %arg1: i32, %arg2: memref<4x4xf32, #tpu.memory_space<smem>>, %arg3: memref<4xf32, #tpu.memory_space<smem>>) -> (i32, i32, i32, i32) {
    %c0_i32 = arith.constant 0 : i32
    %c0_i32_0 = arith.constant 0 : i32
    %c0_i32_1 = arith.constant 0 : i32
    return %arg0, %c0_i32, %arg1, %c0_i32_0 : i32, i32, i32, i32
  }
  func.func @transform_1(%arg0: i32, %arg1: i32, %arg2: memref<4x4xf32, #tpu.memory_space<smem>>, %arg3: memref<4xf32, #tpu.memory_space<smem>>) -> (i32, i32, i32, i32) {
    %c0_i32 = arith.constant 0 : i32
    %c0_i32_0 = arith.constant 0 : i32
    %c0_i32_1 = arith.constant 0 : i32
    return %arg0, %c0_i32, %arg1, %c0_i32_0 : i32, i32, i32, i32
  }
}

</mosaic_0001>

<bundles_post_ra>
// kernel: tpu_custom_call.1
= control target key start
LH: loop header
LB: loop body
LE: loop exit
PB: predicated region body
PF: predicated region fallthrough
CT: control target
= control target key end

     0   :  { %s4002_s18 = smov [#allocation3]   ;;  %s4003_s19 = smov [#allocation4]   ;;  %s6442_s0 = inlined_call_operand.hbm [shape: f32[4,4], index: 0, kind: input, shape index: {}]   ;;  %s6443_s2 = inlined_call_operand.hbm [shape: f32[2,4,16,16], index: 2, kind: input, shape index: {}]   ;;  %s6444_s3 = inlined_call_operand.hbm [shape: f32[2,4,16,64], index: 3, kind: output, shape index: {}]   ;;  %s6445_s1 = inlined_call_operand.hbm [shape: f32[4], index: 1, kind: input, shape index: {}]  }
   0x1   :  { %s9_s14 = sshll.u32 %s6442_s0, 4  ;;  %s14_s17 = sshll.u32 %s6445_s1, 4  ;;  %s10_s14 = int_to_ptr.hbm [resolvable:$true] %s9_s14  ;;  %s15_s17 = int_to_ptr.hbm [resolvable:$true] %s14_s17 }
   0x2   :  { %12 = dma.hbm_to_smem %s10_s14, 64, %s4002_s18, [#allocation2] }
   0x3   :  { %17 = dma.hbm_to_smem %s15_s17, 16, %s4003_s19, [#allocation2] }
   0x4   :  { %3968 = dma.done.wait [#allocation2], 80 }
   0x5   :  { %3969 = vsyncadd [#allocation2], 4294967216 }
   0x6   :  { %20 = sfence }
   0x7   :  { %21 = vsyncpa [#allocation6], 0 }
   0x8   :  { %23 = vsyncpa [#allocation6 + $0x1], 0 }
   0x9   :  { %24 = vsyncpa [#allocation7], 0 }
   0xa   :  { %26 = vsyncpa [#allocation7 + $0x1], 0  ;;  %s4051_s20 = smov 0   ;;  %s4053_s0 = smov 0  }
   0xb   :  { %s4055_s21 = smov 0   ;;  %s4057_s1 = smov 0  }
   0xc   :  { %s4059_s22 = smov 0   ;;  %s4061_s23 = smov 0  }
   0xd LB: > { %s3687_s24 = sadd.s32 4294967295, %s4000_s23   ;;  %s3688_s25 = sadd.s32 4294967294, %s4000_s23   ;;  %s4000_s23 = sphi %s4061_s23, %s32_s23   ;;  %s3996_s22 = sphi %s4059_s22, %s6775_s22   ;;  %s3992_s1 = sphi %s4057_s1, %s6774_s1   ;;  %s3988_s21 = sphi %s4055_s21, %s6773_s21   ;;  %s3984_s0 = sphi %s4053_s0, %s6772_s0   ;;  %s3980_s20 = sphi %s4051_s20, %s6771_s20  }
   0xe   : > { %s44_s26 = sadd.s32 1, %s3996_s22  ;;  %s53_s27 = sadd.s32 1, %s3988_s21 }
   0xf   : > { %p46_p0 = scmp.ge.s32.totalorder %s44_s26, 2  ;;  %p60_p1 = scmp.ne.s32.totalorder %s3988_s21, %s3984_s0 }
  0x10   : > { %p61_p2 = scmp.eq.s32.totalorder %s4000_s23, 0  ;;  %p66_p3 = scmp.ne.s32.totalorder %s3984_s0, %s3980_s20 }
  0x11   : > { %s6777_s26 = smov (%p46_p0, %s44_s26), 0  ;;  %p67_p5 = scmp.eq.s32.totalorder %s3687_s24, 0 }
  0x12   : > { %p4092_p4 = por %p61_p2, %p60_p1  ;;  %s48_s29 = ssub.s32 %s3996_s22, %s6777_s26 }
  0x13   : > { %p92_p6 = scmp.eq.s32.totalorder %s3687_s24, 1  ;;  %p51_p7 = scmp.eq.s32.totalorder %s48_s29, 0 }
  0x14   : > { %p4098_p8 = por %p67_p5, %p66_p3  ;;  %p98_p10 = scmp.eq.s32.totalorder %s3688_s25, 1 }
  0x15   : > { %p4102_p9 = por %p92_p6, %p60_p1  ;;  %p3690_p12 = scmp.ge.s32.totalorder %s4000_s23, 2 }
  0x16   : > { %s4107_s5 = scalar_select %p51_p7, %s3988_s21, %s53_s27  }
  0x17   : > { %p4109_p11 = por %p98_p10, %p66_p3  ;;  %p3734_p13 = scmp.lt.s32.totalorder %s4000_s23, 2 }
  0x18   : > { %s118_s7 = sand.u32 1, %s3988_s21   ;;  %s3720_s9 = sshll.u32 %s3996_s22, 6 }
  0x19   : > { %s3691_s8 = sshll.u32 %s118_s7, 6  ;;  %s129_s12 = scalar_lea.hbm %s6443_s2, %s3720_s9 }
  0x1a   : > { %s122_s13 = scalar_lea.vmem [#allocation5], %s3691_s8  ;;  %s130_s15 = sshll.u32 %s129_s12, 4  ;;  %s131_s15 = int_to_ptr.hbm [resolvable:$true] %s130_s15 }
  0x1b   : > { %s132_s14 = sshll.u32 %s122_s13, 4  ;;  %p3727_p0 = pnand %p3734_p13, %p4092_p4  ;;  %s133_s14 = int_to_ptr.vmem [resolvable:$true] %s132_s14 }
  0x1c   : > { %p3694_p1 = scmp.ge.s32.totalorder %s4000_s23, 1  ;;  %s119_s16 = scalar_lea.sflag [#allocation6], %s118_s7 }
  0x1d   : > { %s4004_s17 = smov 128   ;;  %s4005_s18 = smov 8  }
  0x1e   : > { %3729 = dma.hbm_to_vmem [thread:$0]  (!%p3727_p0), %s131_s15, 1024, %s133_s14, %s119_s16, %s4004_s17, %s4004_s17, %s4005_s18  }
  0x1f   : > { %p140_p2 = scmp.lt.s32.totalorder %s4000_s23, 3 }
  0x21   : > { %p141_p3 = pnand %p3694_p1, %p140_p2 }
  0x23   : > { %144 = sbr.rel (%p141_p3) target bundleno = 1331 (0x533), region = 24 }
  0x28   : > { %s4125_s19 = sand.u32 1, %s3984_s0  }
  0x29   : > { %s3695_s24 = sshll.u32 %s4125_s19, 6  ;;  %s147_s25 = scalar_lea.sflag [#allocation6], %s4125_s19 }
  0x2a   : > { %s4131_s27 = scalar_lea.vmem [#allocation5], %s3695_s24 }
  0x2b   : > { %3971 = dma.done.wait (%p4098_p8), %s147_s25, 1024  }
  0x2c   : > { %3973 = vsyncadd (%p4098_p8), %s147_s25, 4294966272  ;;  %v293_v0 = vlaneseq  ;;  %s180_s28 = sld [smem:[#allocation3]]  ;;  %v4147_v2 = vld [vmem:[%s4131_s27] sm:$0xff]  ;;  %v4150_v3 = vld [vmem:[%s4131_s27 + $0x10] sm:$0xff]  ;;  %vm1125_vm0 = vcmask 1047556   ;;  %vm3397_vm1 = vcmask 15360  }
  0x2d   : > { %s3697_s29 = sld [smem:[#allocation3 + $0x80]]  ;;  %v4153_v5 = vld [vmem:[%s4131_s27 + $0x20] sm:$0xff]  ;;  %v4157_v8 = vld [vmem:[%s4131_s27 + $0x8] sm:$0xff]  ;;  %v4160_v9 = vld [vmem:[%s4131_s27 + $0x18] sm:$0xff]  ;;  %vm3406_vm2 = vcmask 31744   ;;  %vm3415_vm3 = vcmask 48128  }
  0x2e   : > { %v4137_v1 = vshrl.u32 %v293_v0, 7  ;;  %s3698_s7 = sld [smem:[#allocation3 + $0x100]]  ;;  %v4163_v10 = vld [vmem:[%s4131_s27 + $0x30] sm:$0xff]  ;;  %v4172_v19 = vld [vmem:[%s4131_s27 + $0x28] sm:$0xff]  ;;  %v4179_v25 = vld [vmem:[%s4131_s27 + $0x38] sm:$0xff]  ;;  %vm3424_vm4 = vcmask 64512  }
  0x2f   : > { %s4141_s8 = sld [smem:[#allocation3 + $0x180]]  ;;  %vm3433_vm5 = vcmask 80896   ;;  %vm3442_vm6 = vcmask 97280   ;;  %vm3451_vm7 = vcmask 113664   ;;  %vm3460_vm8 = vcmask 130048  }
  0x30   : > { %3810 = vset.pattern.permute.xlu2 %v4137_v1  ;;  %3808 = vset.pattern.permute.xlu1 %v4137_v1  ;;  %s4144_s30 = sld [smem:[#allocation4]]  ;;  %v4193_v36 = vadd.s32 8, %v4137_v1  ;;  %vm3469_vm9 = vcmask 146432   ;;  %vm3478_vm10 = vcmask 162816   ;;  %vm3487_vm11 = vcmask 179200  }
  0x31   : > { %3807 = vset.pattern.permute.xlu0 %v4137_v1  ;;  %s4176_s9 = sld [smem:[#allocation3 + $0x1]]  ;;  %vm3496_vm12 = vcmask 195584   ;;  %vm3505_vm13 = vcmask 211968   ;;  %vm3523_vm14 = vcmask 244736   ;;  %vm3514_vm15 = vcmask 228352  }
  0x32   : > { %v181_v4 = vstv %s180_s28  ;;  %s3701_s10 = sld [smem:[#allocation3 + $0x81]] }
  0x33   : > { %v182_v6 = vmul.f32 %v181_v4, %v4147_v2  ;;  %v185_v7 = vstv %s3697_s29  ;;  %v183_v17 = vmul.f32 %v181_v4, %v4157_v8  ;;  %s3702_s11 = sld [smem:[#allocation3 + $0x101]] }
  0x34   : > { %v186_v11 = vmul.f32 %v185_v7, %v4150_v3  ;;  %v191_v12 = vstv %s3698_s7  ;;  %v187_v18 = vmul.f32 %v185_v7, %v4160_v9  ;;  %s4190_s12 = sld [smem:[#allocation3 + $0x181]] }
  0x35   : > { %v192_v13 = vmul.f32 %v191_v12, %v4153_v5  ;;  %v197_v14 = vstv %s4141_s8  ;;  %v193_v24 = vmul.f32 %v191_v12, %v4172_v19  ;;  %s4206_s13 = sld [smem:[#allocation4 + $0x1]]  ;;  %s4008_s8 = smov 2  }
  0x36   : > { %v188_v15 = vadd.f32 %v186_v11, %v182_v6  ;;  %v198_v16 = vmul.f32 %v197_v14, %v4163_v10  ;;  %v203_v21 = vstv %s4144_s30  ;;  %v189_v23 = vadd.f32 %v187_v18, %v183_v17  ;;  %s4215_s14 = sld [smem:[#allocation3 + $0x2]]  ;;  %s4009_s30 = smov 4  }
  0x37   : > { %v199_v29 = vmul.f32 %v197_v14, %v4179_v25  ;;  %v209_v34 = vstv %s4176_s9  ;;  %s4218_s15 = sld [smem:[#allocation3 + $0x82]]  ;;  %s4010_s9 = smov 6  }
  0x38   : > { %v194_v20 = vadd.f32 %v192_v13, %v188_v15  ;;  %v195_v28 = vadd.f32 %v193_v24, %v189_v23  ;;  %v213_v35 = vstv %s3701_s10  ;;  %v210_v39 = vmul.f32 %v209_v34, %v4147_v2  ;;  %s4223_s16 = sld [smem:[#allocation3 + $0x102]]  ;;  %s4011_s10 = smov 8  }
  0x39   : > { %v214_v40 = vmul.f32 %v213_v35, %v4150_v3  ;;  %v219_v41 = vstv %s3702_s11  ;;  %v211_v46 = vmul.f32 %v209_v34, %v4157_v8  ;;  %v215_v47 = vmul.f32 %v213_v35, %v4160_v9  ;;  %s4226_s17 = sld [smem:[#allocation3 + $0x182]]  ;;  %s4012_s11 = smov 10  }
  0x3a   : > { %v200_v22 = vadd.f32 %v198_v16, %v194_v20  ;;  %v201_v33 = vadd.f32 %v199_v29, %v195_v28  ;;  %v220_v44 = vmul.f32 %v219_v41, %v4153_v5  ;;  %v225_v45 = vstv %s4190_s12  ;;  %s4232_s18 = sld [smem:[#allocation3 + $0x3]]  ;;  %s4013_s12 = smov 12  }
  0x3b   : > { %v216_v43 = vadd.f32 %v214_v40, %v210_v39  ;;  %v226_v50 = vmul.f32 %v225_v45, %v4163_v10  ;;  %v217_v51 = vadd.f32 %v215_v47, %v211_v46  ;;  %v221_v52 = vmul.f32 %v219_v41, %v4172_v19  ;;  %s4236_s25 = sld [smem:[#allocation3 + $0x83]] }
  0x3c   : > { %v204_v26 = vadd.f32 %v203_v21, %v200_v22  ;;  %v205_v37 = vadd.f32 %v203_v21, %v201_v33  ;;  %v231_v54 = vstv %s4206_s13  ;;  %v227_v57 = vmul.f32 %v225_v45, %v4179_v25  ;;  %s4238_s27 = sld [smem:[#allocation3 + $0x103]]  ;;  %s4014_s13 = smov 14  }
  0x3d   : > { %v222_v49 = vadd.f32 %v220_v44, %v216_v43  ;;  %v223_v56 = vadd.f32 %v221_v52, %v217_v51  ;;  %v237_v62 = vstv %s4215_s14  ;;  %v241_v63 = vstv %s4218_s15  ;;  %s4244_s28 = sld [smem:[#allocation3 + $0x183]]  ;;  %s4015_s14 = smov 16  }
  0x3e   : > { %v4181_v27 = vmax.f32 %v204_v26, 0.0  ;;  %v4202_v42 = vmax.f32 %v205_v37, 0.0  ;;  %v238_v6 = vmul.f32 %v237_v62, %v4147_v2  ;;  %v242_v7 = vmul.f32 %v241_v63, %v4150_v3  ;;  %s4253_s29 = sld [smem:[#allocation4 + $0x2]]  ;;  %s4016_s15 = smov 18  }
  0x3f   : > { %v228_v53 = vadd.f32 %v226_v50, %v222_v49  ;;  %v229_v60 = vadd.f32 %v227_v57, %v223_v56  ;;  %v247_v11 = vstv %s4223_s16  ;;  %v253_v15 = vstv %s4226_s17  ;;  %s3714_s7 = sld [smem:[#allocation4 + $0x3]]  ;;  %s4017_s16 = smov 20  }
  0x40   : > { %v318_v30 = vperm.slane %v4181_v27, 2  ;;  %v305_v31 = vperm.slane %v4181_v27, 1  ;;  %v292_v32 = vperm.slane %v4181_v27, 0  ;;  %v344_v38 = vperm.slane %v4181_v27, 4  ;;  %s4018_s17 = smov 22  }
  0x41   : > { %v409_v48 = vperm.slane %v4202_v42, 1  ;;  %v331_v55 = vperm.slane %v4181_v27, 3  ;;  %v474_v58 = vperm.slane %v4202_v42, 6  ;;  %v232_v59 = vadd.f32 %v231_v54, %v228_v53 }
  0x42   : > { %323 = vperm.xlu2 %3810, %v318_v30   ;;  %310 = vperm.xlu1 %3808, %v305_v31   ;;  %v233_v0 = vadd.f32 %v231_v54, %v229_v60  ;;  %v244_v13 = vadd.f32 %v242_v7, %v238_v6  ;;  %v248_v14 = vmul.f32 %v247_v11, %v4153_v5  ;;  %v265_v16 = vstv %s4232_s18  ;;  %s4019_s18 = smov 24  }
  0x43   : > { %297 = vperm.xlu0 %3807, %v292_v32   ;;  %v4230_v61 = vmax.f32 %v232_v59, 0.0  ;;  %v269_v17 = vstv %s4236_s25  ;;  %v266_v18 = vmul.f32 %v265_v16, %v4147_v2  ;;  %v357_v21 = vperm.slane %v4181_v27, 5  ;;  %s4020_s25 = smov 26  }
  0x44   : > { %v4247_v12 = vmax.f32 %v233_v0, 0.0  ;;  %v270_v20 = vmul.f32 %v269_v17, %v4150_v3  ;;  %v275_v23 = vstv %s4238_s27  ;;  %v250_v24 = vadd.f32 %v248_v14, %v244_v13  ;;  %s4021_s27 = smov 28  }
  0x45   : > { %v539_v4 = vperm.slane %v4230_v61, 3  ;;  %v254_v26 = vmul.f32 %v253_v15, %v4163_v10  ;;  %v276_v29 = vmul.f32 %v275_v23, %v4153_v5  ;;  %v259_v34 = vstv %s4253_s29  ;;  %s4023_s29 = smov 32  }
  0x46   : > { %v6461_v22 = vperm.slane %v4247_v12, 0  ;;  %v272_v28 = vadd.f32 %v270_v20, %v266_v18  ;;  %v370_v35 = vperm.slane %v4181_v27, 6  ;;  %v6458_v37 = vperm.slane %v4247_v12, 5 }
  0x47   : > { %v256_v2 = vadd.f32 %v254_v26, %v250_v24  ;;  %v239_v5 = vmul.f32 %v237_v62, %v4157_v8  ;;  %v243_v40 = vmul.f32 %v241_v63, %v4160_v9  ;;  %v249_v43 = vmul.f32 %v247_v11, %v4172_v19 }
  0x48   : > { %v255_v46 = vmul.f32 %v253_v15, %v4179_v25  ;;  %v383_v47 = vperm.slane %v4181_v27, 7  ;;  %v287_v52 = vstv %s3714_s7  ;;  %v396_v53 = vperm.slane %v4202_v42, 0  ;;  %s6312_s7 = scalar_lea.vmem [#allocation8], %s3695_s24  ;;  %s3721_s24 = sshll.u32 %s3992_s1, 6 }
  0x49   : > { %v260_v39 = vadd.f32 %v259_v34, %v256_v2  ;;  %v245_v41 = vadd.f32 %v243_v40, %v239_v5  ;;  %v267_v56 = vmul.f32 %v265_v16, %v4157_v8  ;;  %v271_v57 = vmul.f32 %v269_v17, %v4160_v9 }
  0x4a   : > { %3811 = vset.pattern.permute.xlu2 %v4193_v36  ;;  %3809 = vset.pattern.permute.xlu1 %v4193_v36  ;;  %v277_v62 = vmul.f32 %v275_v23, %v4172_v19  ;;  %v422_v9 = vperm.slane %v4202_v42, 2  ;;  %v448_v14 = vperm.slane %v4202_v42, 4  ;;  %v461_v16 = vperm.slane %v4202_v42, 5 }
  0x4b   : > { %349 = vperm.xlu0 %3807, %v344_v38   ;;  %v251_v45 = vadd.f32 %v249_v43, %v245_v41  ;;  %v273_v60 = vadd.f32 %v271_v57, %v267_v56  ;;  %v4006_v24 = vmov 1983009808   ;;  %v513_v56 = vperm.slane %v4230_v61, 1 }
  0x4c   : > { %v1130_v26 = vunpack.c.l.s4 %v4006_v24  ;;  %v6459_v57 = vperm.slane %v4247_v12, 7 }
  0x4d   : > { %v279_v0 = vadd.f32 %v277_v62, %v273_v60 }
  0x52   : > { %329 = vperm.xlu2 %3811, %v318_v30   ;;  %316 = vperm.xlu1 %3809, %v305_v31   ;;  %v281_v30 = vstv %s4244_s28  ;;  %v278_v31 = vadd.f32 %v276_v29, %v272_v28  ;;  %s4022_s28 = smov 30  }
  0x53   : > { %414 = vperm.xlu0 %3807, %v409_v48   ;;  %v282_v33 = vmul.f32 %v281_v30, %v4163_v10  ;;  %v4280_v10 = vmax.f32 %v260_v39, 0.0  ;;  %v283_v6 = vmul.f32 %v281_v30, %v4179_v25  ;;  %v435_v25 = vperm.slane %v4202_v42, 3 }
  0x55   : > { %v284_v3 = vadd.f32 %v282_v33, %v278_v31  ;;  %v6456_v44 = vperm.slane %v4280_v10, 2  ;;  %v6454_v49 = vperm.slane %v4280_v10, 7  ;;  %v285_v8 = vadd.f32 %v283_v6, %v279_v0 }
  0x56   : > { %v4346_v33 = vunpack.c.0.s8 %v1130_v26  ;;  %v526_v0 = vperm.slane %v4230_v61, 2  ;;  %v6457_v6 = vperm.slane %v4280_v10, 4 }
  0x57   : > { %v289_v11 = vadd.f32 %v287_v52, %v285_v8 }
  0x59   : > { %v4314_v19 = vmax.f32 %v289_v11, 0.0 }
  0x5a   : > { %342 = vperm.xlu2 %3811, %v331_v55   ;;  %3812 = vset.pattern.permute.xlu1 %v4137_v1 }
  0x5b   : > { %479 = vperm.xlu0 %3807, %v474_v58   ;;  %v6446_v13 = vperm.slane %v4314_v19, 3 }
  0x62   : > { %3814 = vset.pattern.permute.xlu2 %v4137_v1  ;;  %336 = vperm.xlu1 %3812, %v331_v55   ;;  %v288_v55 = vadd.f32 %v287_v52, %v284_v3  ;;  %v565_v3 = vperm.slane %v4230_v61, 5 }
  0x63   : > { %544 = vperm.xlu0 %3807, %v539_v4  }
  0x64   : > { %v4301_v59 = vmax.f32 %v288_v55, 0.0 }
  0x66   : > { %v6450_v63 = vperm.slane %v4301_v59, 1  ;;  %v6448_v7 = vperm.slane %v4301_v59, 6 }
  0x6a   : > { %362 = vperm.xlu2 %3814, %v357_v21   ;;  %3813 = vset.pattern.permute.xlu1 %v4193_v36 }
  0x6b   : > { %609 = vperm.xlu0 %3807, %v6461_v22  }
  0x72   : > { %375 = vperm.xlu2 %3814, %v370_v35   ;;  %355 = vperm.xlu1 %3813, %v344_v38   ;;  %v257_v38 = vadd.f32 %v255_v46, %v251_v45 }
  0x73   : > { %674 = vperm.xlu0 %3807, %v6458_v37  }
  0x74   : > { %v261_v50 = vadd.f32 %v259_v34, %v257_v38 }
  0x76   : > { %v4293_v51 = vmax.f32 %v261_v50, 0.0 }
  0x78   : > { %v6452_v54 = vperm.slane %v4293_v51, 4  ;;  %v6453_v24 = vperm.slane %v4293_v51, 6 }
  0x7a   : > { %3816 = vset.pattern.permute.xlu2 %v4193_v36  ;;  %368 = vperm.xlu1 %3813, %v357_v21   ;;  %v500_v21 = vperm.slane %v4230_v61, 0 }
  0x7b   : > { %739 = vperm.xlu0 %3807, %v6456_v44  }
  0x82   : > { %394 = vperm.xlu2 %3816, %v383_v47   ;;  %3815 = vset.pattern.permute.xlu1 %v4137_v1 }
  0x83   : > { %804 = vperm.xlu0 %3807, %v6454_v49  }
  0x8a   : > { %407 = vperm.xlu2 %3816, %v396_v53   ;;  %388 = vperm.xlu1 %3815, %v383_v47  }
  0x8b   : > { %869 = vperm.xlu0 %3807, %v6452_v54  }
  0x92   : > { %3818 = vset.pattern.permute.xlu2 %v4137_v1  ;;  %401 = vperm.xlu1 %3815, %v396_v53  }
  0x93   : > { %934 = vperm.xlu0 %3807, %v6450_v63   ;;  %v6460_v63 = vperm.slane %v4247_v12, 1 }
  0x9a   : > { %427 = vperm.xlu2 %3818, %v422_v9   ;;  %3817 = vset.pattern.permute.xlu1 %v4193_v36 }
  0x9b   : > { %999 = vperm.xlu0 %3807, %v6448_v7  }
  0x9c   : > { %v324_v17 = vpop.permute.xlu2 %323 }
  0x9d   : > { %v1124_v27 = vrot.slane %v324_v17, 4 }
  0xa2   : > { %440 = vperm.xlu2 %3818, %v435_v25   ;;  %420 = vperm.xlu1 %3817, %v409_v48  }
  0xa3   : > { %1064 = vperm.xlu0 %3807, %v6446_v13  }
  0xaa   : > { %3820 = vset.pattern.permute.xlu2 %v4193_v36  ;;  %433 = vperm.xlu1 %3817, %v422_v9  }
  0xab   : > { %3857 = vset.pattern.permute.xlu0 %v4193_v36 }
  0xac   : > { %v4344_v31 = vpop.permute.xlu2 %329 }
  0xb2   : > { %459 = vperm.xlu2 %3820, %v448_v14   ;;  %3819 = vset.pattern.permute.xlu1 %v4137_v1 }
  0xb3   : > { %303 = vperm.xlu0 %3857, %v292_v32   ;;  %v487_v32 = vperm.slane %v4202_v42, 7 }
  0xb4   : > { %v311_v18 = vpop.permute.xlu1 %310  ;;  %v4370_v47 = vpop.permute.xlu2 %342 }
  0xb5   : > { %v298_v15 = vpop.permute.xlu0 %297  ;;  %v1139_v39 = vrot.slane %v311_v18, 4  ;;  %v1361_v13 = vrot.slane %v4370_v47, 4 }
  0xb6   : > { %v1127_v23 = vrot.slane %v298_v15, 4  ;;  %v1126_v2 = vsel %vm1125_vm0, %v1124_v27, %v298_v15 }
  0xb8   : > { %v1128_v29 = vsel %vm1125_vm0, %v324_v17, %v1127_v23 }
  0xb9   : > { %v4351_v34 = vperm.slane %v1128_v29, %v4346_v33 }
  0xba   : > { %472 = vperm.xlu2 %3820, %v461_v16   ;;  %453 = vperm.xlu1 %3819, %v448_v14  }
  0xbb   : > { %381 = vperm.xlu0 %3857, %v370_v35   ;;  %v4354_v35 = vperm.slane %v1126_v2, %v4346_v33  ;;  %v1187_v5 = vrot.slane %v4351_v34, 4 }
  0xbd   : > { %v4331_v48 = vpop.permute.xlu0 %349  ;;  %v1175_v46 = vrot.slane %v4354_v35, 4 }
  0xbe   : > { %v1151_v14 = vrot.slane %v4331_v48, 4 }
  0xc2   : > { %3822 = vset.pattern.permute.xlu2 %v4137_v1  ;;  %466 = vperm.xlu1 %3819, %v461_v16  }
  0xc3   : > { %446 = vperm.xlu0 %3857, %v435_v25   ;;  %v6455_v25 = vperm.slane %v4293_v51, 1 }
  0xc4   : > { %v4339_v28 = vpop.permute.xlu1 %316  ;;  %v363_v60 = vpop.permute.xlu2 %362 }
  0xc5   : > { %v4334_v20 = vpop.permute.xlu0 %414  ;;  %v1163_v26 = vrot.slane %v363_v60, 4 }
  0xca   : > { %492 = vperm.xlu2 %3822, %v487_v32   ;;  %3821 = vset.pattern.permute.xlu1 %v4193_v36 }
  0xcb   : > { %511 = vperm.xlu0 %3857, %v500_v21  }
  0xcc   : > { %v376_v8 = vpop.permute.xlu2 %375 }
  0xcd   : > { %v4342_v30 = vpop.permute.xlu0 %479  ;;  %v1149_v15 = vrot.slane %v376_v8, 4  ;;  %v1152_v23 = vsel %vm1125_vm0, %v376_v8, %v1151_v14  ;;  %v6451_v14 = vperm.slane %v4301_v59, 3 }
  0xce   : > { %v4419_v29 = vperm.slane %v1152_v23, %v4346_v33  ;;  %v1261_v37 = vrot.slane %v4342_v30, 4 }
  0xd2   : > { %505 = vperm.xlu2 %3822, %v500_v21   ;;  %485 = vperm.xlu1 %3821, %v474_v58   ;;  %v6462_v58 = vperm.slane %v4247_v12, 2  ;;  %v1150_v21 = vsel %vm1125_vm0, %v1149_v15, %v4331_v48 }
  0xd3   : > { %576 = vperm.xlu0 %3857, %v565_v3   ;;  %v1156_v27 = vperm.slane %v1150_v21, %v4346_v33 }
  0xd4   : > { %v337_v40 = vpop.permute.xlu1 %336 }
  0xd5   : > { %v1137_v41 = vrot.slane %v337_v40, 4  ;;  %v1140_v43 = vsel %vm1125_vm0, %v337_v40, %v1139_v39  ;;  %v4362_v45 = vpop.permute.xlu0 %544  ;;  %v4007_v39 = vmov 1934713408  }
  0xd6   : > { %v4366_v38 = vperm.slane %v1140_v43, %v4346_v33  ;;  %v1199_v43 = vrot.slane %v1156_v27, 4 }
  0xd7   : > { %v1138_v42 = vsel %vm1125_vm0, %v1137_v41, %v311_v18 }
  0xd8   : > { %v4373_v50 = vperm.slane %v1138_v42, %v4346_v33  ;;  %v4377_v52 = vsel %vm1125_vm0, %v4366_v38, %v1187_v5  ;;  %v1178_v5 = vunpack.c.l.s4 %v4007_v39 }
  0xda   : > { %3824 = vset.pattern.permute.xlu2 %v4193_v36  ;;  %498 = vperm.xlu1 %3821, %v487_v32   ;;  %v1176_v53 = vsel %vm1125_vm0, %v4373_v50, %v1175_v46  ;;  %v552_v32 = vperm.slane %v4230_v61, 4  ;;  %v1211_v46 = vrot.slane %v4419_v29, 4  ;;  %v4437_v21 = vunpack.c.0.s8 %v1178_v5 }
  0xdb   : > { %641 = vperm.xlu0 %3857, %v6462_v58  }
  0xdc   : > { %v4406_v16 = vpop.permute.xlu2 %394 }
  0xdd   : > { %v4384_v55 = vpop.permute.xlu0 %609 }
  0xe2   : > { %524 = vperm.xlu2 %3824, %v513_v56   ;;  %3823 = vset.pattern.permute.xlu1 %v4137_v1 }
  0xe3   : > { %706 = vperm.xlu0 %3857, %v6459_v57  }
  0xe4   : > { %v4395_v9 = vpop.permute.xlu1 %355  ;;  %v4428_v42 = vpop.permute.xlu2 %407 }
  0xe5   : > { %v4391_v62 = vpop.permute.xlu0 %674 }
  0xea   : > { %537 = vperm.xlu2 %3824, %v526_v0   ;;  %518 = vperm.xlu1 %3823, %v513_v56   ;;  %v1173_v56 = vrot.slane %v4373_v50, 4 }
  0xeb   : > { %771 = vperm.xlu0 %3857, %v6457_v6  }
  0xec   : > { %v4408_v17 = vpop.permute.xlu1 %368 }
  0xed   : > { %v4399_v11 = vpop.permute.xlu0 %739  ;;  %v1387_v44 = vrot.slane %v4408_v17, 4 }
  0xf2   : > { %3826 = vset.pattern.permute.xlu2 %v4137_v1  ;;  %531 = vperm.xlu1 %3823, %v526_v0  }
  0xf3   : > { %836 = vperm.xlu0 %3857, %v6455_v25  }
  0xf5   : > { %v4410_v18 = vpop.permute.xlu0 %804 }
  0xfa   : > { %557 = vperm.xlu2 %3826, %v552_v32   ;;  %3825 = vset.pattern.permute.xlu1 %v4193_v36 }
  0xfb   : > { %901 = vperm.xlu0 %3857, %v6453_v24  }
  0xfc   : > { %v389_v2 = vpop.permute.xlu1 %388 }
  0xfd   : > { %v1161_v48 = vrot.slane %v389_v2, 4  ;;  %v1164_v40 = vsel %vm1125_vm0, %v389_v2, %v1163_v26  ;;  %v4425_v41 = vpop.permute.xlu0 %869  ;;  %v1184_v26 = vperm.slane %v1176_v53, %v4437_v21 }
  0xfe   : > { %v4433_v8 = vperm.slane %v1164_v40, %v4346_v33 }
  0xff   : > { %v1162_v0 = vsel %vm1125_vm0, %v1161_v48, %v363_v60  ;;  %v1174_v60 = vsel %vm1125_vm0, %v1173_v56, %v4354_v35  ;;  %v6449_v35 = vperm.slane %v4314_v19, 0 }
 0x100   : > { %v1168_v15 = vperm.slane %v1162_v0, %v4346_v33  ;;  %v1212_v39 = vsel %vm1125_vm0, %v4433_v8, %v1211_v46  ;;  %v1180_v40 = vperm.slane %v1174_v60, %v4437_v21  ;;  %v1227_v46 = vrot.slane %v1184_v26, 4 }
 0x102   : > { %v1197_v23 = vrot.slane %v1168_v15, 4  ;;  %570 = vperm.xlu2 %3826, %v565_v3   ;;  %550 = vperm.xlu1 %3825, %v539_v4   ;;  %v1200_v50 = vsel %vm1125_vm0, %v1168_v15, %v1199_v43  ;;  %v1196_v4 = vperm.slane %v4377_v52, %v4437_v21  ;;  %v1220_v43 = vperm.slane %v1212_v39, %v4437_v21 }
 0x103   : > { %966 = vperm.xlu0 %3857, %v6451_v14   ;;  %v1208_v2 = vperm.slane %v1200_v50, %v4437_v21 }
 0x104   : > { %v1198_v3 = vsel %vm1125_vm0, %v1197_v23, %v1156_v27  ;;  %v428_v27 = vpop.permute.xlu2 %427  ;;  %v1235_v15 = vrot.slane %v1196_v4, 4  ;;  %v1233_v60 = vrot.slane %v1220_v43, 4 }
 0x105   : > { %v1204_v5 = vperm.slane %v1198_v3, %v4437_v21  ;;  %v1225_v48 = vrot.slane %v1208_v2, 4  ;;  %v4459_v53 = vpop.permute.xlu0 %934  ;;  %v4468_v23 = vsel %vm1125_vm0, %v1208_v2, %v1227_v46  ;;  %v6447_v3 = vperm.slane %v4314_v19, 5 }
 0x106   : > { %6536 = vst [vmem:[#allocation12_spill] sm:$0xff] %v4468_v23  ;;  %v4472_v50 = vsel %vm1125_vm0, %v1220_v43, %v1235_v15  ;;  %v4478_v39 = vsel %vm1125_vm0, %v1233_v60, %v1196_v4  ;;  %v1223_v43 = vrot.slane %v1180_v40, 4  ;;  %v1237_v14 = vrot.slane %v428_v27, 4 }
 0x107   : > { %v1221_v56 = vrot.slane %v1204_v5, 4  ;;  %v4462_v0 = vsel %vm1125_vm0, %v1225_v48, %v1184_v26  ;;  %6537 = vst [vmem:[#allocation13_spill] sm:$0xff] %v4472_v50  ;;  %v578_v26 = vperm.slane %v4230_v61, 6 }
 0x108   : > { %6538 = vst [vmem:[#allocation14_spill] sm:$0xff] %v4478_v39  ;;  %v1224_v4 = vsel %vm1125_vm0, %v1204_v5, %v1223_v43  ;;  %v1362_v5 = vsel %vm1125_vm0, %v1361_v13, %v4339_v28 }
 0x109   : > { %v4465_v52 = vsel %vm1125_vm0, %v1221_v56, %v1180_v40  ;;  %v402_v56 = vpop.permute.xlu1 %401  ;;  %v1368_v54 = vperm.slane %v1362_v5, %v4346_v33 }
 0x10a   : > { %3828 = vset.pattern.permute.xlu2 %v4193_v36  ;;  %563 = vperm.xlu1 %3825, %v552_v32   ;;  %v591_v32 = vperm.slane %v4230_v61, 7  ;;  %v1239_v40 = vrot.slane %v402_v56, 4 }
 0x10b   : > { %1031 = vperm.xlu0 %3857, %v6449_v35   ;;  %v1385_v35 = vrot.slane %v4406_v16, 4 }
 0x10c   : > { %v441_v2 = vpop.permute.xlu2 %440  ;;  %v1240_v24 = vsel %vm1125_vm0, %v428_v27, %v1239_v40  ;;  %v1251_v27 = vrot.slane %v4334_v20, 4 }
 0x10d   : > { %v4481_v48 = vpop.permute.xlu0 %999  ;;  %v1249_v61 = vrot.slane %v441_v2, 4  ;;  %v1386_v25 = vsel %vm1125_vm0, %v1385_v35, %v4408_v17  ;;  %v1397_v17 = vrot.slane %v1368_v54, 4 }
 0x10e   : > { %v1252_v57 = vsel %vm1125_vm0, %v441_v2, %v1251_v27 }
 0x112   : > { %589 = vperm.xlu2 %3828, %v578_v26   ;;  %3827 = vset.pattern.permute.xlu1 %v4137_v1 }
 0x113   : > { %1096 = vperm.xlu0 %3857, %v6447_v3  }
 0x114   : > { %v4487_v46 = vpop.permute.xlu1 %420  ;;  %v4490_v15 = vpop.permute.xlu2 %459 }
 0x115   : > { %v4493_v60 = vpop.permute.xlu0 %1064 }
 0x11a   : > { %602 = vperm.xlu2 %3828, %v591_v32   ;;  %583 = vperm.xlu1 %3827, %v578_v26   ;;  %v1363_v26 = vrot.slane %v4339_v28, 4 }
 0x11b   : > { %2925 = vrot.lane.b32.xlu0 %v1224_v4, %s4008_s8  ;;  %v1349_v4 = vrot.slane %v4344_v31, 4 }
 0x11c   : > { %v4497_v3 = vpop.permute.xlu1 %433  ;;  %v4499_v7 = vpop.permute.xlu2 %472  ;;  %v1364_v13 = vsel %vm1125_vm0, %v4370_v47, %v1363_v26  ;;  %v4526_v47 = vperm.slane %v1240_v24, %v4346_v33  ;;  %v1375_v26 = vrot.slane %v4395_v9, 4  ;;  %v1388_v24 = vsel %vm1125_vm0, %v4406_v16, %v1387_v44 }
 0x11d   : > { %v4530_v35 = vperm.slane %v1364_v13, %v4346_v33 }
 0x11e   : > { %6539 = vst [vmem:[#allocation15_spill] sm:$0xff] %v4526_v47 }
 0x11f   : > { %6540 = vst [vmem:[#allocation16_spill] sm:$0xff] %v4530_v35 }
 0x122   : > { %3830 = vset.pattern.permute.xlu2 %v4137_v1  ;;  %596 = vperm.xlu1 %3827, %v591_v32   ;;  %v1250_v32 = vsel %vm1125_vm0, %v1249_v61, %v4334_v20  ;;  %v1238_v61 = vsel %vm1125_vm0, %v1237_v14, %v402_v56 }
 0x123   : > { %v4518_v6 = vperm.slane %v1250_v32, %v4346_v33 }
 0x124   : > { %v493_v13 = vpop.permute.xlu2 %492 }
 0x125   : > { %v304_v43 = vpop.permute.xlu0 %303  ;;  %v1285_v14 = vrot.slane %v4518_v6, 4  ;;  %v1273_v2 = vrot.slane %v493_v13, 4 }
 0x126   : > { %v1350_v49 = vsel %vm1125_vm0, %v1349_v4, %v304_v43  ;;  %v1351_v28 = vrot.slane %v304_v43, 4  ;;  %v1392_v43 = vperm.slane %v1386_v25, %v4346_v33  ;;  %v1299_v25 = vrot.slane %v4526_v47, 4 }
 0x127   : > { %v1356_v40 = vperm.slane %v1350_v49, %v4346_v33  ;;  %v4540_v49 = vperm.slane %v1238_v61, %v4346_v33  ;;  %v4554_v61 = vperm.slane %v1388_v24, %v4346_v33 }
 0x128   : > { %v1352_v4 = vsel %vm1125_vm0, %v4344_v31, %v1351_v28  ;;  %v1421_v58 = vrot.slane %v1392_v43, 4 }
 0x129   : > { %v4546_v31 = vperm.slane %v1352_v4, %v4346_v33  ;;  %6542 = vst [vmem:[#allocation18_spill] sm:$0xff] %v4554_v61  ;;  %v1398_v27 = vsel %vm1125_vm0, %v1397_v17, %v1356_v40  ;;  %v4559_v4 = vperm.slane %v1252_v57, %v4346_v33 }
 0x12a   : > { %622 = vperm.xlu2 %3830, %v6460_v63   ;;  %3829 = vset.pattern.permute.xlu1 %v4193_v36  ;;  %v1399_v63 = vrot.slane %v1356_v40, 4 }
 0x12b   : > { %6541 = vst [vmem:[#allocation17_spill] sm:$0xff] %v4546_v31  ;;  %v1411_v24 = vrot.slane %v4546_v31, 4 }
 0x12c   : > { %v454_v5 = vpop.permute.xlu1 %453  ;;  %6543 = vst [vmem:[#allocation19_spill] sm:$0xff] %v4559_v4  ;;  %v1400_v57 = vsel %vm1125_vm0, %v1368_v54, %v1399_v63 }
 0x12d   : > { %v1263_v20 = vrot.slane %v454_v5, 4  ;;  %v382_v32 = vpop.permute.xlu0 %381 }
 0x12e   : > { %v1373_v56 = vrot.slane %v382_v32, 4  ;;  %v1376_v28 = vsel %vm1125_vm0, %v382_v32, %v1375_v26  ;;  %v6545_v26 = vperm.slane %v4247_v12, 0 }
 0x12f   : > { %v1264_v44 = vsel %vm1125_vm0, %v4342_v30, %v1263_v20  ;;  %v1286_v30 = vsel %vm1125_vm0, %v1285_v14, %v4540_v49  ;;  %v1461_v20 = vrot.slane %v4497_v3, 4  ;;  %v4572_v40 = vperm.slane %v1376_v28, %v4346_v33 }
 0x130   : > { %v1374_v16 = vsel %vm1125_vm0, %v1373_v56, %v4395_v9  ;;  %v6544_v9 = vperm.slane %v4247_v12, 2  ;;  %v4569_v32 = vperm.slane %v1264_v44, %v4346_v33  ;;  %v1262_v14 = vsel %vm1125_vm0, %v1261_v37, %v454_v5 }
 0x131   : > { %v1380_v22 = vperm.slane %v1374_v16, %v4346_v33  ;;  %6547 = vst [vmem:[#allocation21_spill] sm:$0xff] %v4572_v40  ;;  %v1300_v16 = vsel %vm1125_vm0, %v4559_v4, %v1299_v25  ;;  %v1462_v54 = vsel %vm1125_vm0, %v1461_v20, %v4428_v42  ;;  %v1408_v5 = vperm.slane %v1400_v57, %v4437_v21 }
 0x132   : > { %635 = vperm.xlu2 %3830, %v6544_v9   ;;  %615 = vperm.xlu1 %3829, %v6545_v26   ;;  %6546 = vst [vmem:[#allocation20_spill] sm:$0xff] %v4569_v32  ;;  %v4580_v9 = vperm.slane %v1398_v27, %v4437_v21  ;;  %v4592_v25 = vperm.slane %v1262_v14, %v4346_v33  ;;  %v1435_v27 = vrot.slane %v4572_v40, 4  ;;  %v1475_v40 = vrot.slane %v4487_v46, 4 }
 0x133   : > { %v1423_v17 = vrot.slane %v1380_v22, 4  ;;  %v1422_v28 = vsel %vm1125_vm0, %v1421_v58, %v1380_v22  ;;  %v4606_v57 = vperm.slane %v1462_v54, %v4346_v33  ;;  %v4609_v14 = vperm.slane %v1300_v16, %v4437_v21 }
 0x134   : > { %v467_v56 = vpop.permute.xlu1 %466  ;;  %6548 = vst [vmem:[#allocation22_spill] sm:$0xff] %v4580_v9  ;;  %v4602_v20 = vperm.slane %v1422_v28, %v4437_v21  ;;  %v1451_v54 = vrot.slane %v1408_v5, 4 }
 0x135   : > { %v1274_v44 = vsel %vm1125_vm0, %v1273_v2, %v467_v56  ;;  %v1275_v26 = vrot.slane %v467_v56, 4  ;;  %v447_v39 = vpop.permute.xlu0 %446  ;;  %v1424_v50 = vsel %vm1125_vm0, %v1392_v43, %v1423_v17  ;;  %v1323_v2 = vrot.slane %v4569_v32, 4  ;;  %6551 = vst [vmem:[#allocation25_spill] sm:$0xff] %v4606_v57 }
 0x136   : > { %v4588_v37 = vperm.slane %v1274_v44, %v4346_v33  ;;  %v1473_v63 = vrot.slane %v447_v39, 4  ;;  %6550 = vst [vmem:[#allocation24_spill] sm:$0xff] %v4602_v20  ;;  %v1432_v17 = vperm.slane %v1424_v50, %v4437_v21  ;;  %v1447_v56 = vrot.slane %v4580_v9, 4  ;;  %v4619_v50 = vpop.permute.xlu2 %505 }
 0x137   : > { %v1276_v22 = vsel %vm1125_vm0, %v493_v13, %v1275_v26  ;;  %6552 = vst [vmem:[#allocation26_spill] sm:$0xff] %v4609_v14  ;;  %v1412_v13 = vsel %vm1125_vm0, %v4530_v35, %v1411_v24  ;;  %v6553_v26 = vperm.slane %v4247_v12, 1  ;;  %v643_v35 = vperm.slane %v4247_v12, 3 }
 0x138   : > { %v4598_v58 = vperm.slane %v1276_v22, %v4346_v33  ;;  %v1309_v43 = vrot.slane %v4588_v37, 4  ;;  %v1474_v44 = vsel %vm1125_vm0, %v1473_v63, %v4487_v46  ;;  %v4626_v22 = vperm.slane %v1286_v30, %v4437_v21 }
 0x139   : > { %v4639_v31 = vsel %vm1125_vm0, %v4602_v20, %v1447_v56  ;;  %v1511_v56 = vrot.slane %v4606_v57, 4  ;;  %v1476_v46 = vsel %vm1125_vm0, %v447_v39, %v1475_v40 }
 0x13a   : > { %6549 = vst [vmem:[#allocation23_spill] sm:$0xff] %v4598_v58  ;;  %3832 = vset.pattern.permute.xlu2 %v4193_v36  ;;  %628 = vperm.xlu1 %3829, %v6553_v26   ;;  %v1310_v28 = vsel %vm1125_vm0, %v1309_v43, %v4592_v25  ;;  %v1324_v16 = vsel %vm1125_vm0, %v4598_v58, %v1323_v2 }
 0x13b   : > { %v4629_v24 = vperm.slane %v1310_v28, %v4437_v21  ;;  %v4632_v63 = vperm.slane %v1324_v16, %v4437_v21  ;;  %v4635_v26 = vsel %vm1125_vm0, %v1432_v17, %v1451_v54  ;;  %6556 = vst [vmem:[#allocation29_spill] sm:$0xff] %v4639_v31  ;;  %v1436_v2 = vsel %vm1125_vm0, %v4554_v61, %v1435_v27 }
 0x13c   : > { %6555 = vst [vmem:[#allocation28_spill] sm:$0xff] %v4635_v26  ;;  %v4644_v43 = vperm.slane %v1474_v44, %v4346_v33  ;;  %v1347_v28 = vrot.slane %v4609_v14, 4  ;;  %v4649_v16 = vperm.slane %v1412_v13, %v4437_v21  ;;  %v1463_v54 = vrot.slane %v4428_v42, 4 }
 0x13d   : > { %6554 = vst [vmem:[#allocation27_spill] sm:$0xff] %v4632_v63  ;;  %v1333_v30 = vrot.slane %v4629_v24, 4  ;;  %v1449_v61 = vrot.slane %v1432_v17, 4  ;;  %v4664_v13 = vperm.slane %v1436_v2, %v4437_v21  ;;  %v1487_v17 = vrot.slane %v4490_v15, 4 }
 0x13e   : > { %6557 = vst [vmem:[#allocation30_spill] sm:$0xff] %v4644_v43  ;;  %v4661_v44 = vsel %vm1125_vm0, %v4632_v63, %v1347_v28  ;;  %v1464_v42 = vsel %vm1125_vm0, %v4497_v3, %v1463_v54  ;;  %v1459_v26 = vrot.slane %v4649_v16, 4  ;;  %v1484_v39 = vperm.slane %v1476_v46, %v4346_v33  ;;  %v4683_v40 = vpop.permute.xlu2 %524 }
 0x13f   : > { %6558 = vst [vmem:[#allocation31_spill] sm:$0xff] %v4649_v16  ;;  %v4657_v27 = vsel %vm1125_vm0, %v1333_v30, %v4626_v22  ;;  %v4670_v31 = vsel %vm1125_vm0, %v1449_v61, %v1408_v5  ;;  %v1512_v30 = vsel %vm1125_vm0, %v4644_v43, %v1511_v56  ;;  %v1472_v3 = vperm.slane %v1464_v42, %v4346_v33 }
 0x140   : > { %6559 = vst [vmem:[#allocation32_spill] sm:$0xff] %v4661_v44  ;;  %v4679_v2 = vsel %vm1125_vm0, %v4664_v13, %v1459_v26  ;;  %v656_v28 = vperm.slane %v4247_v12, 4  ;;  %v1521_v16 = vrot.slane %v1484_v39, 4  ;;  %v1499_v42 = vrot.slane %v4499_v7, 4 }
 0x141   : > { %6560 = vst [vmem:[#allocation33_spill] sm:$0xff] %v4664_v13  ;;  %v1523_v56 = vrot.slane %v1472_v3, 4 }
 0x142   : > { %6561 = vst [vmem:[#allocation34_spill] sm:$0xff] %v4670_v31  ;;  %654 = vperm.xlu2 %3832, %v643_v35   ;;  %3831 = vset.pattern.permute.xlu1 %v4137_v1  ;;  %v1522_v44 = vsel %vm1125_vm0, %v1521_v16, %v1472_v3 }
 0x143   : > { %6562 = vst [vmem:[#allocation35_spill] sm:$0xff] %v4679_v2  ;;  %v1524_v26 = vsel %vm1125_vm0, %v1484_v39, %v1523_v56 }
 0x144   : > { %v486_v61 = vpop.permute.xlu1 %485  ;;  %v1532_v57 = vperm.slane %v1524_v26, %v4437_v21 }
 0x145   : > { %v1485_v5 = vrot.slane %v486_v61, 4  ;;  %v1488_v54 = vsel %vm1125_vm0, %v486_v61, %v1487_v17 }
 0x146   : > { %v1496_v2 = vperm.slane %v1488_v54, %v4346_v33  ;;  %v4702_v54 = vperm.slane %v1522_v44, %v4437_v21 }
 0x147   : > { %v1486_v31 = vsel %vm1125_vm0, %v1485_v5, %v4490_v15  ;;  %v538_v5 = vpop.permute.xlu2 %537 }
 0x148   : > { %v4693_v46 = vperm.slane %v1486_v31, %v4346_v33  ;;  %v1547_v15 = vrot.slane %v1496_v2, 4  ;;  %6564 = vst [vmem:[#allocation37_spill] sm:$0xff] %v4702_v54  ;;  %v1520_v31 = vperm.slane %v1512_v30, %v4437_v21 }
 0x14a   : > { %667 = vperm.xlu2 %3832, %v656_v28   ;;  %648 = vperm.xlu1 %3831, %v643_v35   ;;  %6563 = vst [vmem:[#allocation36_spill] sm:$0xff] %v4693_v46  ;;  %v1535_v56 = vrot.slane %v4693_v46, 4 }
 0x14c   : > { %v499_v13 = vpop.permute.xlu1 %498 }
 0x14d   : > { %v1497_v17 = vrot.slane %v499_v13, 4  ;;  %v1500_v61 = vsel %vm1125_vm0, %v499_v13, %v1499_v42  ;;  %v1571_v42 = vrot.slane %v1532_v57, 4 }
 0x14e   : > { %v1508_v39 = vperm.slane %v1500_v61, %v4346_v33 }
 0x14f   : > { %v1498_v35 = vsel %vm1125_vm0, %v1497_v17, %v4499_v7 }
 0x150   : > { %v4707_v16 = vperm.slane %v1498_v35, %v4346_v33  ;;  %v1545_v13 = vrot.slane %v1508_v39, 4  ;;  %v1548_v3 = vsel %vm1125_vm0, %v1508_v39, %v1547_v15  ;;  %v1563_v39 = vrot.slane %v1520_v31, 4 }
 0x151   : > { %v1556_v26 = vperm.slane %v1548_v3, %v4437_v21  ;;  %v1567_v35 = vrot.slane %v4702_v54, 4 }
 0x152   : > { %6565 = vst [vmem:[#allocation38_spill] sm:$0xff] %v4707_v16  ;;  %3834 = vset.pattern.permute.xlu2 %v4137_v1  ;;  %661 = vperm.xlu1 %3831, %v656_v28   ;;  %v1546_v7 = vsel %vm1125_vm0, %v1545_v13, %v1496_v2  ;;  %v1536_v44 = vsel %vm1125_vm0, %v4707_v16, %v1535_v56  ;;  %v682_v28 = vperm.slane %v4247_v12, 6 }
 0x153   : > { %v4716_v30 = vperm.slane %v1546_v7, %v4437_v21  ;;  %v1544_v17 = vperm.slane %v1536_v44, %v4437_v21  ;;  %v4720_v61 = vsel %vm1125_vm0, %v1556_v26, %v1571_v42  ;;  %v1569_v15 = vrot.slane %v1556_v26, 4 }
 0x154   : > { %6567 = vst [vmem:[#allocation40_spill] sm:$0xff] %v4720_v61  ;;  %v4737_v26 = vpop.permute.xlu2 %557  ;;  %v6572_v44 = vperm.slane %v4247_v12, 7 }
 0x155   : > { %6566 = vst [vmem:[#allocation39_spill] sm:$0xff] %v4716_v30  ;;  %v1561_v3 = vrot.slane %v1544_v17, 4  ;;  %v4725_v2 = vsel %vm1125_vm0, %v1544_v17, %v1563_v39  ;;  %v4729_v56 = vsel %vm1125_vm0, %v4716_v30, %v1567_v35  ;;  %v4732_v13 = vsel %vm1125_vm0, %v1569_v15, %v1532_v57 }
 0x156   : > { %6568 = vst [vmem:[#allocation41_spill] sm:$0xff] %v4725_v2  ;;  %v6573_v17 = vperm.slane %v4247_v12, 5  ;;  %v1585_v57 = vrot.slane %v4362_v45, 4  ;;  %v1797_v2 = vrot.slane %v538_v5, 4 }
 0x157   : > { %6569 = vst [vmem:[#allocation42_spill] sm:$0xff] %v4729_v56  ;;  %v4735_v42 = vsel %vm1125_vm0, %v1561_v3, %v1520_v31 }
 0x158   : > { %6570 = vst [vmem:[#allocation43_spill] sm:$0xff] %v4732_v13 }
 0x159   : > { %6571 = vst [vmem:[#allocation44_spill] sm:$0xff] %v4735_v42  ;;  %v1811_v42 = vrot.slane %v4683_v40, 4 }
 0x15a   : > { %687 = vperm.xlu2 %3834, %v682_v28   ;;  %3833 = vset.pattern.permute.xlu1 %v4193_v36 }
 0x15c   : > { %v4740_v7 = vpop.permute.xlu1 %518  ;;  %v4746_v39 = vpop.permute.xlu2 %570 }
 0x15d   : > { %v1586_v35 = vsel %vm1125_vm0, %v1585_v57, %v4740_v7 }
 0x162   : > { %700 = vperm.xlu2 %3834, %v6572_v44   ;;  %680 = vperm.xlu1 %3833, %v6573_v17   ;;  %v512_v44 = vpop.permute.xlu0 %511  ;;  %v4760_v17 = vperm.slane %v1586_v35, %v4346_v33 }
 0x163   : > { %v1799_v12 = vrot.slane %v512_v44, 4  ;;  %v1798_v35 = vsel %vm1125_vm0, %v1797_v2, %v512_v44  ;;  %v721_v2 = vperm.slane %v4280_v10, 1 }
 0x164   : > { %v4749_v15 = vpop.permute.xlu1 %531 }
 0x165   : > { %v1573_v31 = vrot.slane %v4749_v15, 4 }
 0x167   : > { %v1574_v3 = vsel %vm1125_vm0, %v1573_v31, %v4619_v50  ;;  %v1800_v31 = vsel %vm1125_vm0, %v538_v5, %v1799_v12 }
 0x168   : > { %v4757_v13 = vperm.slane %v1574_v3, %v4346_v33  ;;  %v708_v3 = vperm.slane %v4280_v10, 0  ;;  %v4773_v54 = vperm.slane %v1800_v31, %v4346_v33 }
 0x16a   : > { %v1623_v56 = vrot.slane %v4757_v13, 4  ;;  %3836 = vset.pattern.permute.xlu2 %v4193_v36  ;;  %693 = vperm.xlu1 %3833, %v682_v28   ;;  %6574 = vst [vmem:[#allocation45_spill] sm:$0xff] %v4773_v54  ;;  %v4777_v28 = vperm.slane %v1798_v35, %v4346_v33  ;;  %v1859_v30 = vrot.slane %v4773_v54, 4 }
 0x16c   : > { %v590_v61 = vpop.permute.xlu2 %589  ;;  %v4766_v57 = vsel %vm1125_vm0, %v4760_v17, %v1623_v56  ;;  %6575 = vst [vmem:[#allocation46_spill] sm:$0xff] %v4777_v28  ;;  %v1847_v31 = vrot.slane %v4777_v28, 4 }
 0x16d   : > { %v1821_v43 = vrot.slane %v590_v61, 4 }
 0x172   : > { %719 = vperm.xlu2 %3836, %v708_v3   ;;  %3835 = vset.pattern.permute.xlu1 %v4137_v1 }
 0x174   : > { %v551_v56 = vpop.permute.xlu1 %550  ;;  %v603_v16 = vpop.permute.xlu2 %602 }
 0x175   : > { %v1809_v46 = vrot.slane %v551_v56, 4  ;;  %v1812_v5 = vsel %vm1125_vm0, %v551_v56, %v1811_v42  ;;  %v1833_v9 = vrot.slane %v603_v16, 4  ;;  %v577_v42 = vpop.permute.xlu0 %576 }
 0x176   : > { %v4782_v12 = vperm.slane %v1812_v5, %v4346_v33  ;;  %v1835_v56 = vrot.slane %v577_v42, 4 }
 0x177   : > { %v1810_v44 = vsel %vm1125_vm0, %v1809_v46, %v4683_v40  ;;  %v1834_v20 = vsel %vm1125_vm0, %v1833_v9, %v577_v42 }
 0x178   : > { %6576 = vst [vmem:[#allocation47_spill] sm:$0xff] %v4782_v12  ;;  %v4789_v35 = vperm.slane %v1810_v44, %v4346_v33  ;;  %v1860_v54 = vsel %vm1125_vm0, %v4782_v12, %v1859_v30  ;;  %v1836_v28 = vsel %vm1125_vm0, %v603_v16, %v1835_v56  ;;  %v4803_v12 = vperm.slane %v1834_v20, %v4346_v33 }
 0x179   : > { %v1868_v16 = vperm.slane %v1860_v54, %v4437_v21  ;;  %v1587_v54 = vrot.slane %v4740_v7, 4  ;;  %v1599_v7 = vrot.slane %v4737_v26, 4 }
 0x17a   : > { %6577 = vst [vmem:[#allocation48_spill] sm:$0xff] %v4789_v35  ;;  %732 = vperm.xlu2 %3836, %v721_v2   ;;  %713 = vperm.xlu1 %3835, %v708_v3   ;;  %v1848_v46 = vsel %vm1125_vm0, %v4789_v35, %v1847_v31  ;;  %v4813_v31 = vperm.slane %v1836_v28, %v4346_v33  ;;  %v1575_v28 = vrot.slane %v4619_v50, 4 }
 0x17b   : > { %6579 = vst [vmem:[#allocation50_spill] sm:$0xff] %v4803_v12 }
 0x17c   : > { %v564_v5 = vpop.permute.xlu1 %563  ;;  %6582 = vst [vmem:[#allocation53_spill] sm:$0xff] %v4813_v31 }
 0x17d   : > { %v1822_v14 = vsel %vm1125_vm0, %v1821_v43, %v564_v5  ;;  %v1823_v40 = vrot.slane %v564_v5, 4  ;;  %v4810_v43 = vperm.slane %v1848_v46, %v4437_v21  ;;  %v747_v5 = vperm.slane %v4280_v10, 3 }
 0x17e   : > { %v4798_v44 = vperm.slane %v1822_v14, %v4346_v33  ;;  %v1907_v46 = vrot.slane %v1868_v16, 4 }
 0x17f   : > { %v1824_v30 = vsel %vm1125_vm0, %v590_v61, %v1823_v40  ;;  %6581 = vst [vmem:[#allocation52_spill] sm:$0xff] %v4810_v43  ;;  %v1899_v42 = vrot.slane %v4810_v43, 4 }
 0x180   : > { %6578 = vst [vmem:[#allocation49_spill] sm:$0xff] %v4798_v44  ;;  %v4806_v3 = vperm.slane %v1824_v30, %v4346_v33  ;;  %v1871_v9 = vrot.slane %v4798_v44, 4  ;;  %v1576_v30 = vsel %vm1125_vm0, %v4749_v15, %v1575_v28 }
 0x181   : > { %v1584_v50 = vperm.slane %v1576_v30, %v4346_v33 }
 0x182   : > { %6580 = vst [vmem:[#allocation51_spill] sm:$0xff] %v4806_v3  ;;  %v1883_v14 = vrot.slane %v4806_v3, 4  ;;  %3838 = vset.pattern.permute.xlu2 %v4137_v1  ;;  %726 = vperm.xlu1 %3835, %v721_v2   ;;  %v1872_v20 = vsel %vm1125_vm0, %v4803_v12, %v1871_v9 }
 0x183   : > { %v4821_v61 = vperm.slane %v1872_v20, %v4437_v21 }
 0x184   : > { %v1884_v56 = vsel %vm1125_vm0, %v4813_v31, %v1883_v14 }
 0x185   : > { %6583 = vst [vmem:[#allocation54_spill] sm:$0xff] %v4821_v61  ;;  %v4830_v2 = vsel %vm1125_vm0, %v4821_v61, %v1899_v42  ;;  %v1892_v40 = vperm.slane %v1884_v56, %v4437_v21  ;;  %v1588_v42 = vsel %vm1125_vm0, %v4362_v45, %v1587_v54  ;;  %v6588_v45 = vperm.slane %v4280_v10, 2 }
 0x186   : > { %6584 = vst [vmem:[#allocation55_spill] sm:$0xff] %v4830_v2  ;;  %v4847_v2 = vpop.permute.xlu2 %622  ;;  %v1596_v28 = vperm.slane %v1588_v42, %v4346_v33 }
 0x187   : > { %v1905_v9 = vrot.slane %v1892_v40, 4  ;;  %v4837_v20 = vsel %vm1125_vm0, %v1892_v40, %v1907_v46  ;;  %v1635_v40 = vrot.slane %v1584_v50, 4 }
 0x188   : > { %6585 = vst [vmem:[#allocation56_spill] sm:$0xff] %v4837_v20  ;;  %v1633_v20 = vrot.slane %v1596_v28, 4 }
 0x189   : > { %v4842_v14 = vsel %vm1125_vm0, %v1905_v9, %v1868_v16  ;;  %v6587_v9 = vperm.slane %v4280_v10, 4  ;;  %v1636_v54 = vsel %vm1125_vm0, %v1596_v28, %v1635_v40 }
 0x18a   : > { %752 = vperm.xlu2 %3838, %v747_v5   ;;  %3837 = vset.pattern.permute.xlu1 %v4193_v36  ;;  %6586 = vst [vmem:[#allocation57_spill] sm:$0xff] %v4842_v14  ;;  %v1611_v14 = vrot.slane %v4746_v39, 4 }
 0x18c   : > { %v584_v56 = vpop.permute.xlu1 %583 }
 0x18d   : > { %v1597_v15 = vrot.slane %v584_v56, 4  ;;  %v1600_v46 = vsel %vm1125_vm0, %v584_v56, %v1599_v7  ;;  %v1634_v7 = vsel %vm1125_vm0, %v1633_v20, %v1584_v50 }
 0x18e   : > { %v1608_v16 = vperm.slane %v1600_v46, %v4346_v33  ;;  %v636_v31 = vpop.permute.xlu2 %635  ;;  %v4870_v40 = vperm.slane %v1634_v7, %v4437_v21 }
 0x18f   : > { %v1598_v30 = vsel %vm1125_vm0, %v1597_v15, %v4737_v26  ;;  %v1644_v15 = vperm.slane %v1636_v54, %v4437_v21 }
 0x190   : > { %v1604_v42 = vperm.slane %v1598_v30, %v4346_v33  ;;  %v1659_v46 = vrot.slane %v1608_v16, 4 }
 0x192   : > { %765 = vperm.xlu2 %3838, %v6587_v9   ;;  %745 = vperm.xlu1 %3837, %v6588_v45   ;;  %v1632_v45 = vperm.slane %v4766_v57, %v4437_v21  ;;  %v1647_v30 = vrot.slane %v1604_v42, 4 }
 0x194   : > { %v597_v3 = vpop.permute.xlu1 %596  ;;  %v1675_v7 = vrot.slane %v1632_v45, 4 }
 0x195   : > { %v1609_v56 = vrot.slane %v597_v3, 4  ;;  %v1612_v26 = vsel %vm1125_vm0, %v597_v3, %v1611_v14  ;;  %v1621_v14 = vrot.slane %v4760_v17, 4 }
 0x196   : > { %v1620_v9 = vperm.slane %v1612_v26, %v4346_v33  ;;  %v1683_v26 = vrot.slane %v1644_v15, 4 }
 0x197   : > { %v1610_v28 = vsel %vm1125_vm0, %v1609_v56, %v4746_v39 }
 0x198   : > { %v1616_v20 = vperm.slane %v1610_v28, %v4346_v33  ;;  %v1657_v50 = vrot.slane %v1620_v9, 4  ;;  %v1660_v3 = vsel %vm1125_vm0, %v1620_v9, %v1659_v46  ;;  %v1622_v9 = vsel %vm1125_vm0, %v1621_v14, %v4757_v13 }
 0x199   : > { %v1668_v54 = vperm.slane %v1660_v3, %v4437_v21  ;;  %v4905_v13 = vperm.slane %v1622_v9, %v4437_v21 }
 0x19a   : > { %v1645_v43 = vrot.slane %v1616_v20, 4  ;;  %3840 = vset.pattern.permute.xlu2 %v4193_v36  ;;  %758 = vperm.xlu1 %3837, %v747_v5   ;;  %v1658_v39 = vsel %vm1125_vm0, %v1657_v50, %v1608_v16  ;;  %v1648_v57 = vsel %vm1125_vm0, %v1616_v20, %v1647_v30  ;;  %v1679_v5 = vrot.slane %v4870_v40, 4 }
 0x19b   : > { %v4880_v56 = vperm.slane %v1658_v39, %v4437_v21  ;;  %v1656_v28 = vperm.slane %v1648_v57, %v4437_v21  ;;  %v4884_v46 = vsel %vm1125_vm0, %v1668_v54, %v1683_v26  ;;  %v1681_v17 = vrot.slane %v1668_v54, 4 }
 0x19c   : > { %6589 = vst [vmem:[#allocation58_spill] sm:$0xff] %v4884_v46  ;;  %v1646_v3 = vsel %vm1125_vm0, %v1645_v43, %v1604_v42  ;;  %v773_v20 = vperm.slane %v4280_v10, 5  ;;  %v4908_v42 = vpop.permute.xlu2 %654 }
 0x19d   : > { %v4891_v16 = vperm.slane %v1646_v3, %v4437_v21  ;;  %v4894_v30 = vsel %vm1125_vm0, %v1656_v28, %v1675_v7  ;;  %v1673_v50 = vrot.slane %v1656_v28, 4  ;;  %v4898_v26 = vsel %vm1125_vm0, %v1681_v17, %v1644_v15 }
 0x19e   : > { %6590 = vst [vmem:[#allocation59_spill] sm:$0xff] %v4898_v26  ;;  %v4902_v54 = vsel %vm1125_vm0, %v4880_v56, %v1679_v5  ;;  %v786_v15 = vperm.slane %v4280_v10, 6  ;;  %v1687_v28 = vrot.slane %v4384_v55, 4  ;;  %v812_v5 = vperm.slane %v4293_v51, 0 }
 0x19f   : > { %6591 = vst [vmem:[#allocation60_spill] sm:$0xff] %v4902_v54  ;;  %v1669_v43 = vrot.slane %v4891_v16, 4  ;;  %v4911_v14 = vsel %vm1125_vm0, %v1673_v50, %v1632_v45  ;;  %v1685_v45 = vrot.slane %v636_v31, 4 }
 0x1a0   : > { %v1688_v3 = vsel %vm1125_vm0, %v636_v31, %v1687_v28 }
 0x1a1   : > { %v4915_v39 = vsel %vm1125_vm0, %v1669_v43, %v4905_v13  ;;  %v1686_v50 = vsel %vm1125_vm0, %v1685_v45, %v4384_v55  ;;  %v1699_v43 = vrot.slane %v4847_v2, 4 }
 0x1a2   : > { %784 = vperm.xlu2 %3840, %v773_v20   ;;  %3839 = vset.pattern.permute.xlu1 %v4137_v1  ;;  %v1692_v61 = vperm.slane %v1686_v50, %v4346_v33 }
 0x1a4   : > { %v4919_v57 = vpop.permute.xlu1 %615  ;;  %v4921_v7 = vpop.permute.xlu2 %667  ;;  %v1735_v54 = vrot.slane %v1692_v61, 4 }
 0x1aa   : > { %797 = vperm.xlu2 %3840, %v786_v15   ;;  %778 = vperm.xlu1 %3839, %v773_v20   ;;  %v4932_v20 = vperm.slane %v1688_v3, %v4346_v33 }
 0x1ac   : > { %v4925_v17 = vpop.permute.xlu1 %628  ;;  %6592 = vst [vmem:[#allocation61_spill] sm:$0xff] %v4932_v20 }
 0x1b2   : > { %3842 = vset.pattern.permute.xlu2 %v4137_v1  ;;  %791 = vperm.xlu1 %3839, %v786_v15   ;;  %v1747_v15 = vrot.slane %v4932_v20, 4 }
 0x1b4   : > { %v688_v9 = vpop.permute.xlu2 %687 }
 0x1b5   : > { %v1709_v63 = vrot.slane %v688_v9, 4 }
 0x1ba   : > { %817 = vperm.xlu2 %3842, %v812_v5   ;;  %3841 = vset.pattern.permute.xlu1 %v4193_v36 }
 0x1bc   : > { %v649_v44 = vpop.permute.xlu1 %648  ;;  %v701_v35 = vpop.permute.xlu2 %700 }
 0x1bd   : > { %v1697_v31 = vrot.slane %v649_v44, 4  ;;  %v1700_v28 = vsel %vm1125_vm0, %v649_v44, %v1699_v43  ;;  %v1721_v12 = vrot.slane %v701_v35, 4  ;;  %v6594_v43 = vperm.slane %v4293_v51, 1 }
 0x1be   : > { %v4940_v55 = vperm.slane %v1700_v28, %v4346_v33  ;;  %v6595_v28 = vperm.slane %v4280_v10, 7 }
 0x1bf   : > { %v1698_v45 = vsel %vm1125_vm0, %v1697_v31, %v4847_v2  ;;  %v1722_v3 = vsel %vm1125_vm0, %v1721_v12, %v4391_v62  ;;  %v1723_v31 = vrot.slane %v4391_v62, 4 }
 0x1c0   : > { %6593 = vst [vmem:[#allocation62_spill] sm:$0xff] %v4940_v55  ;;  %v1704_v50 = vperm.slane %v1698_v45, %v4346_v33  ;;  %v1748_v26 = vsel %vm1125_vm0, %v4940_v55, %v1747_v15  ;;  %v1728_v46 = vperm.slane %v1722_v3, %v4346_v33 }
 0x1c2   : > { %v1733_v44 = vrot.slane %v1704_v50, 4  ;;  %830 = vperm.xlu2 %3842, %v6594_v43   ;;  %810 = vperm.xlu1 %3841, %v6595_v28   ;;  %v1736_v2 = vsel %vm1125_vm0, %v1704_v50, %v1735_v54  ;;  %v1757_v12 = vrot.slane %v1728_v46, 4  ;;  %v1724_v43 = vsel %vm1125_vm0, %v701_v35, %v1723_v31 }
 0x1c3   : > { %v1744_v50 = vperm.slane %v1736_v2, %v4437_v21  ;;  %v1756_v35 = vperm.slane %v1748_v26, %v4437_v21 }
 0x1c4   : > { %v662_v47 = vpop.permute.xlu1 %661  ;;  %v1734_v45 = vsel %vm1125_vm0, %v1733_v44, %v1692_v61  ;;  %v4969_v44 = vperm.slane %v1724_v43, %v4346_v33 }
 0x1c5   : > { %v1710_v15 = vsel %vm1125_vm0, %v1709_v63, %v662_v47  ;;  %v1711_v32 = vrot.slane %v662_v47, 4  ;;  %v1740_v3 = vperm.slane %v1734_v45, %v4437_v21  ;;  %v642_v47 = vpop.permute.xlu0 %641  ;;  %v1787_v31 = vrot.slane %v1744_v50, 4 }
 0x1c6   : > { %v1716_v4 = vperm.slane %v1710_v15, %v4346_v33  ;;  %6597 = vst [vmem:[#allocation64_spill] sm:$0xff] %v4969_v44  ;;  %v1921_v15 = vrot.slane %v4908_v42, 4 }
 0x1c7   : > { %v1712_v10 = vsel %vm1125_vm0, %v688_v9, %v1711_v32  ;;  %v1783_v63 = vrot.slane %v1740_v3, 4 }
 0x1c8   : > { %v4963_v28 = vperm.slane %v1712_v10, %v4346_v33  ;;  %v1759_v54 = vrot.slane %v1716_v4, 4  ;;  %v1758_v62 = vsel %vm1125_vm0, %v1757_v12, %v1716_v4 }
 0x1c9   : > { %v1764_v61 = vperm.slane %v1758_v62, %v4437_v21  ;;  %v1911_v62 = vrot.slane %v4919_v57, 4 }
 0x1ca   : > { %6596 = vst [vmem:[#allocation63_spill] sm:$0xff] %v4963_v28  ;;  %v1771_v45 = vrot.slane %v4963_v28, 4  ;;  %3844 = vset.pattern.permute.xlu2 %v4193_v36  ;;  %823 = vperm.xlu1 %3841, %v812_v5   ;;  %v1760_v32 = vsel %vm1125_vm0, %v1728_v46, %v1759_v54  ;;  %v838_v46 = vperm.slane %v4293_v51, 2  ;;  %v1795_v54 = vrot.slane %v1756_v35, 4 }
 0x1cb   : > { %v1784_v4 = vsel %vm1125_vm0, %v1764_v61, %v1783_v63  ;;  %v1781_v9 = vrot.slane %v1764_v61, 4  ;;  %v1768_v2 = vperm.slane %v1760_v32, %v4437_v21  ;;  %v1922_v32 = vsel %vm1125_vm0, %v1921_v15, %v4925_v17 }
 0x1cc   : > { %2931 = vrot.lane.b32.xlu0 %v1784_v4, %s4008_s8  ;;  %v1772_v12 = vsel %vm1125_vm0, %v4969_v44, %v1771_v45  ;;  %v1923_v4 = vrot.slane %v4925_v17, 4 }
 0x1cd   : > { %v4982_v43 = vsel %vm1125_vm0, %v1781_v9, %v1740_v3  ;;  %v1785_v5 = vrot.slane %v1768_v2, 4  ;;  %v4986_v26 = vsel %vm1125_vm0, %v1768_v2, %v1787_v31  ;;  %v1780_v10 = vperm.slane %v1772_v12, %v4437_v21 }
 0x1ce   : > { %6598 = vst [vmem:[#allocation65_spill] sm:$0xff] %v4986_v26  ;;  %v1909_v3 = vrot.slane %v642_v47, 4  ;;  %v1912_v2 = vsel %vm1125_vm0, %v642_v47, %v1911_v62  ;;  %v1928_v31 = vperm.slane %v1922_v32, %v4346_v33  ;;  %v1924_v15 = vsel %vm1125_vm0, %v4908_v42, %v1923_v4 }
 0x1cf   : > { %v4991_v61 = vsel %vm1125_vm0, %v1785_v5, %v1744_v50  ;;  %v4994_v63 = vsel %vm1125_vm0, %v1780_v10, %v1795_v54  ;;  %v1793_v45 = vrot.slane %v1780_v10, 4  ;;  %v707_v50 = vpop.permute.xlu0 %706  ;;  %v5010_v17 = vperm.slane %v1912_v2, %v4346_v33 }
 0x1d0   : > { %6599 = vst [vmem:[#allocation66_spill] sm:$0xff] %v4994_v63  ;;  %v1945_v5 = vrot.slane %v707_v50, 4  ;;  %v1910_v10 = vsel %vm1125_vm0, %v1909_v3, %v4919_v57  ;;  %v851_v54 = vperm.slane %v4293_v51, 3  ;;  %v5015_v47 = vperm.slane %v1924_v15, %v4346_v33 }
 0x1d1   : > { %v5001_v9 = vsel %vm1125_vm0, %v1793_v45, %v1756_v35  ;;  %6601 = vst [vmem:[#allocation68_spill] sm:$0xff] %v5010_v17  ;;  %v1916_v35 = vperm.slane %v1910_v10, %v4346_v33  ;;  %v1957_v62 = vrot.slane %v1928_v31, 4  ;;  %v1935_v42 = vrot.slane %v4921_v7, 4 }
 0x1d2   : > { %849 = vperm.xlu2 %3844, %v838_v46   ;;  %3843 = vset.pattern.permute.xlu1 %v4137_v1  ;;  %6600 = vst [vmem:[#allocation67_spill] sm:$0xff] %v5001_v9  ;;  %v1971_v9 = vrot.slane %v5010_v17, 4 }
 0x1d3   : > { %6602 = vst [vmem:[#allocation69_spill] sm:$0xff] %v5015_v47  ;;  %v1959_v57 = vrot.slane %v1916_v35, 4  ;;  %v1958_v2 = vsel %vm1125_vm0, %v1957_v62, %v1916_v35 }
 0x1d4   : > { %v681_v12 = vpop.permute.xlu1 %680  ;;  %v1972_v10 = vsel %vm1125_vm0, %v5015_v47, %v1971_v9 }
 0x1d5   : > { %v1946_v45 = vsel %vm1125_vm0, %v1945_v5, %v681_v12  ;;  %v1947_v32 = vrot.slane %v681_v12, 4  ;;  %v1960_v5 = vsel %vm1125_vm0, %v1928_v31, %v1959_v57  ;;  %v5036_v35 = vperm.slane %v1972_v10, %v4437_v21 }
 0x1d6   : > { %v1952_v3 = vperm.slane %v1946_v45, %v4346_v33  ;;  %v5033_v45 = vperm.slane %v1958_v2, %v4437_v21 }
 0x1d7   : > { %v1948_v15 = vsel %vm1125_vm0, %v707_v50, %v1947_v32  ;;  %6605 = vst [vmem:[#allocation72_spill] sm:$0xff] %v5036_v35  ;;  %v1968_v32 = vperm.slane %v1960_v5, %v4437_v21  ;;  %v2019_v10 = vrot.slane %v5036_v35, 4  ;;  %v5062_v5 = vpop.permute.xlu2 %719 }
 0x1d8   : > { %6604 = vst [vmem:[#allocation71_spill] sm:$0xff] %v5033_v45  ;;  %v5039_v9 = vperm.slane %v1948_v15, %v4346_v33  ;;  %v1981_v50 = vrot.slane %v1952_v3, 4 }
 0x1da   : > { %862 = vperm.xlu2 %3844, %v851_v54   ;;  %843 = vperm.xlu1 %3843, %v838_v46   ;;  %6606 = vst [vmem:[#allocation73_spill] sm:$0xff] %v5039_v9 }
 0x1dc   : > { %v694_v4 = vpop.permute.xlu1 %693 }
 0x1dd   : > { %v1933_v63 = vrot.slane %v694_v4, 4  ;;  %v1936_v12 = vsel %vm1125_vm0, %v694_v4, %v1935_v42  ;;  %v2007_v4 = vrot.slane %v5033_v45, 4  ;;  %v2021_v45 = vrot.slane %v4399_v11, 4 }
 0x1de   : > { %v5028_v46 = vperm.slane %v1936_v12, %v4346_v33 }
 0x1df   : > { %v1934_v17 = vsel %vm1125_vm0, %v1933_v63, %v4921_v7 }
 0x1e0   : > { %6603 = vst [vmem:[#allocation70_spill] sm:$0xff] %v5028_v46  ;;  %v1940_v62 = vperm.slane %v1934_v17, %v4346_v33  ;;  %v1995_v31 = vrot.slane %v5028_v46, 4 }
 0x1e2   : > { %v1983_v42 = vrot.slane %v1940_v62, 4  ;;  %3846 = vset.pattern.permute.xlu2 %v4137_v1  ;;  %856 = vperm.xlu1 %3843, %v851_v54   ;;  %v1982_v7 = vsel %vm1125_vm0, %v1981_v50, %v1940_v62  ;;  %v1996_v63 = vsel %vm1125_vm0, %v5039_v9, %v1995_v31  ;;  %v2011_v54 = vrot.slane %v1968_v32, 4 }
 0x1e3   : > { %v5049_v57 = vperm.slane %v1982_v7, %v4437_v21  ;;  %v5053_v17 = vperm.slane %v1996_v63, %v4437_v21  ;;  %v877_v50 = vperm.slane %v4293_v51, 5  ;;  %v5076_v7 = vpop.permute.xlu2 %732 }
 0x1e4   : > { %v1984_v2 = vsel %vm1125_vm0, %v1952_v3, %v1983_v42 }
 0x1e5   : > { %6607 = vst [vmem:[#allocation74_spill] sm:$0xff] %v5049_v57  ;;  %v1992_v15 = vperm.slane %v1984_v2, %v4437_v21  ;;  %v5060_v12 = vsel %vm1125_vm0, %v5049_v57, %v2007_v4  ;;  %v5067_v62 = vsel %vm1125_vm0, %v5053_v17, %v2019_v10  ;;  %v6613_v4 = vperm.slane %v4293_v51, 6 }
 0x1e6   : > { %6608 = vst [vmem:[#allocation75_spill] sm:$0xff] %v5053_v17  ;;  %v6614_v2 = vperm.slane %v4293_v51, 4 }
 0x1e7   : > { %6609 = vst [vmem:[#allocation76_spill] sm:$0xff] %v5060_v12  ;;  %v5070_v31 = vsel %vm1125_vm0, %v1992_v15, %v2011_v54  ;;  %v2009_v3 = vrot.slane %v1992_v15, 4 }
 0x1e8   : > { %6610 = vst [vmem:[#allocation77_spill] sm:$0xff] %v5067_v62 }
 0x1e9   : > { %6611 = vst [vmem:[#allocation78_spill] sm:$0xff] %v5070_v31  ;;  %v5073_v42 = vsel %vm1125_vm0, %v2009_v3, %v1968_v32  ;;  %v903_v32 = vperm.slane %v4293_v51, 7 }
 0x1ea   : > { %6612 = vst [vmem:[#allocation79_spill] sm:$0xff] %v5073_v42  ;;  %882 = vperm.xlu2 %3846, %v877_v50   ;;  %3845 = vset.pattern.permute.xlu1 %v4193_v36 }
 0x1eb   : > { %v753_v10 = vpop.permute.xlu2 %752 }
 0x1ec   : > { %v714_v63 = vpop.permute.xlu1 %713 }
 0x1ed   : > { %v2023_v42 = vrot.slane %v714_v63, 4 }
 0x1f2   : > { %895 = vperm.xlu2 %3846, %v6613_v4   ;;  %875 = vperm.xlu1 %3845, %v6614_v2   ;;  %v916_v4 = vperm.slane %v4301_v59, 0 }
 0x1f3   : > { %v766_v54 = vpop.permute.xlu2 %765 }
 0x1f4   : > { %v727_v15 = vpop.permute.xlu1 %726 }
 0x1f5   : > { %v2035_v12 = vrot.slane %v727_v15, 4 }
 0x1fa   : > { %3848 = vset.pattern.permute.xlu2 %v4193_v36  ;;  %888 = vperm.xlu1 %3845, %v877_v50  }
 0x1fc   : > { %v5096_v51 = vpop.permute.xlu2 %784 }
 0x202   : > { %914 = vperm.xlu2 %3848, %v903_v32   ;;  %3847 = vset.pattern.permute.xlu1 %v4137_v1 }
 0x204   : > { %v5085_v3 = vpop.permute.xlu1 %745 }
 0x205   : > { %v2245_v62 = vrot.slane %v5085_v3, 4 }
 0x207   : > { %v2246_v2 = vsel %vm1125_vm0, %v2245_v62, %v5062_v5 }
 0x208   : > { %v5092_v50 = vperm.slane %v2246_v2, %v4346_v33  ;;  %v942_v2 = vperm.slane %v4301_v59, 2 }
 0x20a   : > { %927 = vperm.xlu2 %3848, %v916_v4   ;;  %908 = vperm.xlu1 %3847, %v903_v32   ;;  %6615 = vst [vmem:[#allocation80_spill] sm:$0xff] %v5092_v50  ;;  %v2295_v9 = vrot.slane %v5092_v50, 4  ;;  %v5110_v32 = vpop.permute.xlu2 %797  ;;  %v2036_v50 = vsel %vm1125_vm0, %v753_v10, %v2035_v12  ;;  %v6619_v12 = vperm.slane %v4301_v59, 3 }
 0x20b   : > { %v5124_v57 = vperm.slane %v2036_v50, %v4346_v33 }
 0x20c   : > { %v5094_v35 = vpop.permute.xlu1 %758 }
 0x20d   : > { %v2257_v17 = vrot.slane %v5094_v35, 4  ;;  %6618 = vst [vmem:[#allocation83_spill] sm:$0xff] %v5124_v57 }
 0x20f   : > { %v2258_v46 = vsel %vm1125_vm0, %v2257_v17, %v5076_v7  ;;  %v2033_v17 = vrot.slane %v753_v10, 4  ;;  %v6620_v10 = vperm.slane %v4301_v59, 1 }
 0x210   : > { %v5103_v47 = vperm.slane %v2258_v46, %v4346_v33  ;;  %v2024_v46 = vsel %vm1125_vm0, %v4399_v11, %v2023_v42  ;;  %v2047_v11 = vrot.slane %v766_v54, 4 }
 0x212   : > { %6616 = vst [vmem:[#allocation81_spill] sm:$0xff] %v5103_v47  ;;  %3850 = vset.pattern.permute.xlu2 %v4137_v1  ;;  %921 = vperm.xlu1 %3847, %v916_v4   ;;  %v5108_v62 = vsel %vm1125_vm0, %v5103_v47, %v2295_v9  ;;  %v2057_v4 = vrot.slane %v4410_v18, 4  ;;  %v5119_v9 = vperm.slane %v2024_v46, %v4346_v33 }
 0x213   : > { %v2034_v47 = vsel %vm1125_vm0, %v2033_v17, %v727_v15  ;;  %v2022_v15 = vsel %vm1125_vm0, %v2021_v45, %v714_v63  ;;  %v2247_v45 = vrot.slane %v5062_v5, 4 }
 0x214   : > { %6617 = vst [vmem:[#allocation82_spill] sm:$0xff] %v5119_v9  ;;  %v5126_v26 = vpop.permute.xlu2 %817  ;;  %v2083_v23 = vrot.slane %v5119_v9, 4  ;;  %v5131_v28 = vperm.slane %v2034_v47, %v4346_v33  ;;  %v5152_v63 = vperm.slane %v2022_v15, %v4346_v33 }
 0x21a   : > { %947 = vperm.xlu2 %3850, %v942_v2   ;;  %3849 = vset.pattern.permute.xlu1 %v4193_v36 }
 0x21c   : > { %v779_v31 = vpop.permute.xlu1 %778  ;;  %v5166_v9 = vpop.permute.xlu2 %830 }
 0x21d   : > { %v2058_v42 = vsel %vm1125_vm0, %v2057_v4, %v779_v31  ;;  %v2059_v58 = vrot.slane %v779_v31, 4  ;;  %v2084_v31 = vsel %vm1125_vm0, %v5124_v57, %v2083_v23 }
 0x21e   : > { %v5139_v50 = vperm.slane %v2058_v42, %v4346_v33  ;;  %v5156_v23 = vperm.slane %v2084_v31, %v4437_v21 }
 0x21f   : > { %v2060_v47 = vsel %vm1125_vm0, %v4410_v18, %v2059_v58 }
 0x220   : > { %6622 = vst [vmem:[#allocation85_spill] sm:$0xff] %v5156_v23  ;;  %v5159_v18 = vperm.slane %v2060_v47, %v4346_v33  ;;  %v2093_v58 = vrot.slane %v5139_v50, 4  ;;  %v2259_v47 = vrot.slane %v5076_v7, 4 }
 0x222   : > { %960 = vperm.xlu2 %3850, %v6619_v12   ;;  %940 = vperm.xlu1 %3849, %v6620_v10   ;;  %v2069_v12 = vrot.slane %v5131_v28, 4  ;;  %6623 = vst [vmem:[#allocation86_spill] sm:$0xff] %v5159_v18 }
 0x224   : > { %v792_v46 = vpop.permute.xlu1 %791 }
 0x225   : > { %v2045_v17 = vrot.slane %v792_v46, 4  ;;  %v2048_v4 = vsel %vm1125_vm0, %v792_v46, %v2047_v11 }
 0x226   : > { %v5148_v10 = vperm.slane %v2048_v4, %v4346_v33  ;;  %v772_v4 = vpop.permute.xlu0 %771 }
 0x227   : > { %v2046_v42 = vsel %vm1125_vm0, %v2045_v17, %v766_v54  ;;  %v2271_v5 = vrot.slane %v772_v4, 4  ;;  %v2070_v54 = vsel %vm1125_vm0, %v2069_v12, %v5152_v63  ;;  %v2248_v17 = vsel %vm1125_vm0, %v5085_v3, %v2247_v45 }
 0x228   : > { %6621 = vst [vmem:[#allocation84_spill] sm:$0xff] %v5148_v10  ;;  %v5163_v11 = vperm.slane %v2046_v42, %v4346_v33  ;;  %v2107_v46 = vrot.slane %v5148_v10, 4  ;;  %v2131_v12 = vrot.slane %v5156_v23, 4  ;;  %v2256_v3 = vperm.slane %v2248_v17, %v4346_v33 }
 0x229   : > { %v2272_v45 = vsel %vm1125_vm0, %v5110_v32, %v2271_v5 }
 0x22a   : > { %3852 = vset.pattern.permute.xlu2 %v4193_v36  ;;  %953 = vperm.xlu1 %3849, %v942_v2   ;;  %v2094_v15 = vsel %vm1125_vm0, %v2093_v58, %v5163_v11  ;;  %v2108_v31 = vsel %vm1125_vm0, %v5159_v18, %v2107_v46  ;;  %v2269_v2 = vrot.slane %v5110_v32, 4  ;;  %v2260_v58 = vsel %vm1125_vm0, %v5094_v35, %v2259_v47 }
 0x22b   : > { %v5179_v42 = vperm.slane %v2094_v15, %v4437_v21  ;;  %v5182_v10 = vperm.slane %v2108_v31, %v4437_v21  ;;  %v5189_v46 = vperm.slane %v2070_v54, %v4437_v21  ;;  %v968_v15 = vperm.slane %v4301_v59, 4 }
 0x22c   : > { %v2268_v35 = vperm.slane %v2260_v58, %v4346_v33  ;;  %v2270_v54 = vsel %vm1125_vm0, %v2269_v2, %v772_v4  ;;  %v2283_v47 = vrot.slane %v5096_v51, 4  ;;  %v2280_v17 = vperm.slane %v2272_v45, %v4346_v33 }
 0x22d   : > { %6624 = vst [vmem:[#allocation87_spill] sm:$0xff] %v5182_v10  ;;  %v2117_v7 = vrot.slane %v5179_v42, 4  ;;  %v5198_v31 = vsel %vm1125_vm0, %v5182_v10, %v2131_v12  ;;  %v2307_v18 = vrot.slane %v2256_v3, 4  ;;  %v5210_v32 = vperm.slane %v2270_v54, %v4346_v33 }
 0x22e   : > { %6625 = vst [vmem:[#allocation88_spill] sm:$0xff] %v5198_v31  ;;  %v2305_v5 = vrot.slane %v2268_v35, 4  ;;  %v2331_v58 = vrot.slane %v2280_v17, 4  ;;  %v981_v45 = vperm.slane %v4301_v59, 5 }
 0x22f   : > { %v5202_v23 = vsel %vm1125_vm0, %v2117_v7, %v5189_v46  ;;  %6627 = vst [vmem:[#allocation90_spill] sm:$0xff] %v5210_v32  ;;  %v2308_v12 = vsel %vm1125_vm0, %v2268_v35, %v2307_v18  ;;  %v5213_v7 = vpop.permute.xlu2 %849  ;;  %v2319_v57 = vrot.slane %v5210_v32, 4 }
 0x230   : > { %6626 = vst [vmem:[#allocation89_spill] sm:$0xff] %v5202_v23  ;;  %v2316_v23 = vperm.slane %v2308_v12, %v4437_v21  ;;  %v2306_v20 = vsel %vm1125_vm0, %v2305_v5, %v2256_v3 }
 0x232   : > { %979 = vperm.xlu2 %3852, %v968_v15   ;;  %3851 = vset.pattern.permute.xlu1 %v4137_v1 }
 0x234   : > { %v811_v31 = vpop.permute.xlu1 %810 }
 0x235   : > { %v2281_v10 = vrot.slane %v811_v31, 4  ;;  %v2284_v4 = vsel %vm1125_vm0, %v811_v31, %v2283_v47  ;;  %v2304_v31 = vperm.slane %v5108_v62, %v4437_v21 }
 0x236   : > { %v2292_v2 = vperm.slane %v2284_v4, %v4346_v33  ;;  %v837_v4 = vpop.permute.xlu0 %836 }
 0x237   : > { %v2282_v54 = vsel %vm1125_vm0, %v2281_v10, %v5096_v51  ;;  %v2371_v44 = vrot.slane %v837_v4, 4  ;;  %v5231_v51 = vperm.slane %v2306_v20, %v4437_v21  ;;  %v2347_v62 = vrot.slane %v2304_v31, 4 }
 0x238   : > { %v5223_v18 = vperm.slane %v2282_v54, %v4346_v33  ;;  %v2329_v35 = vrot.slane %v2292_v2, 4  ;;  %v2332_v47 = vsel %vm1125_vm0, %v2292_v2, %v2331_v58  ;;  %v2355_v54 = vrot.slane %v2316_v23, 4 }
 0x239   : > { %6629 = vst [vmem:[#allocation92_spill] sm:$0xff] %v5231_v51  ;;  %v2340_v12 = vperm.slane %v2332_v47, %v4437_v21 }
 0x23a   : > { %6628 = vst [vmem:[#allocation91_spill] sm:$0xff] %v5223_v18  ;;  %992 = vperm.xlu2 %3852, %v981_v45   ;;  %973 = vperm.xlu1 %3851, %v968_v15   ;;  %v2330_v32 = vsel %vm1125_vm0, %v2329_v35, %v2280_v17  ;;  %v2320_v10 = vsel %vm1125_vm0, %v5223_v18, %v2319_v57  ;;  %v863_v15 = vpop.permute.xlu2 %862 }
 0x23b   : > { %v2328_v5 = vperm.slane %v2320_v10, %v4437_v21  ;;  %v5238_v2 = vperm.slane %v2330_v32, %v4437_v21  ;;  %v5244_v20 = vsel %vm1125_vm0, %v2340_v12, %v2355_v54  ;;  %v2372_v57 = vsel %vm1125_vm0, %v863_v15, %v2371_v44 }
 0x23c   : > { %v824_v3 = vpop.permute.xlu1 %823  ;;  %6632 = vst [vmem:[#allocation95_spill] sm:$0xff] %v5244_v20  ;;  %v2351_v10 = vrot.slane %v5231_v51, 4  ;;  %v2353_v54 = vrot.slane %v2340_v12, 4  ;;  %v1046_v51 = vperm.slane %v4314_v19, 2 }
 0x23d   : > { %v2359_v58 = vrot.slane %v824_v3, 4  ;;  %6630 = vst [vmem:[#allocation93_spill] sm:$0xff] %v5238_v2  ;;  %v2345_v17 = vrot.slane %v2328_v5, 4  ;;  %v5241_v35 = vsel %vm1125_vm0, %v2328_v5, %v2347_v62  ;;  %v5261_v62 = vperm.slane %v2372_v57, %v4346_v33 }
 0x23e   : > { %6631 = vst [vmem:[#allocation94_spill] sm:$0xff] %v5241_v35  ;;  %v5258_v5 = vsel %vm1125_vm0, %v5238_v2, %v2351_v10 }
 0x23f   : > { %v2360_v47 = vsel %vm1125_vm0, %v5213_v7, %v2359_v58  ;;  %v5254_v32 = vsel %vm1125_vm0, %v2345_v17, %v2304_v31  ;;  %6635 = vst [vmem:[#allocation98_spill] sm:$0xff] %v5258_v5  ;;  %v5266_v58 = vsel %vm1125_vm0, %v2353_v54, %v2316_v23  ;;  %v1007_v17 = vperm.slane %v4301_v59, 7 }
 0x240   : > { %v5251_v18 = vperm.slane %v2360_v47, %v4346_v33  ;;  %6634 = vst [vmem:[#allocation97_spill] sm:$0xff] %v5254_v32  ;;  %v6638_v5 = vperm.slane %v4314_v19, 0 }
 0x241   : > { %6636 = vst [vmem:[#allocation99_spill] sm:$0xff] %v5261_v62 }
 0x242   : > { %6633 = vst [vmem:[#allocation96_spill] sm:$0xff] %v5251_v18  ;;  %v2419_v44 = vrot.slane %v5251_v18, 4  ;;  %3854 = vset.pattern.permute.xlu2 %v4137_v1  ;;  %986 = vperm.xlu1 %3851, %v981_v45   ;;  %v6639_v45 = vperm.slane %v4301_v59, 6 }
 0x243   : > { %6637 = vst [vmem:[#allocation100_spill] sm:$0xff] %v5266_v58 }
 0x244   : > { %v2420_v31 = vsel %vm1125_vm0, %v5261_v62, %v2419_v44  ;;  %v5281_v44 = vpop.permute.xlu2 %882  ;;  %v902_v62 = vpop.permute.xlu0 %901 }
 0x24a   : > { %1012 = vperm.xlu2 %3854, %v1007_v17   ;;  %3853 = vset.pattern.permute.xlu1 %v4193_v36 }
 0x24c   : > { %v844_v47 = vpop.permute.xlu1 %843 }
 0x24d   : > { %v2133_v57 = vrot.slane %v844_v47, 4 }
 0x24f   : > { %v2134_v10 = vsel %vm1125_vm0, %v2133_v57, %v5126_v26 }
 0x250   : > { %v5279_v23 = vperm.slane %v2134_v10, %v4346_v33  ;;  %v896_v10 = vpop.permute.xlu2 %895 }
 0x252   : > { %1025 = vperm.xlu2 %3854, %v6638_v5   ;;  %1005 = vperm.xlu1 %3853, %v6639_v45   ;;  %v2183_v20 = vrot.slane %v5279_v23, 4  ;;  %v2357_v5 = vrot.slane %v5213_v7, 4  ;;  %v1033_v45 = vperm.slane %v4314_v19, 1 }
 0x254   : > { %v857_v12 = vpop.permute.xlu1 %856  ;;  %v2358_v18 = vsel %vm1125_vm0, %v2357_v5, %v824_v3 }
 0x255   : > { %v2145_v54 = vrot.slane %v857_v12, 4  ;;  %v5298_v35 = vperm.slane %v2358_v18, %v4346_v33 }
 0x257   : > { %v2146_v58 = vsel %vm1125_vm0, %v2145_v54, %v5166_v9  ;;  %v2369_v54 = vrot.slane %v863_v15, 4  ;;  %6640 = vst [vmem:[#allocation101_spill] sm:$0xff] %v5298_v35  ;;  %v2407_v7 = vrot.slane %v5298_v35, 4 }
 0x258   : > { %v5287_v57 = vperm.slane %v2146_v58, %v4346_v33  ;;  %v2381_v58 = vrot.slane %v902_v62, 4 }
 0x25a   : > { %3856 = vset.pattern.permute.xlu2 %v4193_v36  ;;  %1018 = vperm.xlu1 %3853, %v1007_v17   ;;  %v5292_v59 = vsel %vm1125_vm0, %v5287_v57, %v2183_v20  ;;  %v2370_v20 = vsel %vm1125_vm0, %v2369_v54, %v837_v4 }
 0x25b   : > { %v5306_v3 = vperm.slane %v2370_v20, %v4346_v33 }
 0x25c   : > { %v915_v15 = vpop.permute.xlu2 %914 }
 0x25d   : > { %6641 = vst [vmem:[#allocation102_spill] sm:$0xff] %v5306_v3  ;;  %v2393_v5 = vrot.slane %v915_v15, 4  ;;  %v2408_v4 = vsel %vm1125_vm0, %v5306_v3, %v2407_v7 }
 0x25e   : > { %v5319_v20 = vperm.slane %v2408_v4, %v4437_v21  ;;  %v2159_v4 = vrot.slane %v4425_v41, 4 }
 0x260   : > { %6644 = vst [vmem:[#allocation105_spill] sm:$0xff] %v5319_v20 }
 0x262   : > { %1044 = vperm.xlu2 %3856, %v1033_v45   ;;  %3855 = vset.pattern.permute.xlu1 %v4137_v1 }
 0x264   : > { %v876_v17 = vpop.permute.xlu1 %875 }
 0x265   : > { %v2383_v32 = vrot.slane %v876_v17, 4  ;;  %v2382_v2 = vsel %vm1125_vm0, %v2381_v58, %v876_v17 }
 0x266   : > { %v5310_v55 = vperm.slane %v2382_v2, %v4346_v33 }
 0x267   : > { %v2384_v18 = vsel %vm1125_vm0, %v902_v62, %v2383_v32  ;;  %v2135_v62 = vrot.slane %v5126_v26, 4  ;;  %v2147_v26 = vrot.slane %v5166_v9, 4 }
 0x268   : > { %6642 = vst [vmem:[#allocation103_spill] sm:$0xff] %v5310_v55  ;;  %v5315_v54 = vperm.slane %v2384_v18, %v4346_v33  ;;  %v2431_v32 = vrot.slane %v5310_v55, 4 }
 0x269   : > { %v2148_v9 = vsel %vm1125_vm0, %v857_v12, %v2147_v26  ;;  %v2171_v12 = vrot.slane %v5281_v44, 4 }
 0x26a   : > { %1057 = vperm.xlu2 %3856, %v1046_v51   ;;  %1038 = vperm.xlu1 %3855, %v1033_v45   ;;  %6643 = vst [vmem:[#allocation104_spill] sm:$0xff] %v5315_v54  ;;  %v2443_v7 = vrot.slane %v5315_v54, 4 }
 0x26c   : > { %v889_v35 = vpop.permute.xlu1 %888 }
 0x26d   : > { %v2394_v58 = vsel %vm1125_vm0, %v2393_v5, %v889_v35  ;;  %v2395_v17 = vrot.slane %v889_v35, 4  ;;  %v2428_v5 = vperm.slane %v2420_v31, %v4437_v21  ;;  %v2157_v31 = vrot.slane %v896_v10, 4 }
 0x26e   : > { %v5323_v2 = vperm.slane %v2394_v58, %v4346_v33  ;;  %v2459_v58 = vrot.slane %v5319_v20, 4  ;;  %v2160_v20 = vsel %vm1125_vm0, %v896_v10, %v2159_v4 }
 0x26f   : > { %v2396_v45 = vsel %vm1125_vm0, %v915_v15, %v2395_v17  ;;  %v5340_v15 = vpop.permute.xlu2 %927  ;;  %v2467_v54 = vrot.slane %v2428_v5, 4  ;;  %v2168_v10 = vperm.slane %v2160_v20, %v4346_v33  ;;  %v2181_v20 = vrot.slane %v5287_v57, 4 }
 0x270   : > { %6645 = vst [vmem:[#allocation106_spill] sm:$0xff] %v5323_v2  ;;  %v5329_v18 = vperm.slane %v2396_v45, %v4346_v33  ;;  %v2432_v35 = vsel %vm1125_vm0, %v5323_v2, %v2431_v32  ;;  %v2136_v32 = vsel %vm1125_vm0, %v844_v47, %v2135_v62  ;;  %v2158_v47 = vsel %vm1125_vm0, %v2157_v31, %v4425_v41 }
 0x271   : > { %v5336_v55 = vperm.slane %v2432_v35, %v4437_v21  ;;  %v2144_v3 = vperm.slane %v2136_v32, %v4346_v33  ;;  %v2156_v62 = vperm.slane %v2148_v9, %v4346_v33  ;;  %v2164_v26 = vperm.slane %v2158_v47, %v4346_v33 }
 0x272   : > { %6646 = vst [vmem:[#allocation107_spill] sm:$0xff] %v5329_v18  ;;  %3859 = vset.pattern.permute.xlu2 %v4137_v1  ;;  %1051 = vperm.xlu1 %3855, %v1046_v51   ;;  %v2444_v17 = vsel %vm1125_vm0, %v5329_v18, %v2443_v7  ;;  %v1072_v51 = vperm.slane %v4314_v19, 4  ;;  %v2219_v31 = vrot.slane %v2168_v10, 4  ;;  %v6650_v57 = vperm.slane %v4314_v19, 5 }
 0x273   : > { %v5348_v45 = vsel %vm1125_vm0, %v5336_v55, %v2459_v58  ;;  %v2452_v35 = vperm.slane %v2444_v17, %v4437_v21  ;;  %v2195_v4 = vrot.slane %v2144_v3, 4 }
 0x274   : > { %6647 = vst [vmem:[#allocation108_spill] sm:$0xff] %v5348_v45  ;;  %v2192_v45 = vperm.slane %v5292_v59, %v4437_v21 }
 0x275   : > { %v2465_v2 = vrot.slane %v2452_v35, 4  ;;  %v5356_v7 = vsel %vm1125_vm0, %v2452_v35, %v2467_v54  ;;  %v2193_v54 = vrot.slane %v2156_v62, 4  ;;  %v2196_v17 = vsel %vm1125_vm0, %v2156_v62, %v2195_v4 }
 0x276   : > { %6648 = vst [vmem:[#allocation109_spill] sm:$0xff] %v5356_v7  ;;  %v2204_v7 = vperm.slane %v2196_v17, %v4437_v21 }
 0x277   : > { %v5362_v58 = vsel %vm1125_vm0, %v2465_v2, %v2428_v5  ;;  %v5369_v32 = vpop.permute.xlu2 %947  ;;  %v2207_v5 = vrot.slane %v2164_v26, 4  ;;  %v2194_v4 = vsel %vm1125_vm0, %v2193_v54, %v2144_v3  ;;  %v2182_v3 = vsel %vm1125_vm0, %v2181_v20, %v5279_v23 }
 0x278   : > { %6649 = vst [vmem:[#allocation110_spill] sm:$0xff] %v5362_v58  ;;  %v5392_v59 = vperm.slane %v2194_v4, %v4437_v21  ;;  %v2243_v18 = vrot.slane %v2204_v7, 4  ;;  %v2188_v23 = vperm.slane %v2182_v3, %v4437_v21 }
 0x27a   : > { %1077 = vperm.xlu2 %3859, %v1072_v51   ;;  %3858 = vset.pattern.permute.xlu1 %v4193_v36 }
 0x27c   : > { %v909_v41 = vpop.permute.xlu1 %908 }
 0x27d   : > { %v2169_v35 = vrot.slane %v909_v41, 4  ;;  %v2172_v2 = vsel %vm1125_vm0, %v909_v41, %v2171_v12  ;;  %v2483_v41 = vrot.slane %v4459_v53, 4 }
 0x27e   : > { %v2180_v9 = vperm.slane %v2172_v2, %v4346_v33 }
 0x27f   : > { %v2170_v47 = vsel %vm1125_vm0, %v2169_v35, %v5281_v44  ;;  %v6651_v44 = vperm.slane %v4314_v19, 3 }
 0x280   : > { %v2176_v58 = vperm.slane %v2170_v47, %v4346_v33  ;;  %v2217_v62 = vrot.slane %v2180_v9, 4  ;;  %v2220_v12 = vsel %vm1125_vm0, %v2180_v9, %v2219_v31 }
 0x281   : > { %v2228_v31 = vperm.slane %v2220_v12, %v4437_v21 }
 0x282   : > { %v2205_v2 = vrot.slane %v2176_v58, 4  ;;  %1090 = vperm.xlu2 %3859, %v6650_v57   ;;  %1070 = vperm.xlu1 %3858, %v6651_v44   ;;  %v2218_v17 = vsel %vm1125_vm0, %v2217_v62, %v2168_v10  ;;  %v2208_v35 = vsel %vm1125_vm0, %v2176_v58, %v2207_v5  ;;  %v2235_v57 = vrot.slane %v2192_v45, 4  ;;  %v961_v5 = vpop.permute.xlu2 %960 }
 0x283   : > { %v2216_v54 = vperm.slane %v2208_v35, %v4437_v21  ;;  %v5399_v58 = vperm.slane %v2218_v17, %v4437_v21  ;;  %v5406_v4 = vsel %vm1125_vm0, %v2228_v31, %v2243_v18  ;;  %v2239_v35 = vrot.slane %v5392_v59, 4 }
 0x284   : > { %v922_v9 = vpop.permute.xlu1 %921  ;;  %v2206_v47 = vsel %vm1125_vm0, %v2205_v2, %v2164_v26  ;;  %v2484_v26 = vsel %vm1125_vm0, %v961_v5, %v2483_v41 }
 0x285   : > { %v2471_v44 = vrot.slane %v922_v9, 4  ;;  %v2212_v10 = vperm.slane %v2206_v47, %v4437_v21  ;;  %v5403_v20 = vsel %vm1125_vm0, %v2216_v54, %v2235_v57  ;;  %v2233_v62 = vrot.slane %v2216_v54, 4 }
 0x286   : > { %v2241_v54 = vrot.slane %v2228_v31, 4  ;;  %v5423_v18 = vsel %vm1125_vm0, %v5399_v58, %v2239_v35  ;;  %v5426_v41 = vperm.slane %v2484_v26, %v4346_v33  ;;  %v1098_v31 = vperm.slane %v4314_v19, 6 }
 0x287   : > { %v2472_v12 = vsel %vm1125_vm0, %v5369_v32, %v2471_v44  ;;  %v2229_v2 = vrot.slane %v2212_v10, 4  ;;  %v5416_v3 = vsel %vm1125_vm0, %v2233_v62, %v2192_v45  ;;  %v1111_v62 = vperm.slane %v4314_v19, 7 }
 0x288   : > { %v5413_v17 = vperm.slane %v2472_v12, %v4346_v33  ;;  %v5431_v44 = vsel %vm1125_vm0, %v2241_v54, %v2204_v7  ;;  %v2469_v7 = vrot.slane %v5369_v32, 4  ;;  %v2481_v19 = vrot.slane %v961_v5, 4 }
 0x289   : > { %v5419_v47 = vsel %vm1125_vm0, %v2229_v2, %v2188_v23  ;;  %v1335_v54 = vrot.slane %v4626_v22, 4  ;;  %v2493_v5 = vrot.slane %v4481_v48, 4 }
 0x28a   : > { %v2531_v57 = vrot.slane %v5413_v17, 4  ;;  %3861 = vset.pattern.permute.xlu2 %v4193_v36  ;;  %1083 = vperm.xlu1 %3858, %v1072_v51   ;;  %v1671_v36 = vrot.slane %v4905_v13, 4  ;;  %v2470_v35 = vsel %vm1125_vm0, %v2469_v7, %v922_v9  ;;  %v2482_v13 = vsel %vm1125_vm0, %v2481_v19, %v4459_v53 }
 0x28b   : > { %v2476_v32 = vperm.slane %v2470_v35, %v4346_v33  ;;  %v2488_v9 = vperm.slane %v2482_v13, %v4346_v33 }
 0x28c   : > { %v2532_v45 = vsel %vm1125_vm0, %v5426_v41, %v2531_v57  ;;  %v5440_v12 = vpop.permute.xlu2 %979  ;;  %v1672_v51 = vsel %vm1125_vm0, %v4891_v16, %v1671_v36  ;;  %v2231_v57 = vrot.slane %v2188_v23, 4  ;;  %v1336_v16 = vsel %vm1125_vm0, %v4629_v24, %v1335_v54 }
 0x28d   : > { %v2119_v24 = vrot.slane %v5189_v46, 4 }
 0x28f   : > { %v2120_v19 = vsel %vm1125_vm0, %v5179_v42, %v2119_v24 }
 0x292   : > { %1109 = vperm.xlu2 %3861, %v1098_v31   ;;  %3860 = vset.pattern.permute.xlu1 %v4137_v1 }
 0x294   : > { %v5438_v26 = vpop.permute.xlu1 %940  ;;  %v5449_v1 = vpop.permute.xlu2 %992 }
 0x29a   : > { %1122 = vperm.xlu2 %3861, %v1111_v62   ;;  %1103 = vperm.xlu1 %3860, %v1098_v31   ;;  %v2232_v31 = vsel %vm1125_vm0, %v2212_v10, %v2231_v57 }
 0x29c   : > { %v5447_v2 = vpop.permute.xlu1 %953 }
 0x2a2   : > { %1116 = vperm.xlu1 %3860, %v1111_v62   ;;  %2929 = vrot.lane.b32.xlu2 %v1672_v51, %s4008_s8  ;;  %v2519_v62 = vrot.slane %v2476_v32, 4  ;;  %v2517_v51 = vrot.slane %v2488_v9, 4 }
 0x2a4   : > { %v1013_v36 = vpop.permute.xlu2 %1012  ;;  %v2520_v54 = vsel %vm1125_vm0, %v2488_v9, %v2519_v62  ;;  %v2518_v46 = vsel %vm1125_vm0, %v2517_v51, %v2476_v32  ;;  %v2540_v32 = vperm.slane %v2532_v45, %v4437_v21 }
 0x2a5   : > { %v2505_v7 = vrot.slane %v1013_v36, 4  ;;  %v2528_v42 = vperm.slane %v2520_v54, %v4437_v21  ;;  %v2524_v9 = vperm.slane %v2518_v46, %v4437_v21 }
 0x2a7   : > { %v2567_v46 = vrot.slane %v2524_v9, 4 }
 0x2aa   : > { %2927 = vrot.lane.b32.xlu1 %v1336_v16, %s4008_s8  ;;  %2935 = vrot.lane.b32.xlu2 %v2232_v31, %s4008_s8 }
 0x2ac   : > { %v974_v22 = vpop.permute.xlu1 %973 }
 0x2ad   : > { %v2495_v23 = vrot.slane %v974_v22, 4  ;;  %v2494_v53 = vsel %vm1125_vm0, %v2493_v5, %v974_v22  ;;  %v1311_v22 = vrot.slane %v4592_v25, 4  ;;  %v2571_v25 = vrot.slane %v2528_v42, 4 }
 0x2ae   : > { %v2500_v35 = vperm.slane %v2494_v53, %v4346_v33 }
 0x2af   : > { %v2496_v10 = vsel %vm1125_vm0, %v4481_v48, %v2495_v23  ;;  %v1312_v51 = vsel %vm1125_vm0, %v4588_v37, %v1311_v22  ;;  %v2095_v22 = vrot.slane %v5163_v11, 4 }
 0x2b0   : > { %v5476_v57 = vperm.slane %v2496_v10, %v4346_v33  ;;  %v2543_v31 = vrot.slane %v2500_v35, 4 }
 0x2b2   : > { %2933 = vrot.lane.b32.xlu1 %v2120_v19, %s4008_s8  ;;  %2957 = vrot.lane.b32.xlu2 %v4462_v0, %s4009_s30  ;;  %v2555_v23 = vrot.slane %v5476_v57, 4 }
 0x2b4   : > { %v987_v48 = vpop.permute.xlu1 %986 }
 0x2b5   : > { %v2506_v13 = vsel %vm1125_vm0, %v2505_v7, %v987_v48  ;;  %v2507_v16 = vrot.slane %v987_v48, 4  ;;  %v5497_v7 = vpop.permute.xlu2 %1025 }
 0x2b6   : > { %v2512_v5 = vperm.slane %v2506_v13, %v4346_v33  ;;  %v1320_v13 = vperm.slane %v1312_v51, %v4437_v21 }
 0x2b7   : > { %v2508_v0 = vsel %vm1125_vm0, %v1013_v36, %v2507_v16  ;;  %v1287_v36 = vrot.slane %v4540_v49, 4  ;;  %v2695_v49 = vrot.slane %v5340_v15, 4 }
 0x2b8   : > { %v5487_v62 = vperm.slane %v2508_v0, %v4346_v33  ;;  %v2541_v53 = vrot.slane %v2512_v5, 4  ;;  %v2544_v24 = vsel %vm1125_vm0, %v2512_v5, %v2543_v31 }
 0x2b9   : > { %v2552_v10 = vperm.slane %v2544_v24, %v4437_v21  ;;  %v1288_v24 = vsel %vm1125_vm0, %v4518_v6, %v1287_v36 }
 0x2ba   : > { %2963 = vrot.lane.b32.xlu2 %v4991_v61, %s4009_s30  ;;  %v2542_v45 = vsel %vm1125_vm0, %v2541_v53, %v2500_v35  ;;  %v2556_v19 = vsel %vm1125_vm0, %v5487_v62, %v2555_v23  ;;  %v2579_v61 = vrot.slane %v2540_v32, 4  ;;  %v2693_v35 = vrot.slane %v5447_v2, 4 }
 0x2bb   : > { %v2548_v54 = vperm.slane %v2542_v45, %v4437_v21  ;;  %v5503_v37 = vsel %vm1125_vm0, %v2552_v10, %v2571_v25  ;;  %v2564_v48 = vperm.slane %v2556_v19, %v4437_v21  ;;  %v2569_v5 = vrot.slane %v2552_v10, 4  ;;  %v967_v25 = vpop.permute.xlu0 %966 }
 0x2bc   : > { %v2696_v53 = vsel %vm1125_vm0, %v5447_v2, %v2695_v49  ;;  %v1337_v45 = vrot.slane %v1320_v13, 4  ;;  %v2705_v11 = vrot.slane %v967_v25, 4  ;;  %v2707_v19 = vrot.slane %v5438_v26, 4 }
 0x2bd   : > { %v2568_v16 = vsel %vm1125_vm0, %v2548_v54, %v2567_v46  ;;  %v2565_v31 = vrot.slane %v2548_v54, 4  ;;  %v5513_v0 = vsel %vm1125_vm0, %v2564_v48, %v2579_v61  ;;  %v2577_v23 = vrot.slane %v2564_v48, 4 }
 0x2be   : > { %2937 = vrot.lane.b32.xlu0 %v2568_v16, %s4008_s8  ;;  %v2694_v54 = vsel %vm1125_vm0, %v2693_v35, %v5340_v15  ;;  %v2570_v46 = vsel %vm1125_vm0, %v2569_v5, %v2528_v42  ;;  %v5530_v2 = vperm.slane %v2696_v53, %v4346_v33  ;;  %v1296_v6 = vperm.slane %v1288_v24, %v4437_v21  ;;  %v5539_v15 = vpop.permute.xlu2 %1044 }
 0x2bf   : > { %v5520_v51 = vsel %vm1125_vm0, %v2565_v31, %v2524_v9  ;;  %v5523_v10 = vsel %vm1125_vm0, %v2577_v23, %v2540_v32  ;;  %v2096_v9 = vsel %vm1125_vm0, %v5139_v50, %v2095_v22  ;;  %v2719_v32 = vrot.slane %v5440_v12, 4 }
 0x2c0   : > { %6652 = vst [vmem:[#allocation111_spill] sm:$0xff] %v5530_v2  ;;  %v2700_v36 = vperm.slane %v2694_v54, %v4346_v33  ;;  %v1338_v49 = vsel %vm1125_vm0, %v1337_v45, %v1296_v6  ;;  %v2706_v42 = vsel %vm1125_vm0, %v2705_v11, %v5438_v26  ;;  %v2708_v61 = vsel %vm1125_vm0, %v967_v25, %v2707_v19 }
 0x2c1   : > { %v2104_v16 = vperm.slane %v2096_v9, %v4437_v21  ;;  %v2071_v31 = vrot.slane %v5152_v63, 4  ;;  %v2755_v50 = vrot.slane %v5530_v2, 4  ;;  %v1339_v22 = vrot.slane %v1296_v6, 4 }
 0x2c2   : > { %2969 = vrot.lane.b32.xlu2 %v2570_v46, %s4009_s30  ;;  %v2712_v23 = vperm.slane %v2706_v42, %v4346_v33  ;;  %v5551_v53 = vperm.slane %v2708_v61, %v4346_v33  ;;  %v2743_v26 = vrot.slane %v2700_v36, 4  ;;  %v2731_v54 = vrot.slane %v5449_v1, 4 }
 0x2c3   : > { %v2072_v24 = vsel %vm1125_vm0, %v5131_v28, %v2071_v31  ;;  %v1340_v63 = vsel %vm1125_vm0, %v1320_v13, %v1339_v22  ;;  %v2121_v45 = vrot.slane %v2104_v16, 4 }
 0x2c4   : > { %v1006_v48 = vpop.permute.xlu1 %1005  ;;  %6653 = vst [vmem:[#allocation112_spill] sm:$0xff] %v5551_v53  ;;  %v2756_v19 = vsel %vm1125_vm0, %v5551_v53, %v2755_v50  ;;  %v2080_v46 = vperm.slane %v2072_v24, %v4437_v21  ;;  %v2741_v28 = vrot.slane %v2712_v23, 4  ;;  %v2744_v13 = vsel %vm1125_vm0, %v2712_v23, %v2743_v26 }
 0x2c5   : > { %v2717_v35 = vrot.slane %v1006_v48, 4  ;;  %v2720_v5 = vsel %vm1125_vm0, %v1006_v48, %v2719_v32  ;;  %v2752_v22 = vperm.slane %v2744_v13, %v4437_v21 }
 0x2c6   : > { %2959 = vrot.lane.b32.xlu0 %v1338_v49, %s4009_s30  ;;  %v5559_v11 = vperm.slane %v2720_v5, %v4346_v33  ;;  %v2122_v48 = vsel %vm1125_vm0, %v2121_v45, %v2080_v46  ;;  %v5571_v49 = vperm.slane %v2756_v19, %v4437_v21  ;;  %v2742_v31 = vsel %vm1125_vm0, %v2741_v28, %v2700_v36 }
 0x2c7   : > { %v2718_v25 = vsel %vm1125_vm0, %v2717_v35, %v5440_v12  ;;  %v1058_v35 = vpop.permute.xlu2 %1057  ;;  %v2123_v5 = vrot.slane %v2080_v46, 4  ;;  %v2795_v46 = vrot.slane %v2752_v22, 4 }
 0x2c8   : > { %6654 = vst [vmem:[#allocation113_spill] sm:$0xff] %v5559_v11  ;;  %v2724_v6 = vperm.slane %v2718_v25, %v4346_v33  ;;  %v2779_v42 = vrot.slane %v5559_v11, 4  ;;  %v2803_v36 = vrot.slane %v5571_v49, 4 }
 0x2c9   : > { %6655 = vst [vmem:[#allocation114_spill] sm:$0xff] %v5571_v49  ;;  %v2124_v25 = vsel %vm1125_vm0, %v2104_v16, %v2123_v5 }
 0x2ca   : > { %2991 = vrot.lane.b32.xlu2 %v1340_v63, %s4010_s9  ;;  %v2767_v23 = vrot.slane %v2724_v6, 4  ;;  %v5587_v63 = vperm.slane %v2742_v31, %v4437_v21 }
 0x2cc   : > { %v1019_v12 = vpop.permute.xlu1 %1018 }
 0x2cd   : > { %v2729_v9 = vrot.slane %v1019_v12, 4  ;;  %v2732_v32 = vsel %vm1125_vm0, %v1019_v12, %v2731_v54 }
 0x2ce   : > { %v5575_v61 = vperm.slane %v2732_v32, %v4346_v33  ;;  %2965 = vrot.lane.b32.xlu0 %v2122_v48, %s4009_s30 }
 0x2cf   : > { %v2730_v50 = vsel %vm1125_vm0, %v2729_v9, %v5449_v1  ;;  %v2791_v9 = vrot.slane %v5587_v63, 4 }
 0x2d0   : > { %6656 = vst [vmem:[#allocation115_spill] sm:$0xff] %v5575_v61  ;;  %v2736_v26 = vperm.slane %v2730_v50, %v4346_v33  ;;  %v2780_v24 = vsel %vm1125_vm0, %v5575_v61, %v2779_v42 }
 0x2d1   : > { %v5590_v45 = vperm.slane %v2780_v24, %v4437_v21  ;;  %v2583_v24 = vrot.slane %v5497_v7, 4 }
 0x2d2   : > { %v2765_v1 = vrot.slane %v2736_v26, 4  ;;  %2997 = vrot.lane.b32.xlu2 %v2124_v25, %s4010_s9  ;;  %v2768_v19 = vsel %vm1125_vm0, %v2736_v26, %v2767_v23 }
 0x2d3   : > { %6657 = vst [vmem:[#allocation116_spill] sm:$0xff] %v5590_v45  ;;  %v2776_v54 = vperm.slane %v2768_v19, %v4437_v21  ;;  %v5598_v28 = vsel %vm1125_vm0, %v5590_v45, %v2803_v36  ;;  %v1032_v19 = vpop.permute.xlu0 %1031 }
 0x2d4   : > { %6658 = vst [vmem:[#allocation117_spill] sm:$0xff] %v5598_v28  ;;  %v2766_v16 = vsel %vm1125_vm0, %v2765_v1, %v2724_v6  ;;  %v5615_v31 = vpop.permute.xlu2 %1077 }
 0x2d5   : > { %v5602_v12 = vperm.slane %v2766_v16, %v4437_v21  ;;  %v5605_v13 = vsel %vm1125_vm0, %v2776_v54, %v2795_v46  ;;  %v2793_v32 = vrot.slane %v2776_v54, 4  ;;  %v2807_v16 = vrot.slane %v1032_v19, 4 }
 0x2d6   : > { %6659 = vst [vmem:[#allocation118_spill] sm:$0xff] %v5605_v13 }
 0x2d7   : > { %v5610_v48 = vsel %vm1125_vm0, %v5602_v12, %v2791_v9  ;;  %v5613_v42 = vsel %vm1125_vm0, %v2793_v32, %v2752_v22  ;;  %v2805_v32 = vrot.slane %v1058_v35, 4 }
 0x2d8   : > { %6660 = vst [vmem:[#allocation119_spill] sm:$0xff] %v5610_v48 }
 0x2d9   : > { %6661 = vst [vmem:[#allocation120_spill] sm:$0xff] %v5613_v42  ;;  %v2806_v28 = vsel %vm1125_vm0, %v2805_v32, %v1032_v19 }
 0x2dc   : > { %v5617_v50 = vpop.permute.xlu1 %1038  ;;  %v5623_v26 = vpop.permute.xlu2 %1090 }
 0x2dd   : > { %v2595_v6 = vrot.slane %v5617_v50, 4 }
 0x2df   : > { %v2596_v5 = vsel %vm1125_vm0, %v4493_v60, %v2595_v6 }
 0x2e0   : > { %v2604_v23 = vperm.slane %v2596_v5, %v4346_v33  ;;  %v2808_v5 = vsel %vm1125_vm0, %v1058_v35, %v2807_v16 }
 0x2e1   : > { %v2816_v49 = vperm.slane %v2808_v5, %v4346_v33 }
 0x2e2   : > { %v2641_v36 = vrot.slane %v2604_v23, 4 }
 0x2e3   : > { %v2867_v11 = vrot.slane %v2816_v49, 4 }
 0x2e4   : > { %v5626_v25 = vpop.permute.xlu1 %1051 }
 0x2e5   : > { %v2584_v22 = vsel %vm1125_vm0, %v5626_v25, %v2583_v24  ;;  %v2819_v24 = vrot.slane %v5539_v15, 4 }
 0x2e6   : > { %v2592_v1 = vperm.slane %v2584_v22, %v4346_v33  ;;  %v1097_v22 = vpop.permute.xlu0 %1096 }
 0x2e7   : > { %v2843_v45 = vrot.slane %v1097_v22, 4 }
 0x2e8   : > { %v5632_v54 = vsel %vm1125_vm0, %v2641_v36, %v2592_v1  ;;  %v2643_v46 = vrot.slane %v2592_v1, 4  ;;  %v2812_v36 = vperm.slane %v2806_v28, %v4346_v33 }
 0x2ea   : > { %v5635_v9 = vsel %vm1125_vm0, %v2604_v23, %v2643_v46  ;;  %v2855_v35 = vrot.slane %v2812_v36, 4 }
 0x2ec   : > { %v1110_v6 = vpop.permute.xlu2 %1109 }
 0x2ed   : > { %v2829_v48 = vrot.slane %v1110_v6, 4 }
 0x2f4   : > { %v1123_v2 = vpop.permute.xlu2 %1122  ;;  %v1071_v1 = vpop.permute.xlu1 %1070 }
 0x2f5   : > { %v2841_v53 = vrot.slane %v1123_v2, 4  ;;  %v2817_v23 = vrot.slane %v1071_v1, 4  ;;  %v2820_v46 = vsel %vm1125_vm0, %v1071_v1, %v2819_v24  ;;  %v2844_v16 = vsel %vm1125_vm0, %v1123_v2, %v2843_v45 }
 0x2f6   : > { %v2828_v61 = vperm.slane %v2820_v46, %v4346_v33  ;;  %v2852_v24 = vperm.slane %v2844_v16, %v4346_v33 }
 0x2f7   : > { %v2842_v19 = vsel %vm1125_vm0, %v2841_v53, %v1097_v22  ;;  %v2818_v32 = vsel %vm1125_vm0, %v2817_v23, %v5539_v15 }
 0x2f8   : > { %v2848_v5 = vperm.slane %v2842_v19, %v4346_v33  ;;  %v2824_v28 = vperm.slane %v2818_v32, %v4346_v33  ;;  %v2865_v42 = vrot.slane %v2828_v61, 4  ;;  %v2868_v13 = vsel %vm1125_vm0, %v2828_v61, %v2867_v11 }
 0x2f9   : > { %v2889_v61 = vrot.slane %v2852_v24, 4 }
 0x2fa   : > { %v2853_v1 = vrot.slane %v2824_v28, 4  ;;  %v2866_v46 = vsel %vm1125_vm0, %v2865_v42, %v2816_v49  ;;  %v2856_v53 = vsel %vm1125_vm0, %v2824_v28, %v2855_v35  ;;  %v2877_v2 = vrot.slane %v2848_v5, 4 }
 0x2fb   : > { %v2872_v35 = vperm.slane %v2866_v46, %v4437_v21 }
 0x2fc   : > { %v1084_v45 = vpop.permute.xlu1 %1083  ;;  %v2930_v22 = vpop.permute.xlu2 %2929  ;;  %v2854_v15 = vsel %vm1125_vm0, %v2853_v1, %v2812_v36 }
 0x2fd   : > { %v2830_v23 = vsel %vm1125_vm0, %v2829_v48, %v1084_v45  ;;  %v2831_v19 = vrot.slane %v1084_v45, 4  ;;  %v5658_v32 = vsel %vm3397_vm1, %v4915_v39, %v2930_v22  ;;  %v2860_v11 = vperm.slane %v2854_v15, %v4437_v21 }
 0x2fe   : > { %v2836_v49 = vperm.slane %v2830_v23, %v4346_v33  ;;  %v2864_v48 = vperm.slane %v2856_v53, %v4437_v21  ;;  %v2876_v45 = vperm.slane %v2868_v13, %v4437_v21  ;;  %v2581_v53 = vrot.slane %v5626_v25, 4 }
 0x2ff   : > { %v2832_v42 = vsel %vm1125_vm0, %v1110_v6, %v2831_v19  ;;  %v2903_v39 = vrot.slane %v2860_v11, 4  ;;  %v2911_v13 = vrot.slane %v2872_v35, 4 }
 0x300   : > { %v2840_v16 = vperm.slane %v2832_v42, %v4346_v33  ;;  %v2878_v36 = vsel %vm1125_vm0, %v2877_v2, %v2836_v49  ;;  %v2879_v28 = vrot.slane %v2836_v49, 4  ;;  %v2907_v42 = vrot.slane %v2864_v48, 4 }
 0x301   : > { %v2884_v1 = vperm.slane %v2878_v36, %v4437_v21  ;;  %v2915_v25 = vrot.slane %v2876_v45, 4 }
 0x302   : > { %v2880_v22 = vsel %vm1125_vm0, %v2848_v5, %v2879_v28  ;;  %v2891_v15 = vrot.slane %v2840_v16, 4  ;;  %v2890_v23 = vsel %vm1125_vm0, %v2889_v61, %v2840_v16 }
 0x303   : > { %v5672_v6 = vsel %vm1125_vm0, %v2884_v1, %v2903_v39  ;;  %v2901_v46 = vrot.slane %v2884_v1, 4  ;;  %v2896_v19 = vperm.slane %v2890_v23, %v4437_v21  ;;  %v2888_v2 = vperm.slane %v2880_v22, %v4437_v21 }
 0x304   : > { %v2936_v49 = vpop.permute.xlu2 %2935  ;;  %v2892_v36 = vsel %vm1125_vm0, %v2852_v24, %v2891_v15 }
 0x305   : > { %v5680_v5 = vsel %vm3397_vm1, %v5419_v47, %v2936_v49  ;;  %v5683_v61 = vsel %vm1125_vm0, %v2901_v46, %v2860_v11  ;;  %v2909_v16 = vrot.slane %v2896_v19, 4  ;;  %v2905_v28 = vrot.slane %v2888_v2, 4 }
 0x306   : > { %v5686_v1 = vsel %vm1125_vm0, %v2888_v2, %v2907_v42  ;;  %v2900_v39 = vperm.slane %v2892_v36, %v4437_v21  ;;  %v5690_v22 = vsel %vm1125_vm0, %v2896_v19, %v2911_v13  ;;  %v2582_v11 = vsel %vm1125_vm0, %v2581_v53, %v5497_v7  ;;  %v2926_v2 = vpop.permute.xlu0 %2925 }
 0x307   : > { %v5693_v24 = vsel %vm1125_vm0, %v2909_v16, %v2872_v35  ;;  %v5696_v47 = vsel %vm1125_vm0, %v2905_v28, %v2864_v48  ;;  %v2593_v46 = vrot.slane %v4493_v60, 4  ;;  %v2607_v49 = vrot.slane %v5615_v31, 4 }
 0x308   : > { %v5701_v15 = vsel %vm1125_vm0, %v2900_v39, %v2915_v25  ;;  %v2913_v23 = vrot.slane %v2900_v39, 4  ;;  %v2588_v48 = vperm.slane %v2582_v11, %v4346_v33  ;;  %v3398_v7 = vsel %vm3397_vm1, %v4465_v52, %v2926_v2 }
 0x309   : > { %v2594_v35 = vsel %vm1125_vm0, %v2593_v46, %v5617_v50  ;;  %v2619_v52 = vrot.slane %v5623_v26, 4 }
 0x30a   : > { %v5706_v19 = vsel %vm1125_vm0, %v2913_v23, %v2876_v45  ;;  %v2600_v16 = vperm.slane %v2594_v35, %v4346_v33  ;;  %v2631_v45 = vrot.slane %v2588_v48, 4 }
 0x30c   : > { %v1104_v53 = vpop.permute.xlu1 %1103  ;;  %v2958_v42 = vpop.permute.xlu2 %2957  ;;  %v2629_v39 = vrot.slane %v2600_v16, 4  ;;  %v2632_v11 = vsel %vm1125_vm0, %v2600_v16, %v2631_v45 }
 0x30d   : > { %v2605_v36 = vrot.slane %v1104_v53, 4  ;;  %v2608_v60 = vsel %vm1125_vm0, %v1104_v53, %v2607_v49  ;;  %v5715_v13 = vsel %vm3406_vm2, %v3398_v7, %v2958_v42  ;;  %v2652_v42 = vperm.slane %v5635_v9, %v4437_v21 }
 0x30e   : > { %v2932_v28 = vpop.permute.xlu0 %2931  ;;  %v2616_v25 = vperm.slane %v2608_v60, %v4346_v33  ;;  %v2630_v35 = vsel %vm1125_vm0, %v2629_v39, %v2588_v48  ;;  %v2648_v48 = vperm.slane %v5632_v54, %v4437_v21 }
 0x30f   : > { %v2606_v50 = vsel %vm1125_vm0, %v2605_v36, %v5615_v31  ;;  %v3401_v23 = vsel %vm3397_vm1, %v4982_v43, %v2932_v28  ;;  %v2640_v43 = vperm.slane %v2632_v11, %v4437_v21  ;;  %v2636_v45 = vperm.slane %v2630_v35, %v4437_v21 }
 0x310   : > { %v2612_v46 = vperm.slane %v2606_v50, %v4346_v33  ;;  %v2667_v36 = vrot.slane %v2616_v25, 4 }
 0x312   : > { %v2655_v28 = vrot.slane %v2612_v46, 4 }
 0x314   : > { %v1117_v2 = vpop.permute.xlu1 %1116  ;;  %v2964_v49 = vpop.permute.xlu2 %2963 }
 0x315   : > { %v2617_v7 = vrot.slane %v1117_v2, 4  ;;  %v2620_v53 = vsel %vm1125_vm0, %v1117_v2, %v2619_v52  ;;  %v5729_v31 = vsel %vm3406_vm2, %v3401_v23, %v2964_v49  ;;  %v2691_v23 = vrot.slane %v2652_v42, 4 }
 0x316   : > { %v2628_v60 = vperm.slane %v2620_v53, %v4346_v33  ;;  %v2683_v49 = vrot.slane %v2640_v43, 4 }
 0x317   : > { %v2618_v16 = vsel %vm1125_vm0, %v2617_v7, %v5623_v26 }
 0x318   : > { %v2624_v50 = vperm.slane %v2618_v16, %v4346_v33  ;;  %v2665_v39 = vrot.slane %v2628_v60, 4  ;;  %v2668_v52 = vsel %vm1125_vm0, %v2628_v60, %v2667_v36  ;;  %v2679_v60 = vrot.slane %v2636_v45, 4 }
 0x319   : > { %v2676_v9 = vperm.slane %v2668_v52, %v4437_v21  ;;  %v2687_v16 = vrot.slane %v2648_v48, 4 }
 0x31a   : > { %v2653_v2 = vrot.slane %v2624_v50, 4  ;;  %v2656_v11 = vsel %vm1125_vm0, %v2624_v50, %v2655_v28  ;;  %v2666_v26 = vsel %vm1125_vm0, %v2665_v39, %v2616_v25 }
 0x31b   : > { %v2664_v35 = vperm.slane %v2656_v11, %v4437_v21  ;;  %v2689_v7 = vrot.slane %v2676_v9, 4  ;;  %v2672_v54 = vperm.slane %v2666_v26, %v4437_v21  ;;  %v5748_v53 = vsel %vm1125_vm0, %v2676_v9, %v2691_v23 }
 0x31c   : > { %v2928_v33 = vpop.permute.xlu1 %2927  ;;  %v2654_v36 = vsel %vm1125_vm0, %v2653_v2, %v2612_v46 }
 0x31d   : > { %v3399_v52 = vsel %vm3397_vm1, %v4657_v27, %v2928_v33  ;;  %v2684_v28 = vsel %vm1125_vm0, %v2664_v35, %v2683_v49  ;;  %v2681_v50 = vrot.slane %v2664_v35, 4  ;;  %v2660_v25 = vperm.slane %v2654_v36, %v4437_v21 }
 0x31e   : > { %3003 = vrot.lane.b32.xlu2 %v2684_v28, %s4010_s9  ;;  %v5757_v39 = vsel %vm1125_vm0, %v2689_v7, %v2652_v42  ;;  %v5760_v9 = vsel %vm1125_vm0, %v2672_v54, %v2687_v16  ;;  %v2685_v23 = vrot.slane %v2672_v54, 4  ;;  %v1677_v49 = vrot.slane %v4880_v56, 4  ;;  %v6662_v7 = vld [vmem:[#allocation62_spill] sm:$0xff]  ;;  %v6663_v54 = vld [vmem:[#allocation64_spill] sm:$0xff]  ;;  %v6665_v28 = vld [vmem:[#allocation63_spill] sm:$0xff] }
 0x31f   : > { %v2682_v46 = vsel %vm1125_vm0, %v2681_v50, %v2640_v43  ;;  %v2680_v2 = vsel %vm1125_vm0, %v2660_v25, %v2679_v60  ;;  %v2677_v11 = vrot.slane %v2660_v25, 4  ;;  %v1185_v43 = vrot.slane %v4366_v38, 4  ;;  %v6664_v60 = vld [vmem:[#allocation61_spill] sm:$0xff] }
 0x320   : > { %2971 = vrot.lane.b32.xlu0 %v2682_v46, %s4009_s30  ;;  %2939 = vrot.lane.b32.xlu1 %v2680_v2, %s4008_s8  ;;  %v5767_v27 = vsel %vm1125_vm0, %v2685_v23, %v2648_v48  ;;  %v1678_v26 = vsel %vm1125_vm0, %v1677_v49, %v4870_v40  ;;  %v1209_v35 = vrot.slane %v4433_v8, 4  ;;  %v2237_v56 = vrot.slane %v5399_v58, 4  ;;  %v2970_v48 = vpop.permute.xlu2 %2969 }
 0x321   : > { %v5771_v42 = vsel %vm1125_vm0, %v2677_v11, %v2636_v45  ;;  %v1186_v45 = vsel %vm1125_vm0, %v1185_v43, %v4351_v34  ;;  %v1769_v58 = vrot.slane %v6663_v54, 4  ;;  %v2529_v46 = vrot.slane %v5426_v41, 4  ;;  %v6666_v11 = vld [vmem:[#allocation12_spill] sm:$0xff] }
 0x322   : > { %v1210_v40 = vsel %vm1125_vm0, %v1209_v35, %v4419_v29  ;;  %v2238_v38 = vsel %vm1125_vm0, %v2237_v56, %v5392_v59  ;;  %v1192_v8 = vperm.slane %v1186_v45, %v4437_v21  ;;  %v2553_v2 = vrot.slane %v5487_v62, 4 }
 0x323   : > { %v1770_v50 = vsel %vm1125_vm0, %v1769_v58, %v6665_v28  ;;  %v2530_v45 = vsel %vm1125_vm0, %v2529_v46, %v5413_v17  ;;  %v6669_v17 = vld [vmem:[#allocation65_spill] sm:$0xff] }
 0x324   : > { %v1231_v33 = vrot.slane %v1192_v8, 4  ;;  %v1776_v23 = vperm.slane %v1770_v50, %v4437_v21  ;;  %v2554_v41 = vsel %vm1125_vm0, %v2553_v2, %v5476_v57  ;;  %v2934_v62 = vpop.permute.xlu1 %2933 }
 0x326   : > { %3025 = vrot.lane.b32.xlu2 %v1678_v26, %s4011_s10  ;;  %v1789_v56 = vrot.slane %v1776_v23, 4 }
 0x328   : > { %2993 = vrot.lane.b32.xlu0 %v4894_v30, %s4010_s9  ;;  %2961 = vrot.lane.b32.xlu1 %v4911_v14, %s4009_s30  ;;  %v1216_v30 = vperm.slane %v1210_v40, %v4437_v21  ;;  %v1745_v14 = vrot.slane %v6662_v7, 4  ;;  %v6668_v7 = vld [vmem:[#allocation89_spill] sm:$0xff] }
 0x32a   : > { %v1229_v36 = vrot.slane %v1216_v30, 4  ;;  %v1746_v16 = vsel %vm1125_vm0, %v1745_v14, %v6664_v60  ;;  %v3402_v14 = vsel %vm3397_vm1, %v6668_v7, %v2934_v62  ;;  %v6677_v62 = vld [vmem:[#allocation26_spill] sm:$0xff]  ;;  %v6679_v7 = vld [vmem:[#allocation87_spill] sm:$0xff] }
 0x32c   : > { %v1230_v25 = vsel %vm1125_vm0, %v1229_v36, %v1192_v8  ;;  %v6667_v8 = vld [vmem:[#allocation23_spill] sm:$0xff] }
 0x32e   : > { %3031 = vrot.lane.b32.xlu2 %v2238_v38, %s4011_s10  ;;  %v2560_v38 = vperm.slane %v2554_v41, %v4437_v21 }
 0x330   : > { %2999 = vrot.lane.b32.xlu0 %v5403_v20, %s4010_s9  ;;  %2967 = vrot.lane.b32.xlu1 %v5416_v3, %s4009_s30  ;;  %v2938_v34 = vpop.permute.xlu0 %2937  ;;  %v1232_v20 = vsel %vm1125_vm0, %v1216_v30, %v1231_v33  ;;  %v2992_v3 = vpop.permute.xlu2 %2991  ;;  %v1321_v30 = vrot.slane %v6667_v8, 4  ;;  %v2573_v60 = vrot.slane %v2560_v38, 4 }
 0x331   : > { %v3404_v29 = vsel %vm3397_vm1, %v5520_v51, %v2938_v34  ;;  %v1752_v51 = vperm.slane %v1746_v16, %v4437_v21  ;;  %v6670_v34 = vld [vmem:[#allocation19_spill] sm:$0xff]  ;;  %v6671_v16 = vld [vmem:[#allocation20_spill] sm:$0xff] }
 0x332   : > { %v5801_v59 = vsel %vm3406_vm2, %v3404_v29, %v2970_v48  ;;  %v1297_v29 = vrot.slane %v6670_v34, 4  ;;  %v1322_v28 = vsel %vm1125_vm0, %v1321_v30, %v6671_v16  ;;  %v6682_v16 = vld [vmem:[#allocation59_spill] sm:$0xff] }
 0x333   : > { %v1791_v35 = vrot.slane %v1752_v51, 4  ;;  %v1790_v48 = vsel %vm1125_vm0, %v1789_v56, %v1752_v51  ;;  %v1328_v51 = vperm.slane %v1322_v28, %v4437_v21  ;;  %v6683_v28 = vld [vmem:[#allocation60_spill] sm:$0xff] }
 0x335   : > { %v1792_v40 = vsel %vm1125_vm0, %v1776_v23, %v1791_v35  ;;  %v6673_v23 = vld [vmem:[#allocation27_spill] sm:$0xff]  ;;  %v1341_v56 = vrot.slane %v1328_v51, 4 }
 0x336   : > { %3053 = vrot.lane.b32.xlu2 %v1232_v20, %s4012_s11  ;;  %v6672_v20 = vld [vmem:[#allocation15_spill] sm:$0xff]  ;;  %v1345_v46 = vrot.slane %v6673_v23, 4  ;;  %v6690_v23 = vld [vmem:[#allocation30_spill] sm:$0xff] }
 0x338   : > { %3021 = vrot.lane.b32.xlu0 %v1230_v25, %s4011_s10  ;;  %2989 = vrot.lane.b32.xlu1 %v6666_v11, %s4010_s9  ;;  %v2960_v49 = vpop.permute.xlu0 %2959  ;;  %v2998_v54 = vpop.permute.xlu2 %2997  ;;  %v6674_v11 = vld [vmem:[#allocation83_spill] sm:$0xff] }
 0x339   : > { %v3408_v26 = vsel %vm3406_vm2, %v3399_v52, %v2960_v49  ;;  %v2536_v52 = vperm.slane %v2530_v45, %v4437_v21  ;;  %v2081_v49 = vrot.slane %v6674_v11, 4  ;;  %v6676_v45 = vld [vmem:[#allocation84_spill] sm:$0xff] }
 0x33a   : > { %v5819_v43 = vsel %vm3415_vm3, %v3408_v26, %v2992_v3  ;;  %v1298_v3 = vsel %vm1125_vm0, %v1297_v29, %v6672_v20  ;;  %v6675_v26 = vld [vmem:[#allocation86_spill] sm:$0xff] }
 0x33b   : > { %v2575_v36 = vrot.slane %v2536_v52, 4  ;;  %v2574_v25 = vsel %vm1125_vm0, %v2573_v60, %v2536_v52  ;;  %v1304_v2 = vperm.slane %v1298_v3, %v4437_v21  ;;  %v2105_v35 = vrot.slane %v6675_v26, 4  ;;  %v6681_v60 = vld [vmem:[#allocation58_spill] sm:$0xff]  ;;  %v6686_v3 = vld [vmem:[#allocation13_spill] sm:$0xff] }
 0x33c   : > { %v6692_v26 = vld [vmem:[#allocation66_spill] sm:$0xff] }
 0x33d   : > { %v2576_v50 = vsel %vm1125_vm0, %v2560_v38, %v2575_v36  ;;  %v2106_v41 = vsel %vm1125_vm0, %v2105_v35, %v6676_v45  ;;  %v1342_v8 = vsel %vm1125_vm0, %v1341_v56, %v1304_v2  ;;  %v6693_v35 = vld [vmem:[#allocation67_spill] sm:$0xff]  ;;  %v2789_v56 = vrot.slane %v5602_v12, 4  ;;  %v6694_v45 = vld [vmem:[#allocation25_spill] sm:$0xff] }
 0x33e   : > { %3059 = vrot.lane.b32.xlu2 %v1792_v40, %s4012_s11  ;;  %v1346_v40 = vsel %vm1125_vm0, %v1345_v46, %v6677_v62  ;;  %v2112_v30 = vperm.slane %v2106_v41, %v4437_v21  ;;  %v1509_v46 = vrot.slane %v6690_v23, 4  ;;  %v6695_v62 = vld [vmem:[#allocation36_spill] sm:$0xff] }
 0x33f   : > { %v6702_v23 = vld [vmem:[#allocation88_spill] sm:$0xff] }
 0x340   : > { %3027 = vrot.lane.b32.xlu0 %v1790_v48, %s4011_s10  ;;  %2995 = vrot.lane.b32.xlu1 %v6669_v17, %s4010_s9  ;;  %v2966_v57 = vpop.permute.xlu0 %2965  ;;  %v1343_v48 = vrot.slane %v1304_v2, 4  ;;  %v6691_v2 = vld [vmem:[#allocation38_spill] sm:$0xff]  ;;  %v1510_v41 = vsel %vm1125_vm0, %v1509_v46, %v6694_v45 }
 0x341   : > { %v3411_v58 = vsel %vm3406_vm2, %v3402_v14, %v2966_v57  ;;  %v2129_v14 = vrot.slane %v6679_v7, 4  ;;  %v2125_v57 = vrot.slane %v2112_v30, 4  ;;  %v1533_v11 = vrot.slane %v6691_v2, 4 }
 0x342   : > { %v5839_v33 = vsel %vm3415_vm3, %v3411_v58, %v2998_v54  ;;  %v1344_v38 = vsel %vm1125_vm0, %v1328_v51, %v1343_v48  ;;  %v6680_v54 = vld [vmem:[#allocation85_spill] sm:$0xff]  ;;  %v6689_v51 = vld [vmem:[#allocation71_spill] sm:$0xff]  ;;  %v2790_v48 = vsel %vm1125_vm0, %v2789_v56, %v5587_v63  ;;  %v6698_v63 = vld [vmem:[#allocation80_spill] sm:$0xff] }
 0x343   : > { %v2130_v58 = vsel %vm1125_vm0, %v2129_v14, %v6680_v54  ;;  %v6699_v54 = vld [vmem:[#allocation90_spill] sm:$0xff] }
 0x346   : > { %3065 = vrot.lane.b32.xlu2 %v2576_v50, %s4012_s11 }
 0x348   : > { %3033 = vrot.lane.b32.xlu0 %v2574_v25, %s4011_s10  ;;  %3001 = vrot.lane.b32.xlu1 %v5503_v37, %s4010_s9  ;;  %v6678_v37 = vld [vmem:[#allocation82_spill] sm:$0xff]  ;;  %s3596_s9 = scalar_lea.hbm %s6444_s3, %s3721_s24 }
 0x349   : > { %v2082_v52 = vsel %vm1125_vm0, %v2081_v49, %v6678_v37  ;;  %v6688_v25 = vld [vmem:[#allocation74_spill] sm:$0xff]  ;;  %v1516_v37 = vperm.slane %v1510_v41, %v4437_v21 }
 0x34a   : > { %v2088_v17 = vperm.slane %v2082_v52, %v4437_v21  ;;  %v6705_v41 = vld [vmem:[#allocation46_spill] sm:$0xff] }
 0x34b   : > { %v1559_v14 = vrot.slane %v1516_v37, 4 }
 0x34c   : > { %v2127_v34 = vrot.slane %v2088_v17, 4  ;;  %v2126_v36 = vsel %vm1125_vm0, %v2125_v57, %v2088_v17 }
 0x34e   : > { %3087 = vrot.lane.b32.xlu2 %v1346_v40, %s4013_s12  ;;  %v2128_v29 = vsel %vm1125_vm0, %v2112_v30, %v2127_v34  ;;  %v1534_v40 = vsel %vm1125_vm0, %v1533_v11, %v6695_v62  ;;  %v6697_v30 = vld [vmem:[#allocation91_spill] sm:$0xff] }
 0x34f   : > { %v1540_v52 = vperm.slane %v1534_v40, %v4437_v21  ;;  %v2317_v7 = vrot.slane %v6697_v30, 4 }
 0x350   : > { %3055 = vrot.lane.b32.xlu0 %v1344_v38, %s4012_s11  ;;  %3023 = vrot.lane.b32.xlu1 %v1342_v8, %s4011_s10  ;;  %v6696_v38 = vld [vmem:[#allocation81_spill] sm:$0xff] }
 0x351   : > { %v2293_v8 = vrot.slane %v6696_v38, 4  ;;  %v1557_v17 = vrot.slane %v1540_v52, 4  ;;  %v1560_v34 = vsel %vm1125_vm0, %v1540_v52, %v1559_v14 }
 0x353   : > { %v2294_v57 = vsel %vm1125_vm0, %v2293_v8, %v6698_v63  ;;  %v6708_v8 = vld [vmem:[#allocation102_spill] sm:$0xff] }
 0x356   : > { %3093 = vrot.lane.b32.xlu2 %v2130_v58, %s4013_s12  ;;  %v2318_v58 = vsel %vm1125_vm0, %v2317_v7, %v6699_v54  ;;  %v6710_v54 = vld [vmem:[#allocation52_spill] sm:$0xff] }
 0x358   : > { %3061 = vrot.lane.b32.xlu0 %v2128_v29, %s4012_s11  ;;  %3029 = vrot.lane.b32.xlu1 %v2126_v36, %s4011_s10  ;;  %v1558_v29 = vsel %vm1125_vm0, %v1557_v17, %v1516_v37  ;;  %v2324_v36 = vperm.slane %v2318_v58, %v4437_v21 }
 0x35e   : > { %3099 = vrot.lane.b32.xlu2 %v5757_v39, %s4013_s12  ;;  %v6684_v39 = vld [vmem:[#allocation24_spill] sm:$0xff] }
 0x360   : > { %3067 = vrot.lane.b32.xlu0 %v5760_v9, %s4012_s11  ;;  %3035 = vrot.lane.b32.xlu1 %v5767_v27, %s4011_s10  ;;  %v1445_v9 = vrot.slane %v6684_v39, 4  ;;  %v6685_v27 = vld [vmem:[#allocation22_spill] sm:$0xff] }
 0x362   : > { %v1446_v50 = vsel %vm1125_vm0, %v1445_v9, %v6685_v27  ;;  %v2341_v27 = vrot.slane %v2324_v36, 4 }
 0x366   : > { %3121 = vrot.lane.b32.xlu2 %v6681_v60, %s4014_s13  ;;  %v6700_v60 = vld [vmem:[#allocation32_spill] sm:$0xff] }
 0x368   : > { %3089 = vrot.lane.b32.xlu0 %v6682_v16, %s4013_s12  ;;  %3057 = vrot.lane.b32.xlu1 %v6683_v28, %s4012_s11 }
 0x36e   : > { %3127 = vrot.lane.b32.xlu2 %v5406_v4, %s4014_s13  ;;  %v6687_v4 = vld [vmem:[#allocation14_spill] sm:$0xff] }
 0x370   : > { %3095 = vrot.lane.b32.xlu0 %v5431_v44, %s4013_s12  ;;  %3063 = vrot.lane.b32.xlu1 %v5423_v18, %s4012_s11  ;;  %v2005_v44 = vrot.slane %v6688_v25, 4  ;;  %s3597_s11 = sshll.u32 %s6312_s7, 4  ;;  %s3598_s11 = int_to_ptr.vmem [resolvable:$true] %s3597_s11 }
 0x372   : > { %v2006_v18 = vsel %vm1125_vm0, %v2005_v44, %v6689_v51  ;;  %v6701_v44 = vld [vmem:[#allocation50_spill] sm:$0xff] }
 0x373   : > { %v1869_v51 = vrot.slane %v6701_v44, 4 }
 0x376   : > { %3149 = vrot.lane.b32.xlu2 %v1446_v50, %s4015_s14 }
 0x378   : > { %v3004_v20 = vpop.permute.xlu2 %3003  ;;  %3117 = vrot.lane.b32.xlu0 %v6686_v3, %s4014_s13  ;;  %3085 = vrot.lane.b32.xlu1 %v6687_v4, %s4013_s12 }
 0x37e   : > { %3155 = vrot.lane.b32.xlu2 %v2006_v18, %s4015_s14 }
 0x380   : > { %v3026_v49 = vpop.permute.xlu2 %3025  ;;  %3123 = vrot.lane.b32.xlu0 %v6692_v26, %s4014_s13  ;;  %3091 = vrot.lane.b32.xlu1 %v6693_v35, %s4013_s12  ;;  %v6704_v26 = vld [vmem:[#allocation49_spill] sm:$0xff] }
 0x381   : > { %v1870_v35 = vsel %vm1125_vm0, %v1869_v51, %v6704_v26  ;;  %v6713_v26 = vld [vmem:[#allocation28_spill] sm:$0xff] }
 0x382   : > { %v1876_v40 = vperm.slane %v1870_v35, %v4437_v21 }
 0x384   : > { %v1893_v17 = vrot.slane %v1876_v40, 4 }
 0x386   : > { %3161 = vrot.lane.b32.xlu2 %v2790_v48, %s4015_s14  ;;  %v6706_v48 = vld [vmem:[#allocation106_spill] sm:$0xff] }
 0x387   : > { %v2429_v37 = vrot.slane %v6706_v48, 4 }
 0x388   : > { %v3032_v12 = vpop.permute.xlu2 %3031  ;;  %3129 = vrot.lane.b32.xlu0 %v5513_v0, %s4014_s13  ;;  %3097 = vrot.lane.b32.xlu1 %v5523_v10, %s4013_s12  ;;  %v2300_v0 = vperm.slane %v2294_v57, %v4437_v21  ;;  %v6709_v57 = vld [vmem:[#allocation103_spill] sm:$0xff]  ;;  %s3599_s12 = sshll.u32 %s3596_s9, 4  ;;  %s3600_s12 = int_to_ptr.hbm [resolvable:$true] %s3599_s12 }
 0x38a   : > { %v2343_v9 = vrot.slane %v2300_v0, 4  ;;  %v2342_v25 = vsel %vm1125_vm0, %v2341_v27, %v2300_v0 }
 0x38c   : > { %v2344_v3 = vsel %vm1125_vm0, %v2324_v36, %v2343_v9 }
 0x38e   : > { %3183 = vrot.lane.b32.xlu2 %v1560_v34, %s4016_s15 }
 0x390   : > { %v5938_v10 = vpop.permute.xlu2 %3053  ;;  %3119 = vrot.lane.b32.xlu1 %v6700_v60, %s4014_s13  ;;  %3151 = vrot.lane.b32.xlu0 %v1558_v29, %s4015_s14  ;;  %v6711_v29 = vld [vmem:[#allocation101_spill] sm:$0xff] }
 0x392   : > { %v2940_v16 = vpop.permute.xlu1 %2939  ;;  %v2972_v28 = vpop.permute.xlu0 %2971 }
 0x393   : > { %v3405_v39 = vsel %vm3397_vm1, %v5771_v42, %v2940_v16  ;;  %v6703_v42 = vld [vmem:[#allocation48_spill] sm:$0xff]  ;;  %vm3573_vm1 = vcmask 523520  }
 0x394   : > { %v3414_v50 = vsel %vm3406_vm2, %v3405_v39, %v2972_v28  ;;  %v1845_v46 = vrot.slane %v6703_v42, 4 }
 0x395   : > { %v5948_v4 = vsel %vm3415_vm3, %v3414_v50, %v3004_v20 }
 0x396   : > { %3189 = vrot.lane.b32.xlu2 %v2344_v3, %s4016_s15  ;;  %v1846_v62 = vsel %vm1125_vm0, %v1845_v46, %v6705_v41  ;;  %v6715_v41 = vld [vmem:[#allocation34_spill] sm:$0xff] }
 0x397   : > { %v1852_v38 = vperm.slane %v1846_v62, %v4437_v21 }
 0x398   : > { %v3060_v18 = vpop.permute.xlu2 %3059  ;;  %3125 = vrot.lane.b32.xlu1 %v6702_v23, %s4014_s13  ;;  %3157 = vrot.lane.b32.xlu0 %v2342_v25, %s4015_s14  ;;  %v6712_v25 = vld [vmem:[#allocation105_spill] sm:$0xff] }
 0x399   : > { %v1895_v58 = vrot.slane %v1852_v38, 4 }
 0x39a   : > { %v2962_v2 = vpop.permute.xlu1 %2961  ;;  %v2994_v11 = vpop.permute.xlu0 %2993 }
 0x39b   : > { %v3409_v20 = vsel %vm3406_vm2, %v5658_v32, %v2962_v2  ;;  %v6707_v32 = vld [vmem:[#allocation54_spill] sm:$0xff]  ;;  %v1896_v36 = vsel %vm1125_vm0, %v1876_v40, %v1895_v58 }
 0x39c   : > { %v3418_v56 = vsel %vm3415_vm3, %v3409_v20, %v2994_v11 }
 0x39d   : > { %v5963_v45 = vsel %vm3424_vm4, %v3418_v56, %v3026_v49  ;;  %v1897_v49 = vrot.slane %v6707_v32, 4  ;;  %v6714_v56 = vld [vmem:[#allocation29_spill] sm:$0xff] }
 0x39e   : > { %3195 = vrot.lane.b32.xlu2 %v5672_v6, %s4016_s15  ;;  %v2405_v6 = vrot.slane %v6708_v8, 4 }
 0x3a0   : > { %v3066_v52 = vpop.permute.xlu2 %3065  ;;  %3131 = vrot.lane.b32.xlu1 %v5748_v53, %s4014_s13  ;;  %3163 = vrot.lane.b32.xlu0 %v5683_v61, %s4015_s14  ;;  %v2430_v53 = vsel %vm1125_vm0, %v2429_v37, %v6709_v57  ;;  %v1898_v61 = vsel %vm1125_vm0, %v1897_v49, %v6710_v54  ;;  %v2406_v0 = vsel %vm1125_vm0, %v2405_v6, %v6711_v29  ;;  %v6716_v37 = vld [vmem:[#allocation78_spill] sm:$0xff]  ;;  %v6717_v49 = vld [vmem:[#allocation76_spill] sm:$0xff]  ;;  %v6722_v57 = vld [vmem:[#allocation39_spill] sm:$0xff]  ;;  %s3583_s13 = scalar_lea.sflag [#allocation7], %s4125_s19 }
 0x3a1   : > { %v2436_v60 = vperm.slane %v2430_v53, %v4437_v21  ;;  %v2412_v28 = vperm.slane %v2406_v0, %v4437_v21  ;;  %v1565_v53 = vrot.slane %v6722_v57, 4  ;;  %v6723_v29 = vld [vmem:[#allocation37_spill] sm:$0xff]  ;;  %v6737_v57 = vld [vmem:[#allocation104_spill] sm:$0xff] }
 0x3a2   : > { %v2968_v30 = vpop.permute.xlu1 %2967  ;;  %v3000_v7 = vpop.permute.xlu0 %2999 }
 0x3a3   : > { %v3412_v14 = vsel %vm3406_vm2, %v5680_v5, %v2968_v30  ;;  %v1894_v5 = vsel %vm1125_vm0, %v1893_v17, %v1852_v38  ;;  %v2453_v50 = vrot.slane %v2436_v60, 4  ;;  %v2455_v51 = vrot.slane %v2412_v28, 4  ;;  %v6718_v38 = vld [vmem:[#allocation79_spill] sm:$0xff] }
 0x3a4   : > { %v3421_v63 = vsel %vm3415_vm3, %v3412_v14, %v3000_v7  ;;  %v6719_v7 = vld [vmem:[#allocation118_spill] sm:$0xff]  ;;  %v6720_v17 = vld [vmem:[#allocation119_spill] sm:$0xff]  ;;  %v1566_v0 = vsel %vm1125_vm0, %v1565_v53, %v6723_v29 }
 0x3a5   : > { %v5986_v34 = vsel %vm3424_vm4, %v3421_v63, %v3032_v12  ;;  %v2457_v12 = vrot.slane %v5336_v55, 4  ;;  %v2454_v55 = vsel %vm1125_vm0, %v2453_v50, %v2412_v28  ;;  %v2456_v42 = vsel %vm1125_vm0, %v2436_v60, %v2455_v51  ;;  %v6721_v63 = vld [vmem:[#allocation120_spill] sm:$0xff]  ;;  %v6739_v29 = vld [vmem:[#allocation18_spill] sm:$0xff] }
 0x3a6   : > { %3217 = vrot.lane.b32.xlu2 %v1898_v61, %s4017_s16  ;;  %v6724_v60 = vld [vmem:[#allocation44_spill] sm:$0xff] }
 0x3a7   : > { %v2458_v44 = vsel %vm1125_vm0, %v2457_v12, %v6712_v25  ;;  %v6726_v12 = vld [vmem:[#allocation93_spill] sm:$0xff]  ;;  %v6727_v50 = vld [vmem:[#allocation92_spill] sm:$0xff] }
 0x3a8   : > { %v3088_v16 = vpop.permute.xlu2 %3087  ;;  %3153 = vrot.lane.b32.xlu1 %v1894_v5, %s4015_s14  ;;  %3185 = vrot.lane.b32.xlu0 %v1896_v36, %s4016_s15 }
 0x3aa   : > { %v2990_v39 = vpop.permute.xlu1 %2989  ;;  %v3022_v9 = vpop.permute.xlu0 %3021 }
 0x3ab   : > { %v3416_v27 = vsel %vm3415_vm3, %v5715_v13, %v2990_v39 }
 0x3ac   : > { %v3425_v3 = vsel %vm3424_vm4, %v3416_v27, %v3022_v9 }
 0x3ad   : > { %v6005_v23 = vsel %vm3433_vm5, %v3425_v3, %v5938_v10 }
 0x3ae   : > { %3223 = vrot.lane.b32.xlu2 %v2458_v44, %s4017_s16  ;;  %v6728_v44 = vld [vmem:[#allocation47_spill] sm:$0xff] }
 0x3af   : > { %v1857_v51 = vrot.slane %v6728_v44, 4 }
 0x3b0   : > { %v3094_v46 = vpop.permute.xlu2 %3093  ;;  %3159 = vrot.lane.b32.xlu1 %v2454_v55, %s4015_s14  ;;  %3191 = vrot.lane.b32.xlu0 %v2456_v42, %s4016_s15  ;;  %v6729_v55 = vld [vmem:[#allocation53_spill] sm:$0xff]  ;;  %s3930_s14 = sshra.s32 %s3600_s12, 4  ;;  %s3931_s14 = int_to_ptr.hbm [resolvable:$true] %s3930_s14 }
 0x3b1   : > { %v1881_v42 = vrot.slane %v6729_v55, 4  ;;  %p3937_p7 = scmp.lt.s32.totalorder %s3931_s14, %s6444_s3 }
 0x3b2   : > { %v2996_v13 = vpop.permute.xlu1 %2995  ;;  %v3028_v2 = vpop.permute.xlu0 %3027 }
 0x3b3   : > { %v3419_v11 = vsel %vm3415_vm3, %v5729_v31, %v2996_v13  ;;  %v6730_v13 = vld [vmem:[#allocation97_spill] sm:$0xff] }
 0x3b4   : > { %v3428_v20 = vsel %vm3424_vm4, %v3419_v11, %v3028_v2 }
 0x3b5   : > { %v6016_v10 = vsel %vm3433_vm5, %v3428_v20, %v3060_v18 }
 0x3b6   : > { %3245 = vrot.lane.b32.xlu2 %v6713_v26, %s4018_s17 }
 0x3b8   : > { %v3100_v35 = vpop.permute.xlu2 %3099  ;;  %3181 = vrot.lane.b32.xlu1 %v6714_v56, %s4016_s15  ;;  %3213 = vrot.lane.b32.xlu0 %v6715_v41, %s4017_s16  ;;  %v6733_v41 = vld [vmem:[#allocation51_spill] sm:$0xff] }
 0x3ba   : > { %v3002_v62 = vpop.permute.xlu1 %3001  ;;  %v3034_v40 = vpop.permute.xlu0 %3033 }
 0x3bb   : > { %v3422_v31 = vsel %vm3415_vm3, %v5801_v59, %v3002_v62  ;;  %v1882_v62 = vsel %vm1125_vm0, %v1881_v42, %v6733_v41 }
 0x3bc   : > { %v3431_v48 = vsel %vm3424_vm4, %v3422_v31, %v3034_v40 }
 0x3bd   : > { %v6028_v18 = vsel %vm3433_vm5, %v3431_v48, %v3066_v52  ;;  %v1888_v48 = vperm.slane %v1882_v62, %v4437_v21 }
 0x3be   : > { %3251 = vrot.lane.b32.xlu2 %v6716_v37, %s4018_s17  ;;  %v6734_v37 = vld [vmem:[#allocation99_spill] sm:$0xff] }
 0x3c0   : > { %v3122_v32 = vpop.permute.xlu2 %3121  ;;  %3187 = vrot.lane.b32.xlu1 %v6717_v49, %s4016_s15  ;;  %3219 = vrot.lane.b32.xlu0 %v6718_v38, %s4017_s16  ;;  %v6735_v49 = vld [vmem:[#allocation107_spill] sm:$0xff] }
 0x3c1   : > { %v2441_v38 = vrot.slane %v6735_v49, 4 }
 0x3c2   : > { %v3024_v8 = vpop.permute.xlu1 %3023  ;;  %v3056_v6 = vpop.permute.xlu0 %3055 }
 0x3c3   : > { %v3426_v59 = vsel %vm3424_vm4, %v5819_v43, %v3024_v8  ;;  %v2442_v53 = vsel %vm1125_vm0, %v2441_v38, %v6737_v57  ;;  %v6748_v38 = vld [vmem:[#allocation31_spill] sm:$0xff] }
 0x3c4   : > { %v3435_v30 = vsel %vm3433_vm5, %v3426_v59, %v3056_v6 }
 0x3c5   : > { %v6040_v52 = vsel %vm3442_vm6, %v3435_v30, %v3088_v16  ;;  %v6725_v16 = vld [vmem:[#allocation41_spill] sm:$0xff]  ;;  %v1901_v30 = vrot.slane %v1888_v48, 4 }
 0x3c6   : > { %3257 = vrot.lane.b32.xlu2 %v6719_v7, %s4018_s17 }
 0x3c8   : > { %v3128_v14 = vpop.permute.xlu2 %3127  ;;  %3193 = vrot.lane.b32.xlu1 %v6720_v17, %s4016_s15  ;;  %3225 = vrot.lane.b32.xlu0 %v6721_v63, %s4017_s16  ;;  %v6736_v17 = vld [vmem:[#allocation96_spill] sm:$0xff]  ;;  %s3932_s15 = scalar_lea.hbm %s3931_s14, 64 }
 0x3c9   : > { %p3933_p4 = scmp.ne.s32.totalorder %s3931_s14, %s3932_s15 }
 0x3ca   : > { %v3030_v54 = vpop.permute.xlu1 %3029  ;;  %v3062_v61 = vpop.permute.xlu0 %3061 }
 0x3cb   : > { %v3429_v43 = vsel %vm3424_vm4, %v5839_v33, %v3030_v54  ;;  %v2349_v33 = vrot.slane %v6726_v12, 4  ;;  %p3934_p5 = pnand %p3933_p4, %p4102_p9 }
 0x3cc   : > { %v3438_v58 = vsel %vm3433_vm5, %v3429_v43, %v3062_v61  ;;  %v2448_v61 = vperm.slane %v2442_v53, %v4437_v21 }
 0x3cd   : > { %v6055_v5 = vsel %vm3442_vm6, %v3438_v58, %v3094_v46  ;;  %v2350_v3 = vsel %vm1125_vm0, %v2349_v33, %v6727_v50  ;;  %v6738_v58 = vld [vmem:[#allocation55_spill] sm:$0xff]  ;;  %p3935_p6 = pneg %p3934_p5 }
 0x3ce   : > { %3279 = vrot.lane.b32.xlu2 %v1566_v0, %s4019_s18  ;;  %v1433_v0 = vrot.slane %v6739_v29, 4  ;;  %v2461_v33 = vrot.slane %v2448_v61, 4 }
 0x3d0   : > { %v3150_v36 = vpop.permute.xlu2 %3149  ;;  %3215 = vrot.lane.b32.xlu1 %v6724_v60, %s4017_s16  ;;  %3247 = vrot.lane.b32.xlu0 %v6725_v16, %s4018_s17 }
 0x3d2   : > { %v3036_v28 = vpop.permute.xlu1 %3035  ;;  %v3068_v39 = vpop.permute.xlu0 %3067 }
 0x3d3   : > { %v3432_v9 = vsel %vm3424_vm4, %v5948_v4, %v3036_v28  ;;  %v6731_v4 = vld [vmem:[#allocation94_spill] sm:$0xff]  ;;  %v6740_v28 = vld [vmem:[#allocation16_spill] sm:$0xff] }
 0x3d4   : > { %v3441_v27 = vsel %vm3433_vm5, %v3432_v9, %v3068_v39  ;;  %v1409_v39 = vrot.slane %v6740_v28, 4  ;;  %v6741_v9 = vld [vmem:[#allocation21_spill] sm:$0xff] }
 0x3d5   : > { %v6069_v25 = vsel %vm3442_vm6, %v3441_v27, %v3100_v35  ;;  %v6732_v35 = vld [vmem:[#allocation45_spill] sm:$0xff]  ;;  %v1434_v27 = vsel %vm1125_vm0, %v1433_v0, %v6741_v9  ;;  %v6752_v0 = vld [vmem:[#allocation112_spill] sm:$0xff] }
 0x3d6   : > { %3285 = vrot.lane.b32.xlu2 %v2350_v3, %s4019_s18  ;;  %v1858_v56 = vsel %vm1125_vm0, %v1857_v51, %v6732_v35  ;;  %v6742_v51 = vld [vmem:[#allocation17_spill] sm:$0xff]  ;;  %v1440_v42 = vperm.slane %v1434_v27, %v4437_v21  ;;  %v6755_v27 = vld [vmem:[#allocation111_spill] sm:$0xff] }
 0x3d7   : > { %v1864_v31 = vperm.slane %v1858_v56, %v4437_v21  ;;  %v1410_v55 = vsel %vm1125_vm0, %v1409_v39, %v6742_v51  ;;  %v6746_v35 = vld [vmem:[#allocation73_spill] sm:$0xff] }
 0x3d8   : > { %v6074_v46 = vpop.permute.xlu2 %3155  ;;  %3221 = vrot.lane.b32.xlu1 %v6730_v13, %s4017_s16  ;;  %3253 = vrot.lane.b32.xlu0 %v6731_v4, %s4018_s17  ;;  %v6743_v4 = vld [vmem:[#allocation108_spill] sm:$0xff]  ;;  %v1993_v56 = vrot.slane %v6746_v35, 4 }
 0x3d9   : > { %v1903_v59 = vrot.slane %v1864_v31, 4 }
 0x3da   : > { %v3058_v2 = vpop.permute.xlu1 %3057  ;;  %v3090_v11 = vpop.permute.xlu0 %3089 }
 0x3db   : > { %v3436_v20 = vsel %vm3433_vm5, %v5963_v45, %v3058_v2  ;;  %v2417_v45 = vrot.slane %v6734_v37, 4  ;;  %v6744_v2 = vld [vmem:[#allocation33_spill] sm:$0xff]  ;;  %v6747_v37 = vld [vmem:[#allocation70_spill] sm:$0xff] }
 0x3dc   : > { %v3445_v26 = vsel %vm3442_vm6, %v3436_v20, %v3090_v11  ;;  %v1457_v11 = vrot.slane %v6744_v2, 4  ;;  %v6745_v20 = vld [vmem:[#allocation69_spill] sm:$0xff] }
 0x3dd   : > { %v6088_v40 = vsel %vm3451_vm7, %v3445_v26, %v3122_v32  ;;  %v2418_v63 = vsel %vm1125_vm0, %v2417_v45, %v6736_v17  ;;  %v1969_v26 = vrot.slane %v6745_v20, 4  ;;  %v1994_v45 = vsel %vm1125_vm0, %v1993_v56, %v6747_v37 }
 0x3de   : > { %3291 = vrot.lane.b32.xlu2 %v5693_v24, %s4019_s18  ;;  %v2000_v17 = vperm.slane %v1994_v45, %v4437_v21 }
 0x3e0   : > { %v6096_v8 = vpop.permute.xlu2 %3161  ;;  %3227 = vrot.lane.b32.xlu1 %v5696_v47, %s4017_s16  ;;  %3259 = vrot.lane.b32.xlu0 %v5686_v1, %s4018_s17  ;;  %v1904_v47 = vsel %vm1125_vm0, %v1888_v48, %v1903_v59  ;;  %v1902_v1 = vsel %vm1125_vm0, %v1901_v30, %v1864_v31  ;;  %v1453_v48 = vrot.slane %v1440_v42, 4  ;;  %v6749_v59 = vld [vmem:[#allocation68_spill] sm:$0xff]  ;;  %v2013_v29 = vrot.slane %v2000_v17, 4 }
 0x3e2   : > { %v3064_v32 = vpop.permute.xlu1 %3063  ;;  %v3096_v6 = vpop.permute.xlu0 %3095 }
 0x3e3   : > { %v3439_v24 = vsel %vm3433_vm5, %v5986_v34, %v3064_v32  ;;  %v2424_v34 = vperm.slane %v2418_v63, %v4437_v21  ;;  %v1458_v32 = vsel %vm1125_vm0, %v1457_v11, %v6748_v38  ;;  %v6750_v63 = vld [vmem:[#allocation115_spill] sm:$0xff]  ;;  %v6759_v38 = vld [vmem:[#allocation42_spill] sm:$0xff] }
 0x3e4   : > { %v3448_v7 = vsel %vm3442_vm6, %v3439_v24, %v3096_v6  ;;  %v2777_v57 = vrot.slane %v6750_v63, 4  ;;  %v6763_v63 = vld [vmem:[#allocation100_spill] sm:$0xff] }
 0x3e5   : > { %v6111_v54 = vsel %vm3451_vm7, %v3448_v7, %v3128_v14  ;;  %v2463_v12 = vrot.slane %v2424_v34, 4 }
 0x3e6   : > { %3313 = vrot.lane.b32.xlu2 %v1904_v47, %s4020_s25 }
 0x3e7   : > { %v2464_v3 = vsel %vm1125_vm0, %v2448_v61, %v2463_v12 }
 0x3e8   : > { %v6117_v43 = vpop.permute.xlu2 %3183  ;;  %3249 = vrot.lane.b32.xlu1 %v6738_v58, %s4018_s17  ;;  %3281 = vrot.lane.b32.xlu0 %v1902_v1, %s4019_s18 }
 0x3ea   : > { %v3086_v14 = vpop.permute.xlu1 %3085  ;;  %v3118_v60 = vpop.permute.xlu0 %3117 }
 0x3eb   : > { %v3443_v16 = vsel %vm3442_vm6, %v6005_v23, %v3086_v14  ;;  %v2462_v23 = vsel %vm1125_vm0, %v2461_v33, %v2424_v34  ;;  %v2753_v14 = vrot.slane %v6752_v0, 4  ;;  %v6754_v33 = vld [vmem:[#allocation72_spill] sm:$0xff] }
 0x3ec   : > { %v3452_v50 = vsel %vm3451_vm7, %v3443_v16, %v3118_v60  ;;  %v6753_v16 = vld [vmem:[#allocation113_spill] sm:$0xff] }
 0x3ed   : > { %v6131_v44 = vsel %vm3460_vm8, %v3452_v50, %v3150_v36  ;;  %v1416_v36 = vperm.slane %v1410_v55, %v4437_v21  ;;  %v2778_v12 = vsel %vm1125_vm0, %v2777_v57, %v6753_v16 }
 0x3ee   : > { %3319 = vrot.lane.b32.xlu2 %v2464_v3, %s4020_s25  ;;  %v2784_v51 = vperm.slane %v2778_v12, %v4437_v21 }
 0x3ef   : > { %v1455_v6 = vrot.slane %v1416_v36, 4  ;;  %v1454_v30 = vsel %vm1125_vm0, %v1453_v48, %v1416_v36 }
 0x3f0   : > { %v6138_v13 = vpop.permute.xlu2 %3189  ;;  %3255 = vrot.lane.b32.xlu1 %v6743_v4, %s4018_s17  ;;  %3287 = vrot.lane.b32.xlu0 %v2462_v23, %s4019_s18  ;;  %v6756_v23 = vld [vmem:[#allocation116_spill] sm:$0xff]  ;;  %v2797_v36 = vrot.slane %v2784_v51, 4  ;;  %s3936_s17 = scalar_lea.hbm %s6444_s3, 128 }
 0x3f1   : > { %v1456_v7 = vsel %vm1125_vm0, %v1440_v42, %v1455_v6  ;;  %v2801_v42 = vrot.slane %v6756_v23, 4  ;;  %p3938_p8 = scmp.lt.s32.totalorder %s3936_s17, %s3932_s15 }
 0x3f2   : > { %v3092_v41 = vpop.permute.xlu1 %3091  ;;  %v3124_v62 = vpop.permute.xlu0 %3123 }
 0x3f3   : > { %v3446_v31 = vsel %vm3442_vm6, %v6016_v10, %v3092_v41  ;;  %v1970_v10 = vsel %vm1125_vm0, %v1969_v26, %v6749_v59  ;;  %v6757_v26 = vld [vmem:[#allocation114_spill] sm:$0xff]  ;;  %p3939_p10 = por %p3938_p8, %p3937_p7 }
 0x3f4   : > { %v3455_v49 = vsel %vm3451_vm7, %v3446_v31, %v3124_v62  ;;  %v1976_v1 = vperm.slane %v1970_v10, %v4437_v21  ;;  %v2802_v35 = vsel %vm1125_vm0, %v2801_v42, %v6757_v26 }
 0x3f5   : > { %v6156_v24 = vsel %vm3460_vm8, %v3455_v49, %v6074_v46  ;;  %v6751_v46 = vld [vmem:[#allocation75_spill] sm:$0xff]  ;;  %v6758_v49 = vld [vmem:[#allocation40_spill] sm:$0xff]  ;;  %p3940_p13 = pnand %p3939_p10, %p3935_p6 }
 0x3f6   : > { %3341 = vrot.lane.b32.xlu2 %v1458_v32, %s4021_s27  ;;  %v2017_v47 = vrot.slane %v6751_v46, 4  ;;  %v2015_v39 = vrot.slane %v1976_v1, 4  ;;  %v2014_v50 = vsel %vm1125_vm0, %v2013_v29, %v1976_v1  ;;  %v6760_v32 = vld [vmem:[#allocation43_spill] sm:$0xff] }
 0x3f8   : > { %3277 = vrot.lane.b32.xlu1 %v1454_v30, %s4019_s18  ;;  %v3196_v53 = vpop.permute.xlu2 %3195  ;;  %3309 = vrot.lane.b32.xlu0 %v1456_v7, %s4020_s25  ;;  %v2018_v28 = vsel %vm1125_vm0, %v2017_v47, %v6754_v33  ;;  %v2016_v3 = vsel %vm1125_vm0, %v2000_v17, %v2015_v39  ;;  %v6761_v7 = vld [vmem:[#allocation95_spill] sm:$0xff]  ;;  %v6762_v17 = vld [vmem:[#allocation98_spill] sm:$0xff] }
 0x3f9   : > { %v6766_v33 = vld [vmem:[#allocation110_spill] sm:$0xff] }
 0x3fa   : > { %v3098_v34 = vpop.permute.xlu1 %3097  ;;  %v3130_v61 = vpop.permute.xlu0 %3129 }
 0x3fb   : > { %v3449_v58 = vsel %vm3442_vm6, %v6028_v18, %v3098_v34  ;;  %v2754_v18 = vsel %vm1125_vm0, %v2753_v14, %v6755_v27  ;;  %v6764_v14 = vld [vmem:[#allocation57_spill] sm:$0xff] }
 0x3fc   : > { %v3458_v60 = vsel %vm3451_vm7, %v3449_v58, %v3130_v61 }
 0x3fd   : > { %v6179_v9 = vsel %vm3460_vm8, %v3458_v60, %v6096_v8  ;;  %v2760_v8 = vperm.slane %v2754_v18, %v4437_v21 }
 0x3fe   : > { %3347 = vrot.lane.b32.xlu2 %v2018_v28, %s4021_s27  ;;  %v6767_v28 = vld [vmem:[#allocation109_spill] sm:$0xff] }
 0x3ff   : > { %v2799_v56 = vrot.slane %v2760_v8, 4  ;;  %v2798_v21 = vsel %vm1125_vm0, %v2797_v36, %v2760_v8 }
 0x400   : > { %3283 = vrot.lane.b32.xlu1 %v2014_v50, %s4019_s18  ;;  %v3218_v55 = vpop.permute.xlu2 %3217  ;;  %3315 = vrot.lane.b32.xlu0 %v2016_v3, %s4020_s25  ;;  %v6768_v3 = vld [vmem:[#allocation35_spill] sm:$0xff] }
 0x401   : > { %v2800_v62 = vsel %vm1125_vm0, %v2784_v51, %v2799_v56  ;;  %vm3532_vm0 = vcmask 261120  }
 0x402   : > { %v3120_v4 = vpop.permute.xlu1 %3119  ;;  %v3152_v2 = vpop.permute.xlu0 %3151 }
 0x403   : > { %v3453_v11 = vsel %vm3451_vm7, %v6040_v52, %v3120_v4 }
 0x404   : > { %v3462_v20 = vsel %vm3460_vm8, %v3453_v11, %v3152_v2 }
 0x405   : > { %v6198_v41 = vsel %vm3469_vm9, %v3462_v20, %v6117_v43  ;;  %v6770_v20 = vld [vmem:[#allocation117_spill] sm:$0xff] }
 0x406   : > { %3353 = vrot.lane.b32.xlu2 %v2802_v35, %s4021_s27 }
 0x408   : > { %3289 = vrot.lane.b32.xlu1 %v2798_v21, %s4019_s18  ;;  %v3224_v52 = vpop.permute.xlu2 %3223  ;;  %3321 = vrot.lane.b32.xlu0 %v2800_v62, %s4020_s25 }
 0x40a   : > { %v3126_v31 = vpop.permute.xlu1 %3125  ;;  %v3158_v48 = vpop.permute.xlu0 %3157 }
 0x40b   : > { %v3456_v37 = vsel %vm3451_vm7, %v6055_v5, %v3126_v31 }
 0x40c   : > { %v3465_v45 = vsel %vm3460_vm8, %v3456_v37, %v3158_v48 }
 0x40d   : > { %v6210_v43 = vsel %vm3469_vm9, %v3465_v45, %v6138_v13 }
 0x40e   : > { %3375 = vrot.lane.b32.xlu2 %v6758_v49, %s4022_s28 }
 0x410   : > { %3311 = vrot.lane.b32.xlu1 %v6759_v38, %s4020_s25  ;;  %3343 = vrot.lane.b32.xlu0 %v6760_v32, %s4021_s27  ;;  %v3246_v6 = vpop.permute.xlu2 %3245 }
 0x412   : > { %v3132_v59 = vpop.permute.xlu1 %3131  ;;  %v3164_v10 = vpop.permute.xlu0 %3163 }
 0x413   : > { %v3459_v5 = vsel %vm3451_vm7, %v6069_v25, %v3132_v59 }
 0x414   : > { %v3468_v30 = vsel %vm3460_vm8, %v3459_v5, %v3164_v10 }
 0x415   : > { %v6222_v13 = vsel %vm3469_vm9, %v3468_v30, %v3196_v53 }
 0x416   : > { %3381 = vrot.lane.b32.xlu2 %v6761_v7, %s4022_s28 }
 0x418   : > { %3317 = vrot.lane.b32.xlu1 %v6762_v17, %s4020_s25  ;;  %3349 = vrot.lane.b32.xlu0 %v6763_v63, %s4021_s27  ;;  %v3252_v47 = vpop.permute.xlu2 %3251 }
 0x41a   : > { %v3154_v57 = vpop.permute.xlu1 %3153  ;;  %v3186_v46 = vpop.permute.xlu0 %3185 }
 0x41b   : > { %v3463_v25 = vsel %vm3460_vm8, %v6088_v40, %v3154_v57 }
 0x41c   : > { %v3472_v1 = vsel %vm3469_vm9, %v3463_v25, %v3186_v46 }
 0x41d   : > { %v6234_v53 = vsel %vm3478_vm10, %v3472_v1, %v3218_v55 }
 0x41e   : > { %3387 = vrot.lane.b32.xlu2 %v5701_v15, %s4022_s28  ;;  %v6765_v15 = vld [vmem:[#allocation56_spill] sm:$0xff] }
 0x420   : > { %3323 = vrot.lane.b32.xlu1 %v5690_v22, %s4020_s25  ;;  %3355 = vrot.lane.b32.xlu0 %v5706_v19, %s4021_s27  ;;  %v3258_v29 = vpop.permute.xlu2 %3257 }
 0x422   : > { %v3160_v34 = vpop.permute.xlu1 %3159  ;;  %v3192_v61 = vpop.permute.xlu0 %3191 }
 0x423   : > { %v3466_v58 = vsel %vm3460_vm8, %v6111_v54, %v3160_v34 }
 0x424   : > { %v3475_v40 = vsel %vm3469_vm9, %v3466_v58, %v3192_v61 }
 0x425   : > { %v6246_v0 = vsel %vm3478_vm10, %v3475_v40, %v3224_v52 }
 0x428   : > { %3345 = vrot.lane.b32.xlu1 %v6764_v14, %s4021_s27  ;;  %3377 = vrot.lane.b32.xlu0 %v6765_v15, %s4022_s28  ;;  %v3280_v12 = vpop.permute.xlu2 %3279 }
 0x42a   : > { %v3182_v22 = vpop.permute.xlu1 %3181  ;;  %v3214_v60 = vpop.permute.xlu0 %3213 }
 0x42b   : > { %v3470_v19 = vsel %vm3469_vm9, %v6131_v44, %v3182_v22 }
 0x42c   : > { %v3479_v54 = vsel %vm3478_vm10, %v3470_v19, %v3214_v60 }
 0x42d   : > { %v6256_v16 = vsel %vm3487_vm11, %v3479_v54, %v3246_v6 }
 0x430   : > { %3351 = vrot.lane.b32.xlu1 %v6766_v33, %s4021_s27  ;;  %3383 = vrot.lane.b32.xlu0 %v6767_v28, %s4022_s28  ;;  %v3286_v51 = vpop.permute.xlu2 %3285 }
 0x432   : > { %v3188_v39 = vpop.permute.xlu1 %3187  ;;  %v3220_v27 = vpop.permute.xlu0 %3219 }
 0x433   : > { %v3473_v18 = vsel %vm3469_vm9, %v6156_v24, %v3188_v39  ;;  %v6769_v24 = vld [vmem:[#allocation77_spill] sm:$0xff] }
 0x434   : > { %v3482_v50 = vsel %vm3478_vm10, %v3473_v18, %v3220_v27 }
 0x435   : > { %v6266_v44 = vsel %vm3487_vm11, %v3482_v50, %v3252_v47 }
 0x438   : > { %3373 = vrot.lane.b32.xlu1 %v6768_v3, %s4022_s28  ;;  %v3292_v36 = vpop.permute.xlu2 %3291 }
 0x43a   : > { %v3194_v55 = vpop.permute.xlu1 %3193  ;;  %v3226_v23 = vpop.permute.xlu0 %3225 }
 0x43b   : > { %v3476_v42 = vsel %vm3469_vm9, %v6179_v9, %v3194_v55 }
 0x43c   : > { %v3485_v8 = vsel %vm3478_vm10, %v3476_v42, %v3226_v23 }
 0x43d   : > { %v6274_v4 = vsel %vm3487_vm11, %v3485_v8, %v3258_v29 }
 0x440   : > { %3379 = vrot.lane.b32.xlu1 %v6769_v24, %s4022_s28  ;;  %v3314_v56 = vpop.permute.xlu2 %3313 }
 0x442   : > { %v3216_v2 = vpop.permute.xlu1 %3215  ;;  %v3248_v11 = vpop.permute.xlu0 %3247 }
 0x443   : > { %v3480_v7 = vsel %vm3478_vm10, %v6198_v41, %v3216_v2 }
 0x444   : > { %v3489_v17 = vsel %vm3487_vm11, %v3480_v7, %v3248_v11 }
 0x445   : > { %v3498_v46 = vsel %vm3496_vm12, %v3489_v17, %v3280_v12 }
 0x448   : > { %3385 = vrot.lane.b32.xlu1 %v6770_v20, %s4022_s28  ;;  %v6280_v9 = vpop.permute.xlu2 %3319 }
 0x44a   : > { %v3222_v26 = vpop.permute.xlu1 %3221  ;;  %v3254_v35 = vpop.permute.xlu0 %3253 }
 0x44b   : > { %v3483_v1 = vsel %vm3478_vm10, %v6210_v43, %v3222_v26 }
 0x44c   : > { %v3492_v61 = vsel %vm3487_vm11, %v3483_v1, %v3254_v35 }
 0x44d   : > { %v3501_v43 = vsel %vm3496_vm12, %v3492_v61, %v3286_v51 }
 0x450   : > { %v6282_v48 = vpop.permute.xlu2 %3341 }
 0x452   : > { %v3228_v21 = vpop.permute.xlu1 %3227  ;;  %v3260_v62 = vpop.permute.xlu0 %3259 }
 0x453   : > { %v3486_v15 = vsel %vm3478_vm10, %v6222_v13, %v3228_v21 }
 0x454   : > { %v3495_v19 = vsel %vm3487_vm11, %v3486_v15, %v3260_v62 }
 0x455   : > { %v3504_v12 = vsel %vm3496_vm12, %v3495_v19, %v3292_v36 }
 0x458   : > { %v6288_v32 = vpop.permute.xlu2 %3347 }
 0x45a   : > { %v3250_v52 = vpop.permute.xlu1 %3249  ;;  %v3282_v31 = vpop.permute.xlu0 %3281 }
 0x45b   : > { %v3490_v13 = vsel %vm3487_vm11, %v6234_v53, %v3250_v52 }
 0x45c   : > { %v3499_v50 = vsel %vm3496_vm12, %v3490_v13, %v3282_v31 }
 0x45d   : > { %v3508_v51 = vsel %vm3505_vm13, %v3499_v50, %v3314_v56 }
 0x460   : > { %v6294_v10 = vpop.permute.xlu2 %3353 }
 0x462   : > { %v3256_v37 = vpop.permute.xlu1 %3255  ;;  %v3288_v45 = vpop.permute.xlu0 %3287 }
 0x463   : > { %v3493_v53 = vsel %vm3487_vm11, %v6246_v0, %v3256_v37 }
 0x464   : > { %v3502_v8 = vsel %vm3496_vm12, %v3493_v53, %v3288_v45 }
 0x465   : > { %v3511_v2 = vsel %vm3505_vm13, %v3502_v8, %v6280_v9 }
 0x468   : > { %v3376_v63 = vpop.permute.xlu2 %3375 }
 0x46a   : > { %v6284_v49 = vpop.permute.xlu1 %3277  ;;  %v6286_v38 = vpop.permute.xlu0 %3309 }
 0x46b   : > { %v3497_v0 = vsel %vm3496_vm12, %v6256_v16, %v6284_v49 }
 0x46c   : > { %v3506_v26 = vsel %vm3505_vm13, %v3497_v0, %v6286_v38 }
 0x46d   : > { %v3515_v56 = vsel %vm3514_vm15, %v3506_v26, %v6282_v48 }
 0x470   : > { %v3382_v58 = vpop.permute.xlu2 %3381 }
 0x472   : > { %v6290_v6 = vpop.permute.xlu1 %3283  ;;  %v6292_v59 = vpop.permute.xlu0 %3315 }
 0x473   : > { %v3500_v16 = vsel %vm3496_vm12, %v6266_v44, %v6290_v6 }
 0x474   : > { %v3509_v62 = vsel %vm3505_vm13, %v3500_v16, %v6292_v59 }
 0x475   : > { %v3518_v52 = vsel %vm3514_vm15, %v3509_v62, %v6288_v32 }
 0x478   : > { %v3388_v39 = vpop.permute.xlu2 %3387 }
 0x47a   : > { %v6296_v5 = vpop.permute.xlu1 %3289  ;;  %v6298_v30 = vpop.permute.xlu0 %3321 }
 0x47b   : > { %v3503_v44 = vsel %vm3496_vm12, %v6274_v4, %v6296_v5 }
 0x47c   : > { %v3512_v48 = vsel %vm3505_vm13, %v3503_v44, %v6298_v30 }
 0x47d   : > { %v3521_v45 = vsel %vm3514_vm15, %v3512_v48, %v6294_v10 }
 0x482   : > { %v3312_v57 = vpop.permute.xlu1 %3311  ;;  %v3344_v47 = vpop.permute.xlu0 %3343 }
 0x483   : > { %v3507_v25 = vsel %vm3505_vm13, %v3498_v46, %v3312_v57 }
 0x484   : > { %v3516_v41 = vsel %vm3514_vm15, %v3507_v25, %v3344_v47 }
 0x485   : > { %v3525_v34 = vsel %vm3523_vm14, %v3516_v41, %v3376_v63 }
 0x486   : > { %3551 = vrot.lane.b32.xlu1 %v3525_v34, %s4023_s29  ;;  %3534 = vst.msk [vmem:[%s6312_s7 + $0x8] sm:$0xff] %vm3532_vm0, %v3525_v34 }
 0x48a   : > { %v3318_v40 = vpop.permute.xlu1 %3317  ;;  %v3350_v29 = vpop.permute.xlu0 %3349 }
 0x48b   : > { %v3510_v14 = vsel %vm3505_vm13, %v3501_v43, %v3318_v40 }
 0x48c   : > { %v3519_v22 = vsel %vm3514_vm15, %v3510_v14, %v3350_v29 }
 0x48d   : > { %v3528_v60 = vsel %vm3523_vm14, %v3519_v22, %v3382_v58 }
 0x48e   : > { %3557 = vrot.lane.b32.xlu1 %v3528_v60, %s4023_s29  ;;  %3537 = vst.msk [vmem:[%s6312_s7 + $0x20] sm:$0xff] %vm3532_vm0, %v3528_v60 }
 0x492   : > { %v3324_v54 = vpop.permute.xlu1 %3323  ;;  %v3356_v33 = vpop.permute.xlu0 %3355 }
 0x493   : > { %v3513_v28 = vsel %vm3505_vm13, %v3504_v12, %v3324_v54 }
 0x494   : > { %v3522_v27 = vsel %vm3514_vm15, %v3513_v28, %v3356_v33 }
 0x495   : > { %v3531_v18 = vsel %vm3523_vm14, %v3522_v27, %v3388_v39 }
 0x496   : > { %3563 = vrot.lane.b32.xlu1 %v3531_v18, %s4023_s29  ;;  %3540 = vst.msk [vmem:[%s6312_s7 + $0x38] sm:$0xff] %vm3532_vm0, %v3531_v18 }
 0x49a   : > { %v3346_v3 = vpop.permute.xlu1 %3345  ;;  %v3378_v55 = vpop.permute.xlu0 %3377 }
 0x49b   : > { %v3517_v23 = vsel %vm3514_vm15, %v3508_v51, %v3346_v3 }
 0x49c   : > { %v3526_v42 = vsel %vm3523_vm14, %v3517_v23, %v3378_v55 }
 0x49d   : > { %3535 = vst.msk [vmem:[%s6312_s7 + $0x10] sm:$0xff] %vm3532_vm0, %v3526_v42  ;;  %3553 = vrot.lane.b32.xlu2 %v3526_v42, %s4023_s29 }
 0x4a2   : > { %v3352_v24 = vpop.permute.xlu1 %3351  ;;  %v3384_v11 = vpop.permute.xlu0 %3383 }
 0x4a3   : > { %v3520_v36 = vsel %vm3514_vm15, %v3511_v2, %v3352_v24 }
 0x4a4   : > { %v3529_v20 = vsel %vm3523_vm14, %v3520_v36, %v3384_v11 }
 0x4a5   : > { %3538 = vst.msk [vmem:[%s6312_s7 + $0x28] sm:$0xff] %vm3532_vm0, %v3529_v20  ;;  %3559 = vrot.lane.b32.xlu2 %v3529_v20, %s4023_s29 }
 0x4aa   : > { %v3374_v35 = vpop.permute.xlu1 %3373 }
 0x4ab   : > { %v3524_v21 = vsel %vm3523_vm14, %v3515_v56, %v3374_v35 }
 0x4ac   : > { %3533 = vst.msk [vmem:[%s6312_s7] sm:$0xff] %vm3532_vm0, %v3524_v21  ;;  %3549 = vrot.lane.b32.xlu0 %v3524_v21, %s4023_s29 }
 0x4b2   : > { %v3380_v9 = vpop.permute.xlu1 %3379 }
 0x4b3   : > { %v3527_v31 = vsel %vm3523_vm14, %v3518_v52, %v3380_v9 }
 0x4b4   : > { %3536 = vst.msk [vmem:[%s6312_s7 + $0x18] sm:$0xff] %vm3532_vm0, %v3527_v31  ;;  %3555 = vrot.lane.b32.xlu0 %v3527_v31, %s4023_s29 }
 0x4ba   : > { %v3386_v37 = vpop.permute.xlu1 %3385 }
 0x4bb   : > { %v3530_v49 = vsel %vm3523_vm14, %v3521_v45, %v3386_v37 }
 0x4bc   : > { %3539 = vst.msk [vmem:[%s6312_s7 + $0x30] sm:$0xff] %vm3532_vm0, %v3530_v49  ;;  %3561 = vrot.lane.b32.xlu0 %v3530_v49, %s4023_s29 }
 0x4f7   : > { %v3554_v4 = vpop.permute.xlu2 %3553 }
 0x4f8   : > { %3576 = vst.msk [vmem:[%s6312_s7 + $0x10] sm:$0xff] %vm3573_vm1, %v3554_v4  ;;  %v3552_v38 = vpop.permute.xlu1 %3551 }
 0x4f9   : > { %3575 = vst.msk [vmem:[%s6312_s7 + $0x8] sm:$0xff] %vm3573_vm1, %v3552_v38 }
 0x4ff   : > { %v3560_v32 = vpop.permute.xlu2 %3559 }
 0x500   : > { %3579 = vst.msk [vmem:[%s6312_s7 + $0x28] sm:$0xff] %vm3573_vm1, %v3560_v32  ;;  %v3558_v6 = vpop.permute.xlu1 %3557 }
 0x501   : > { %3578 = vst.msk [vmem:[%s6312_s7 + $0x20] sm:$0xff] %vm3573_vm1, %v3558_v6 }
 0x508   : > { %v3564_v59 = vpop.permute.xlu1 %3563 }
 0x509   : > { %3581 = vst.msk [vmem:[%s6312_s7 + $0x38] sm:$0xff] %vm3573_vm1, %v3564_v59 }
 0x51e   : > { %v3550_v10 = vpop.permute.xlu0 %3549 }
 0x51f   : > { %3574 = vst.msk [vmem:[%s6312_s7] sm:$0xff] %vm3573_vm1, %v3550_v10 }
 0x526   : > { %v3556_v5 = vpop.permute.xlu0 %3555 }
 0x527   : > { %3577 = vst.msk [vmem:[%s6312_s7 + $0x18] sm:$0xff] %vm3573_vm1, %v3556_v5 }
 0x52e   : > { %v3562_v30 = vpop.permute.xlu0 %3561 }
 0x52f   : > { %3580 = vst.msk [vmem:[%s6312_s7 + $0x30] sm:$0xff] %vm3573_vm1, %v3562_v30 }
 0x530   : > { %3943 = shalt.err (!%p3940_p13)
}
 0x531   : > { %s4024_s19 = smov 128  }
 0x532   : > { %3724 = dma.vmem_to_hbm [thread:$0]  (%p4102_p9), %s3598_s11, 1024, %s3600_s12, %s3583_s13, %s4024_s19, %s4024_s19, %s4011_s10  }
 0x533 PF: > { %s3614_s27 = sand.u32 1, %s3980_s20   ;;  %p3731_p0 = pnand %p3690_p12, %p4109_p11 }
 0x534   : > { %s3615_s28 = scalar_lea.sflag [#allocation7], %s3614_s27 }
 0x535   : > { %p3732_p1 = pneg %p3731_p0 }
 0x537   : > { %3975 = dma.done.wait (%p3732_p1), %s3615_s28, 1024  }
 0x538   : > { %3977 = vsyncadd (%p3732_p1), %s3615_s28, 4294966272  ;;  %s32_s23 = sadd.s32 1, %s4000_s23   ;;  %s6771_s20 = smov %s3984_s0 }
 0x539   : > { %p29_p2 = scmp.ge.s32.totalorder %s32_s23, 4   ;;  %s6772_s0 = smov %s3988_s21 }
 0x53a   : > { %s6773_s21 = smov %s4107_s5  ;;  %s6774_s1 = smov %s3996_s22 }
 0x53b   : > { %s6775_s22 = smov %s6777_s26  ;;  %31 = sbr.rel (!%p29_p2) target bundleno = 13 (0xd), region = 69 }
 0x540   :  { %3621 = vsyncpa [#allocation6], 1 }
 0x541   :  { %3623 = vsyncpa [#allocation6 + $0x1], 1 }
 0x542   :  { %3624 = vsyncpa [#allocation7], 1 }
 0x543   :  { %3626 = vsyncpa [#allocation7 + $0x1], 1 }

</bundles_post_ra>
